<compile_context>
chip_gen: v7x
topology: tpu7x:2x2x1
jax: 0.10.0
libtpu: 0.0.40
codegen_flags: <defaults>
</compile_context>

<pallas_src>
import functools

import jax
import jax.numpy as jnp
from jax.experimental import pallas as pl
from jax.experimental.pallas import tpu as pltpu

R = 2
INPUT_SIZE = (28, 62, 355)  # (I, J, K) as in the PyTorch module


def cp_matmul_kernel(a_ref, w_ref, o_ref):
    """One row-tile of the flattened (I*J, K) output.

    a_ref: (rows_tile, R)  -- precomputed U[r,i]*V[r,j] factors for these rows
    w_ref: (R, K)          -- full, resident across grid steps
    o_ref: (rows_tile, K)
    """
    o_ref[...] = jnp.dot(a_ref[...], w_ref[...],
                         preferred_element_type=jnp.float32)


@functools.partial(jax.jit, static_argnames=("row_tiles",))
def tf_forward(U, V, W, X=None, *, row_tiles=1):
    """Pallas implementation of TF.forward (X is unused, matching PyTorch).

    row_tiles=1 -> single grid step (best on v5e/v6e, fine on v7x).
    row_tiles=2 -> two "parallel" steps so v7x megacore can split the writeback.
    """
    del X  # the reference forward computes a mask from X but never applies it
    Rr, I = U.shape
    _, J = V.shape
    _, K = W.shape
    IJ = I * J

    # A[(i*J + j), r] = U[r, i] * V[r, j].  Tiny (IJ*R floats); fused under jit.
    A = jnp.einsum("ri,rj->ijr", U, V).reshape(IJ, Rr)

    if row_tiles <= 1:
        block_rows = IJ  # full extent -> satisfies the (8,128) rule trivially
    else:
        # Per-tile row count rounded up to a multiple of 8 (sublane constraint);
        # Pallas masks the out-of-bounds writeback on a partial last tile.
        block_rows = ((IJ + row_tiles - 1) // row_tiles + 7) // 8 * 8
    grid = (pl.cdiv(IJ, block_rows),)

    flops = 2 * IJ * Rr * K                            # ~2.5 MFLOP
    bytes_accessed = 4 * (IJ * Rr + Rr * K + IJ * K)   # ~2.5 MB (writeback-bound)

    out2d = pl.pallas_call(
        cp_matmul_kernel,
        out_shape=jax.ShapeDtypeStruct((IJ, K), jnp.float32),
        grid_spec=pltpu.PrefetchScalarGridSpec(
            num_scalar_prefetch=0,
            grid=grid,
            in_specs=[
                pl.BlockSpec((block_rows, Rr), lambda i: (i, 0)),  # A row tile
                pl.BlockSpec((Rr, K), lambda i: (0, 0)),           # W full, resident
            ],
            out_specs=pl.BlockSpec((block_rows, K), lambda i: (i, 0)),
        ),
        compiler_params=pltpu.CompilerParams(
            dimension_semantics=("parallel",)),
        cost_estimate=pl.CostEstimate(
            flops=flops, transcendentals=0, bytes_accessed=bytes_accessed),
    )(A, W)

    # Row-major reshape back to the PyTorch output layout -- free under jit.
    return out2d.reshape(I, J, K)


if __name__ == "__main__":
    I, J, K = INPUT_SIZE

    # Deterministic parameter init: Uniform(0, 1), same shapes as the nn.Parameters.
    key = jax.random.PRNGKey(0)
    ku, kv, kw = jax.random.split(key, 3)
    U = jax.random.uniform(ku, (R, I), dtype=jnp.float32)
    V = jax.random.uniform(kv, (R, J), dtype=jnp.float32)
    W = jax.random.uniform(kw, (R, K), dtype=jnp.float32)

    out = jax.block_until_ready(tf_forward(U, V, W))

    # Pure-JAX reference: output[i,j,k] = sum_r U[r,i]*V[r,j]*W[r,k]
    ref = jnp.einsum("ri,rj,rk->ijk", U, V, W)
    assert out.shape == (I, J, K)
    assert jnp.allclose(out, ref, atol=1e-5, rtol=1e-5)

    print("KERNEL_OK")
</pallas_src>

<mosaic_0001>
module attributes {stable_mosaic.version = 11 : i64} {
  func.func @cp_matmul_kernel(%arg0: i32, %arg1: memref<1736x2xf32, #tpu.memory_space<vmem>>, %arg2: memref<2x355xf32, #tpu.memory_space<vmem>>, %arg3: memref<1736x355xf32, #tpu.memory_space<vmem>>) attributes {dimension_semantics = [#tpu.dimension_semantics<parallel>], iteration_bounds = array<i64: 1>, scalar_prefetch = 0 : i64, scratch_operands = 0 : i64, tpu.core_type = #tpu.core_type<tc>, window_params = [{transform_indices = @transform_0, window_bounds = array<i64: 1736, 2>}, {pipeline_mode = #tpu.pipeline_mode<synchronous>, transform_indices = @transform_1, window_bounds = array<i64: 2, 355>}, {transform_indices = @transform_2, window_bounds = array<i64: 1736, 355>}]} {
    %c0 = arith.constant 0 : index
    %c0_0 = arith.constant 0 : index
    %0 = vector.load %arg1[%c0, %c0_0] : memref<1736x2xf32, #tpu.memory_space<vmem>>, vector<1736x2xf32>
    %c0_1 = arith.constant 0 : index
    %c0_2 = arith.constant 0 : index
    %1 = vector.load %arg2[%c0_1, %c0_2] : memref<2x355xf32, #tpu.memory_space<vmem>>, vector<2x355xf32>
    %cst = arith.constant dense<0.000000e+00> : vector<1736x355xf32>
    %2 = tpu.matmul %0, %1, %cst {dimension_numbers = #tpu.dot_dimension_numbers<[1], [0], [0], [1], [0, 0, 1, 1], [], []>} : vector<1736x2xf32>, vector<2x355xf32>, vector<1736x355xf32> -> vector<1736x355xf32>
    %c0_3 = arith.constant 0 : index
    %c0_4 = arith.constant 0 : index
    %3 = vector.load %arg3[%c0_3, %c0_4] : memref<1736x355xf32, #tpu.memory_space<vmem>>, vector<1736x355xf32>
    tpu.vector_store %arg3[%c0_3, %c0_4], %2 {strides = array<i32>} : memref<1736x355xf32, #tpu.memory_space<vmem>>, vector<1736x355xf32>,
    return
  }
  func.func @transform_0(%arg0: i32) -> (i32, i32) {
    %c0_i32 = arith.constant 0 : i32
    %c0_i32_0 = arith.constant 0 : i32
    return %arg0, %c0_i32 : i32, i32
  }
  func.func @transform_1(%arg0: i32) -> (i32, i32) {
    %c0_i32 = arith.constant 0 : i32
    %c0_i32_0 = arith.constant 0 : i32
    %c0_i32_1 = arith.constant 0 : i32
    return %c0_i32, %c0_i32_0 : i32, i32
  }
  func.func @transform_2(%arg0: i32) -> (i32, i32) {
    %c0_i32 = arith.constant 0 : i32
    %c0_i32_0 = arith.constant 0 : i32
    return %arg0, %c0_i32 : i32, i32
  }
}

</mosaic_0001>

<bundles_post_ra>
// kernel: tf_forward.1
= control target key start
LH: loop header
LB: loop body
LE: loop exit
PB: predicated region body
PF: predicated region fallthrough
CT: control target
= control target key end

     0   :  { %7 = vsyncpa [#allocation3], 0  ;;  %s5428_s9 = smov [#allocation2]   ;;  %s9366_s0 = inlined_call_operand.vmem [shape: f32[1736,2], index: 0, kind: input, shape index: {}]   ;;  %s9367_s1 = inlined_call_operand.hbm [shape: f32[2,355], index: 1, kind: input, shape index: {}]   ;;  %s9368_s2 = inlined_call_operand.vmem [shape: f32[1736,355], index: 2, kind: output, shape index: {}]  }
   0x1   :  { %s16_s10 = sshll.u32 %s5428_s9, 4  ;;  %s5404_s13 = scalar_lea.hbm %s9367_s1, 96  ;;  %s17_s10 = int_to_ptr.vmem [resolvable:$true] %s16_s10 }
   0x2   :  { %p5405_p0 = scmp.ne.s32.totalorder %s9367_s1, %s5404_s13  ;;  %p5408_p1 = scmp.lt.u32.totalorder %s5404_s13, %s9367_s1 }
   0x4   :  { %p5410_p2 = pnand %p5408_p1, %p5405_p0 }
   0x6   :  { %5413 = shalt.err (!%p5410_p2)
}
   0x7   :  { %s5414_s18 = scalar_lea.vmem %s17_s10, 96  ;;  %p5419_p4 = scmp.lt.s32.totalorder %s17_s10, %s17_s10 }
   0x8   :  { %p5415_p3 = scmp.ne.s32.totalorder %s17_s10, %s5414_s18  ;;  %p5420_p5 = scmp.lt.s32.totalorder %s5414_s18, %s5414_s18 }
   0xa   :  { %p5421_p6 = por %p5420_p5, %p5419_p4 }
   0xc   :  { %p5422_p7 = pnand %p5421_p6, %p5415_p3 }
   0xe   :  { %5425 = shalt.err (!%p5422_p7)
}
   0xf   :  { %19 = dma.hbm_to_vmem [thread:$0]  %s9367_s1, 96, %s17_s10, [#allocation3]  }
  0x10   :  { %5426 = dma.done.wait [#allocation3], 96  }
  0x11   :  { %5427 = vsyncadd [#allocation3], 4294967200  ;;  %v246_v0 = vlaneseq  ;;  %v5429_v1 = vmov 1983009808   ;;  %v5430_v3 = vmov 0.0   ;;  %vm5431_vm0 = vmmov 0  }
  0x12   :  { %v244_v2 = vunpack.c.l.s4 %v5429_v1  ;;  %4746 = vmatprep.subr.mxu1 %v5430_v3  ;;  %981 = vmatprep.mubr.f32.mxu0 %v5430_v3  ;;  %v240_v7 = vld [vmem:[#allocation2] sm:$0x3f]  ;;  %vm910_vm1 = vcmask 1041408   ;;  %vm258_vm2 = vcmask 15360   ;;  %v24_v13 = vld [vmem:[%s9366_s0 + $0x8] sm:$0xff]  ;;  %v25_v14 = vld [vmem:[%s9366_s0 + $0x10] sm:$0xff] }
  0x13   :  { %v247_v4 = vshrl.u32 %v246_v0, 7  ;;  %4748 = vmatprep.mubr.msk.f32.mxu1 %vm5431_vm0, %v5430_v3  ;;  %v242_v8 = vcombine.high %v240_v7, %v240_v7  ;;  %v23_v12 = vld [vmem:[%s9366_s0] sm:$0xff]  ;;  %v26_v15 = vld [vmem:[%s9366_s0 + $0x18] sm:$0xff]  ;;  %v28_v17 = vld [vmem:[%s9366_s0 + $0x28] sm:$0xff]  ;;  %vm3436_vm3 = vcmask 809984  }
  0x14   :  { %v245_v5 = vunpack.c.0.s8 %v244_v2  ;;  %v27_v16 = vld [vmem:[%s9366_s0 + $0x20] sm:$0xff]  ;;  %v29_v18 = vld [vmem:[%s9366_s0 + $0x30] sm:$0xff]  ;;  %v30_v19 = vld [vmem:[%s9366_s0 + $0x38] sm:$0xff] }
  0x15   :  { %v31_v20 = vld [vmem:[%s9366_s0 + $0x40] sm:$0xff]  ;;  %v32_v21 = vld [vmem:[%s9366_s0 + $0x48] sm:$0xff]  ;;  %v33_v22 = vld [vmem:[%s9366_s0 + $0x50] sm:$0xff] }
  0x16   :  { %v248_v6 = vsub.s32 %v245_v5, %v247_v4  ;;  %v34_v23 = vld [vmem:[%s9366_s0 + $0x58] sm:$0xff]  ;;  %v35_v24 = vld [vmem:[%s9366_s0 + $0x60] sm:$0xff]  ;;  %v36_v25 = vld [vmem:[%s9366_s0 + $0x68] sm:$0xff] }
  0x17   :  { %v37_v26 = vld [vmem:[%s9366_s0 + $0x70] sm:$0xff]  ;;  %v38_v27 = vld [vmem:[%s9366_s0 + $0x78] sm:$0xff]  ;;  %v39_v28 = vld [vmem:[%s9366_s0 + $0x80] sm:$0xff] }
  0x18   :  { %v249_v9 = vrot.slane %v240_v7, %v248_v6  ;;  %v256_v11 = vrot.slane %v242_v8, %v248_v6  ;;  %v40_v29 = vld [vmem:[%s9366_s0 + $0x88] sm:$0xff]  ;;  %v41_v30 = vld [vmem:[%s9366_s0 + $0x90] sm:$0xff]  ;;  %v42_v31 = vld [vmem:[%s9366_s0 + $0x98] sm:$0xff] }
  0x19   :  { %v43_v32 = vld [vmem:[%s9366_s0 + $0xa0] sm:$0xff]  ;;  %v44_v33 = vld [vmem:[%s9366_s0 + $0xa8] sm:$0xff]  ;;  %v45_v34 = vld [vmem:[%s9366_s0 + $0xb0] sm:$0xff] }
  0x1a   :  { %v257_v10 = vcombine.high %v249_v9, %v249_v9  ;;  %4747 = vmatpush3.msk.msra.mxu1 %vm910_vm1, %v256_v11  ;;  %v46_v35 = vld [vmem:[%s9366_s0 + $0xb8] sm:$0xff]  ;;  %v47_v36 = vld [vmem:[%s9366_s0 + $0xc0] sm:$0xff]  ;;  %v48_v37 = vld [vmem:[%s9366_s0 + $0xc8] sm:$0xff] }
  0x1b   :  { %4749 = vmatmul.mubr.msk.f32.vlgmr.msra.gmra.mrb[0].mxu1 %vm258_vm2, %v23_v12  ;;  %v49_v38 = vld [vmem:[%s9366_s0 + $0xd0] sm:$0xff]  ;;  %v50_v39 = vld [vmem:[%s9366_s0 + $0xd8] sm:$0xff]  ;;  %v51_v40 = vld [vmem:[%s9366_s0 + $0xe0] sm:$0xff] }
  0x1c   :  { %4091 = vmatprep.subr.msk.mxu0 %vm910_vm1, %v257_v10  ;;  %4751 = vmatprep.mubr.msk.f32.mxu1 %vm5431_vm0, %v5430_v3  ;;  %v52_v41 = vld [vmem:[%s9366_s0 + $0xe8] sm:$0xff]  ;;  %v53_v42 = vld [vmem:[%s9366_s0 + $0xf0] sm:$0xff]  ;;  %v54_v43 = vld [vmem:[%s9366_s0 + $0xf8] sm:$0xff] }
  0x1d   :  { %4092 = vmatpush1.msk.msra.mxu0 %vm910_vm1, %v249_v9  ;;  %v55_v44 = vld [vmem:[%s9366_s0 + $0x100] sm:$0xff]  ;;  %v56_v45 = vld [vmem:[%s9366_s0 + $0x108] sm:$0xff]  ;;  %v57_v46 = vld [vmem:[%s9366_s0 + $0x110] sm:$0xff] }
  0x1e   :  { %4093 = vmatmul.mubr.msk.f32.vlgmr.msra.gmra.mrb[0].mxu0 %vm258_vm2, %v23_v12  ;;  %v58_v47 = vld [vmem:[%s9366_s0 + $0x118] sm:$0xff]  ;;  %v59_v48 = vld [vmem:[%s9366_s0 + $0x120] sm:$0xff]  ;;  %v60_v49 = vld [vmem:[%s9366_s0 + $0x128] sm:$0xff] }
  0x1f   :  { %987 = vmatprep.mubr.f32.mxu0 %v5430_v3  ;;  %4752 = vmatmul.mubr.msk.f32.gmra.mrb[2].mxu1 %vm258_vm2, %v24_v13  ;;  %v61_v50 = vld [vmem:[%s9366_s0 + $0x130] sm:$0xff]  ;;  %v62_v51 = vld [vmem:[%s9366_s0 + $0x138] sm:$0xff]  ;;  %v63_v52 = vld [vmem:[%s9366_s0 + $0x140] sm:$0xff] }
  0x20   :  { %4754 = vmatprep.mubr.msk.f32.mxu1 %vm5431_vm0, %v5430_v3  ;;  %v64_v53 = vld [vmem:[%s9366_s0 + $0x148] sm:$0xff]  ;;  %v65_v54 = vld [vmem:[%s9366_s0 + $0x150] sm:$0xff]  ;;  %v66_v55 = vld [vmem:[%s9366_s0 + $0x158] sm:$0xff] }
  0x21   :  { %v67_v56 = vld [vmem:[%s9366_s0 + $0x160] sm:$0xff]  ;;  %v68_v57 = vld [vmem:[%s9366_s0 + $0x168] sm:$0xff]  ;;  %v69_v58 = vld [vmem:[%s9366_s0 + $0x170] sm:$0xff] }
  0x22   :  { %4094 = vmatmul.mubr.msk.f32.gmra.mrb[2].mxu0 %vm258_vm2, %v24_v13  ;;  %v70_v59 = vld [vmem:[%s9366_s0 + $0x178] sm:$0xff]  ;;  %v71_v60 = vld [vmem:[%s9366_s0 + $0x180] sm:$0xff]  ;;  %v72_v61 = vld [vmem:[%s9366_s0 + $0x188] sm:$0xff] }
  0x23   :  { %993 = vmatprep.mubr.f32.mxu0 %v5430_v3  ;;  %4755 = vmatmul.mubr.msk.f32.gmra.mrb[4].mxu1 %vm258_vm2, %v25_v14  ;;  %v73_v62 = vld [vmem:[%s9366_s0 + $0x190] sm:$0xff]  ;;  %v74_v63 = vld [vmem:[%s9366_s0 + $0x198] sm:$0xff]  ;;  %v75_v0 = vld [vmem:[%s9366_s0 + $0x1a0] sm:$0xff] }
  0x24   :  { %4757 = vmatprep.mubr.msk.f32.mxu1 %vm5431_vm0, %v5430_v3  ;;  %v76_v1 = vld [vmem:[%s9366_s0 + $0x1a8] sm:$0xff]  ;;  %v77_v7 = vld [vmem:[%s9366_s0 + $0x1b0] sm:$0xff]  ;;  %v78_v12 = vld [vmem:[%s9366_s0 + $0x1b8] sm:$0xff] }
  0x26   :  { %4095 = vmatmul.mubr.msk.f32.gmra.mrb[4].mxu0 %vm258_vm2, %v25_v14 }
  0x27   :  { %999 = vmatprep.mubr.f32.mxu0 %v5430_v3  ;;  %4758 = vmatmul.mubr.msk.f32.gmra.mrb[6].mxu1 %vm258_vm2, %v26_v15 }
  0x28   :  { %4760 = vmatprep.mubr.msk.f32.mxu1 %vm5431_vm0, %v5430_v3 }
  0x2a   :  { %4096 = vmatmul.mubr.msk.f32.gmra.mrb[6].mxu0 %vm258_vm2, %v26_v15 }
  0x2b   :  { %1005 = vmatprep.mubr.f32.mxu0 %v5430_v3  ;;  %4761 = vmatmul.mubr.msk.f32.gmra.mrb[8].mxu1 %vm258_vm2, %v27_v16 }
  0x2c   :  { %4763 = vmatprep.mubr.msk.f32.mxu1 %vm5431_vm0, %v5430_v3 }
  0x2e   :  { %4097 = vmatmul.mubr.msk.f32.gmra.mrb[8].mxu0 %vm258_vm2, %v27_v16 }
  0x2f   :  { %1011 = vmatprep.mubr.f32.mxu0 %v5430_v3  ;;  %4764 = vmatmul.mubr.msk.f32.gmra.mrb[10].mxu1 %vm258_vm2, %v28_v17 }
  0x30   :  { %4766 = vmatprep.mubr.msk.f32.mxu1 %vm5431_vm0, %v5430_v3 }
  0x32   :  { %4098 = vmatmul.mubr.msk.f32.gmra.mrb[10].mxu0 %vm258_vm2, %v28_v17  ;;  %v79_v17 = vld [vmem:[%s9366_s0 + $0x1c0] sm:$0xff] }
  0x33   :  { %1017 = vmatprep.mubr.f32.mxu0 %v5430_v3  ;;  %4767 = vmatmul.mubr.msk.f32.gmra.mrb[12].mxu1 %vm258_vm2, %v29_v18 }
  0x34   :  { %4769 = vmatprep.mubr.msk.f32.mxu1 %vm5431_vm0, %v5430_v3 }
  0x36   :  { %4099 = vmatmul.mubr.msk.f32.gmra.mrb[12].mxu0 %vm258_vm2, %v29_v18 }
  0x37   :  { %1023 = vmatprep.mubr.f32.mxu0 %v5430_v3  ;;  %4770 = vmatmul.mubr.msk.f32.gmra.mrb[14].mxu1 %vm258_vm2, %v30_v19 }
  0x38   :  { %4772 = vmatprep.mubr.msk.f32.mxu1 %vm5431_vm0, %v5430_v3 }
  0x3a   :  { %4100 = vmatmul.mubr.msk.f32.gmra.mrb[14].mxu0 %vm258_vm2, %v30_v19 }
  0x3b   :  { %1029 = vmatprep.mubr.f32.mxu0 %v5430_v3  ;;  %4773 = vmatmul.mubr.msk.f32.gmra.mrb[16].mxu1 %vm258_vm2, %v31_v20 }
  0x3c   :  { %4775 = vmatprep.mubr.msk.f32.mxu1 %vm5431_vm0, %v5430_v3 }
  0x3e   :  { %4101 = vmatmul.mubr.msk.f32.gmra.mrb[16].mxu0 %vm258_vm2, %v31_v20 }
  0x3f   :  { %1035 = vmatprep.mubr.f32.mxu0 %v5430_v3  ;;  %4776 = vmatmul.mubr.msk.f32.gmra.mrb[18].mxu1 %vm258_vm2, %v32_v21 }
  0x40   :  { %4778 = vmatprep.mubr.msk.f32.mxu1 %vm5431_vm0, %v5430_v3 }
  0x42   :  { %4102 = vmatmul.mubr.msk.f32.gmra.mrb[18].mxu0 %vm258_vm2, %v32_v21 }
  0x43   :  { %1041 = vmatprep.mubr.f32.mxu0 %v5430_v3  ;;  %4779 = vmatmul.mubr.msk.f32.gmra.mrb[20].mxu1 %vm258_vm2, %v33_v22 }
  0x44   :  { %4781 = vmatprep.mubr.msk.f32.mxu1 %vm5431_vm0, %v5430_v3 }
  0x46   :  { %4103 = vmatmul.mubr.msk.f32.gmra.mrb[20].mxu0 %vm258_vm2, %v33_v22  ;;  %v80_v22 = vld [vmem:[%s9366_s0 + $0x1c8] sm:$0xff] }
  0x47   :  { %1047 = vmatprep.mubr.f32.mxu0 %v5430_v3  ;;  %4782 = vmatmul.mubr.msk.f32.gmra.mrb[22].mxu1 %vm258_vm2, %v34_v23 }
  0x48   :  { %4784 = vmatprep.mubr.msk.f32.mxu1 %vm5431_vm0, %v5430_v3 }
  0x4a   :  { %4104 = vmatmul.mubr.msk.f32.gmra.mrb[22].mxu0 %vm258_vm2, %v34_v23 }
  0x4b   :  { %1053 = vmatprep.mubr.f32.mxu0 %v5430_v3  ;;  %4785 = vmatmul.mubr.msk.f32.gmra.mrb[24].mxu1 %vm258_vm2, %v35_v24 }
  0x4c   :  { %4787 = vmatprep.mubr.msk.f32.mxu1 %vm5431_vm0, %v5430_v3 }
  0x4e   :  { %4105 = vmatmul.mubr.msk.f32.gmra.mrb[24].mxu0 %vm258_vm2, %v35_v24 }
  0x4f   :  { %1059 = vmatprep.mubr.f32.mxu0 %v5430_v3  ;;  %4788 = vmatmul.mubr.msk.f32.gmra.mrb[26].mxu1 %vm258_vm2, %v36_v25 }
  0x50   :  { %4790 = vmatprep.mubr.msk.f32.mxu1 %vm5431_vm0, %v5430_v3 }
  0x52   :  { %4106 = vmatmul.mubr.msk.f32.gmra.mrb[26].mxu0 %vm258_vm2, %v36_v25 }
  0x53   :  { %1065 = vmatprep.mubr.f32.mxu0 %v5430_v3  ;;  %4791 = vmatmul.mubr.msk.f32.gmra.mrb[28].mxu1 %vm258_vm2, %v37_v26 }
  0x54   :  { %4793 = vmatprep.mubr.msk.f32.mxu1 %vm5431_vm0, %v5430_v3 }
  0x56   :  { %4107 = vmatmul.mubr.msk.f32.gmra.mrb[28].mxu0 %vm258_vm2, %v37_v26 }
  0x57   :  { %1071 = vmatprep.mubr.f32.mxu0 %v5430_v3  ;;  %4794 = vmatmul.mubr.msk.f32.gmra.mrb[30].mxu1 %vm258_vm2, %v38_v27 }
  0x58   :  { %4796 = vmatprep.mubr.msk.f32.mxu1 %vm5431_vm0, %v5430_v3 }
  0x5a   :  { %4108 = vmatmul.mubr.msk.f32.gmra.mrb[30].mxu0 %vm258_vm2, %v38_v27  ;;  %v81_v27 = vld [vmem:[%s9366_s0 + $0x1d0] sm:$0xff] }
  0x5b   :  { %1077 = vmatprep.mubr.f32.mxu0 %v5430_v3  ;;  %4797 = vmatmul.mubr.msk.f32.gmra.mrb[32].mxu1 %vm258_vm2, %v39_v28 }
  0x5c   :  { %4799 = vmatprep.mubr.msk.f32.mxu1 %vm5431_vm0, %v5430_v3 }
  0x5e   :  { %4109 = vmatmul.mubr.msk.f32.gmra.mrb[32].mxu0 %vm258_vm2, %v39_v28 }
  0x5f   :  { %1083 = vmatprep.mubr.f32.mxu0 %v5430_v3  ;;  %4800 = vmatmul.mubr.msk.f32.gmra.mrb[34].mxu1 %vm258_vm2, %v40_v29 }
  0x60   :  { %4802 = vmatprep.mubr.msk.f32.mxu1 %vm5431_vm0, %v5430_v3 }
  0x62   :  { %4110 = vmatmul.mubr.msk.f32.gmra.mrb[34].mxu0 %vm258_vm2, %v40_v29 }
  0x63   :  { %1089 = vmatprep.mubr.f32.mxu0 %v5430_v3  ;;  %4803 = vmatmul.mubr.msk.f32.gmra.mrb[36].mxu1 %vm258_vm2, %v41_v30 }
  0x64   :  { %4805 = vmatprep.mubr.msk.f32.mxu1 %vm5431_vm0, %v5430_v3 }
  0x66   :  { %4111 = vmatmul.mubr.msk.f32.gmra.mrb[36].mxu0 %vm258_vm2, %v41_v30 }
  0x67   :  { %1095 = vmatprep.mubr.f32.mxu0 %v5430_v3  ;;  %4806 = vmatmul.mubr.msk.f32.gmra.mrb[38].mxu1 %vm258_vm2, %v42_v31 }
  0x68   :  { %4808 = vmatprep.mubr.msk.f32.mxu1 %vm5431_vm0, %v5430_v3 }
  0x6a   :  { %4112 = vmatmul.mubr.msk.f32.gmra.mrb[38].mxu0 %vm258_vm2, %v42_v31 }
  0x6b   :  { %1101 = vmatprep.mubr.f32.mxu0 %v5430_v3  ;;  %4809 = vmatmul.mubr.msk.f32.gmra.mrb[40].mxu1 %vm258_vm2, %v43_v32 }
  0x6c   :  { %4811 = vmatprep.mubr.msk.f32.mxu1 %vm5431_vm0, %v5430_v3 }
  0x6e   :  { %4113 = vmatmul.mubr.msk.f32.gmra.mrb[40].mxu0 %vm258_vm2, %v43_v32  ;;  %v82_v32 = vld [vmem:[%s9366_s0 + $0x1d8] sm:$0xff] }
  0x6f   :  { %1107 = vmatprep.mubr.f32.mxu0 %v5430_v3  ;;  %4812 = vmatmul.mubr.msk.f32.gmra.mrb[42].mxu1 %vm258_vm2, %v44_v33 }
  0x70   :  { %4814 = vmatprep.mubr.msk.f32.mxu1 %vm5431_vm0, %v5430_v3 }
  0x72   :  { %4114 = vmatmul.mubr.msk.f32.gmra.mrb[42].mxu0 %vm258_vm2, %v44_v33 }
  0x73   :  { %1113 = vmatprep.mubr.f32.mxu0 %v5430_v3  ;;  %4815 = vmatmul.mubr.msk.f32.gmra.mrb[44].mxu1 %vm258_vm2, %v45_v34 }
  0x74   :  { %4817 = vmatprep.mubr.msk.f32.mxu1 %vm5431_vm0, %v5430_v3 }
  0x76   :  { %4115 = vmatmul.mubr.msk.f32.gmra.mrb[44].mxu0 %vm258_vm2, %v45_v34 }
  0x77   :  { %1119 = vmatprep.mubr.f32.mxu0 %v5430_v3  ;;  %4818 = vmatmul.mubr.msk.f32.gmra.mrb[46].mxu1 %vm258_vm2, %v46_v35 }
  0x78   :  { %4820 = vmatprep.mubr.msk.f32.mxu1 %vm5431_vm0, %v5430_v3 }
  0x7a   :  { %4116 = vmatmul.mubr.msk.f32.gmra.mrb[46].mxu0 %vm258_vm2, %v46_v35 }
  0x7b   :  { %1125 = vmatprep.mubr.f32.mxu0 %v5430_v3  ;;  %4821 = vmatmul.mubr.msk.f32.gmra.mrb[48].mxu1 %vm258_vm2, %v47_v36 }
  0x7c   :  { %4823 = vmatprep.mubr.msk.f32.mxu1 %vm5431_vm0, %v5430_v3 }
  0x7e   :  { %4117 = vmatmul.mubr.msk.f32.gmra.mrb[48].mxu0 %vm258_vm2, %v47_v36 }
  0x7f   :  { %1131 = vmatprep.mubr.f32.mxu0 %v5430_v3  ;;  %4824 = vmatmul.mubr.msk.f32.gmra.mrb[50].mxu1 %vm258_vm2, %v48_v37 }
  0x80   :  { %4826 = vmatprep.mubr.msk.f32.mxu1 %vm5431_vm0, %v5430_v3 }
  0x82   :  { %4118 = vmatmul.mubr.msk.f32.gmra.mrb[50].mxu0 %vm258_vm2, %v48_v37  ;;  %v83_v37 = vld [vmem:[%s9366_s0 + $0x1e0] sm:$0xff] }
  0x83   :  { %1137 = vmatprep.mubr.f32.mxu0 %v5430_v3  ;;  %4827 = vmatmul.mubr.msk.f32.gmra.mrb[52].mxu1 %vm258_vm2, %v49_v38 }
  0x84   :  { %4829 = vmatprep.mubr.msk.f32.mxu1 %vm5431_vm0, %v5430_v3 }
  0x86   :  { %4119 = vmatmul.mubr.msk.f32.gmra.mrb[52].mxu0 %vm258_vm2, %v49_v38 }
  0x87   :  { %1143 = vmatprep.mubr.f32.mxu0 %v5430_v3  ;;  %4830 = vmatmul.mubr.msk.f32.gmra.mrb[54].mxu1 %vm258_vm2, %v50_v39 }
  0x88   :  { %4832 = vmatprep.mubr.msk.f32.mxu1 %vm5431_vm0, %v5430_v3 }
  0x8a   :  { %4120 = vmatmul.mubr.msk.f32.gmra.mrb[54].mxu0 %vm258_vm2, %v50_v39 }
  0x8b   :  { %1149 = vmatprep.mubr.f32.mxu0 %v5430_v3  ;;  %4833 = vmatmul.mubr.msk.f32.gmra.mrb[56].mxu1 %vm258_vm2, %v51_v40 }
  0x8c   :  { %4835 = vmatprep.mubr.msk.f32.mxu1 %vm5431_vm0, %v5430_v3 }
  0x8e   :  { %4121 = vmatmul.mubr.msk.f32.gmra.mrb[56].mxu0 %vm258_vm2, %v51_v40 }
  0x8f   :  { %1155 = vmatprep.mubr.f32.mxu0 %v5430_v3  ;;  %4836 = vmatmul.mubr.msk.f32.gmra.mrb[58].mxu1 %vm258_vm2, %v52_v41 }
  0x90   :  { %4838 = vmatprep.mubr.msk.f32.mxu1 %vm5431_vm0, %v5430_v3 }
  0x92   :  { %4122 = vmatmul.mubr.msk.f32.gmra.mrb[58].mxu0 %vm258_vm2, %v52_v41 }
  0x93   :  { %1161 = vmatprep.mubr.f32.mxu0 %v5430_v3  ;;  %4839 = vmatmul.mubr.msk.f32.gmra.mrb[60].mxu1 %vm258_vm2, %v53_v42 }
  0x94   :  { %4841 = vmatprep.mubr.msk.f32.mxu1 %vm5431_vm0, %v5430_v3 }
  0x96   :  { %4123 = vmatmul.mubr.msk.f32.gmra.mrb[60].mxu0 %vm258_vm2, %v53_v42  ;;  %v84_v42 = vld [vmem:[%s9366_s0 + $0x1e8] sm:$0xff] }
  0x97   :  { %1167 = vmatprep.mubr.f32.mxu0 %v5430_v3  ;;  %4842 = vmatmul.mubr.msk.f32.gmra.mrb[62].mxu1 %vm258_vm2, %v54_v43 }
  0x98   :  { %4844 = vmatprep.mubr.msk.f32.mxu1 %vm5431_vm0, %v5430_v3 }
  0x9a   :  { %4124 = vmatmul.mubr.msk.f32.gmra.mrb[62].mxu0 %vm258_vm2, %v54_v43 }
  0x9b   :  { %1173 = vmatprep.mubr.f32.mxu0 %v5430_v3  ;;  %4845 = vmatmul.mubr.msk.f32.gmra.mrb[64].mxu1 %vm258_vm2, %v55_v44 }
  0x9c   :  { %4847 = vmatprep.mubr.msk.f32.mxu1 %vm5431_vm0, %v5430_v3 }
  0x9e   :  { %4125 = vmatmul.mubr.msk.f32.gmra.mrb[64].mxu0 %vm258_vm2, %v55_v44 }
  0x9f   :  { %1179 = vmatprep.mubr.f32.mxu0 %v5430_v3  ;;  %4848 = vmatmul.mubr.msk.f32.gmra.mrb[66].mxu1 %vm258_vm2, %v56_v45 }
  0xa0   :  { %4850 = vmatprep.mubr.msk.f32.mxu1 %vm5431_vm0, %v5430_v3 }
  0xa2   :  { %4126 = vmatmul.mubr.msk.f32.gmra.mrb[66].mxu0 %vm258_vm2, %v56_v45 }
  0xa3   :  { %1185 = vmatprep.mubr.f32.mxu0 %v5430_v3  ;;  %4851 = vmatmul.mubr.msk.f32.gmra.mrb[68].mxu1 %vm258_vm2, %v57_v46 }
  0xa4   :  { %4853 = vmatprep.mubr.msk.f32.mxu1 %vm5431_vm0, %v5430_v3 }
  0xa6   :  { %4127 = vmatmul.mubr.msk.f32.gmra.mrb[68].mxu0 %vm258_vm2, %v57_v46 }
  0xa7   :  { %1191 = vmatprep.mubr.f32.mxu0 %v5430_v3  ;;  %4854 = vmatmul.mubr.msk.f32.gmra.mrb[70].mxu1 %vm258_vm2, %v58_v47 }
  0xa8   :  { %4856 = vmatprep.mubr.msk.f32.mxu1 %vm5431_vm0, %v5430_v3 }
  0xaa   :  { %4128 = vmatmul.mubr.msk.f32.gmra.mrb[70].mxu0 %vm258_vm2, %v58_v47  ;;  %v85_v47 = vld [vmem:[%s9366_s0 + $0x1f0] sm:$0xff] }
  0xab   :  { %1197 = vmatprep.mubr.f32.mxu0 %v5430_v3  ;;  %4857 = vmatmul.mubr.msk.f32.gmra.mrb[72].mxu1 %vm258_vm2, %v59_v48 }
  0xac   :  { %4859 = vmatprep.mubr.msk.f32.mxu1 %vm5431_vm0, %v5430_v3 }
  0xae   :  { %4129 = vmatmul.mubr.msk.f32.gmra.mrb[72].mxu0 %vm258_vm2, %v59_v48 }
  0xaf   :  { %1203 = vmatprep.mubr.f32.mxu0 %v5430_v3  ;;  %4860 = vmatmul.mubr.msk.f32.gmra.mrb[74].mxu1 %vm258_vm2, %v60_v49 }
  0xb0   :  { %4862 = vmatprep.mubr.msk.f32.mxu1 %vm5431_vm0, %v5430_v3 }
  0xb2   :  { %4130 = vmatmul.mubr.msk.f32.gmra.mrb[74].mxu0 %vm258_vm2, %v60_v49 }
  0xb3   :  { %1209 = vmatprep.mubr.f32.mxu0 %v5430_v3  ;;  %4863 = vmatmul.mubr.msk.f32.gmra.mrb[76].mxu1 %vm258_vm2, %v61_v50 }
  0xb4   :  { %4865 = vmatprep.mubr.msk.f32.mxu1 %vm5431_vm0, %v5430_v3 }
  0xb6   :  { %4131 = vmatmul.mubr.msk.f32.gmra.mrb[76].mxu0 %vm258_vm2, %v61_v50 }
  0xb7   :  { %1215 = vmatprep.mubr.f32.mxu0 %v5430_v3  ;;  %4866 = vmatmul.mubr.msk.f32.gmra.mrb[78].mxu1 %vm258_vm2, %v62_v51 }
  0xb8   :  { %4868 = vmatprep.mubr.msk.f32.mxu1 %vm5431_vm0, %v5430_v3 }
  0xba   :  { %4132 = vmatmul.mubr.msk.f32.gmra.mrb[78].mxu0 %vm258_vm2, %v62_v51 }
  0xbb   :  { %1221 = vmatprep.mubr.f32.mxu0 %v5430_v3  ;;  %4869 = vmatmul.mubr.msk.f32.gmra.mrb[80].mxu1 %vm258_vm2, %v63_v52 }
  0xbc   :  { %4871 = vmatprep.mubr.msk.f32.mxu1 %vm5431_vm0, %v5430_v3 }
  0xbe   :  { %4133 = vmatmul.mubr.msk.f32.gmra.mrb[80].mxu0 %vm258_vm2, %v63_v52  ;;  %v86_v52 = vld [vmem:[%s9366_s0 + $0x1f8] sm:$0xff] }
  0xbf   :  { %1227 = vmatprep.mubr.f32.mxu0 %v5430_v3  ;;  %4872 = vmatmul.mubr.msk.f32.gmra.mrb[82].mxu1 %vm258_vm2, %v64_v53 }
  0xc0   :  { %4874 = vmatprep.mubr.msk.f32.mxu1 %vm5431_vm0, %v5430_v3 }
  0xc2   :  { %4134 = vmatmul.mubr.msk.f32.gmra.mrb[82].mxu0 %vm258_vm2, %v64_v53 }
  0xc3   :  { %1233 = vmatprep.mubr.f32.mxu0 %v5430_v3  ;;  %4875 = vmatmul.mubr.msk.f32.gmra.mrb[84].mxu1 %vm258_vm2, %v65_v54 }
  0xc4   :  { %4877 = vmatprep.mubr.msk.f32.mxu1 %vm5431_vm0, %v5430_v3 }
  0xc6   :  { %4135 = vmatmul.mubr.msk.f32.gmra.mrb[84].mxu0 %vm258_vm2, %v65_v54 }
  0xc7   :  { %1239 = vmatprep.mubr.f32.mxu0 %v5430_v3  ;;  %4878 = vmatmul.mubr.msk.f32.gmra.mrb[86].mxu1 %vm258_vm2, %v66_v55 }
  0xc8   :  { %4880 = vmatprep.mubr.msk.f32.mxu1 %vm5431_vm0, %v5430_v3 }
  0xca   :  { %4136 = vmatmul.mubr.msk.f32.gmra.mrb[86].mxu0 %vm258_vm2, %v66_v55 }
  0xcb   :  { %1245 = vmatprep.mubr.f32.mxu0 %v5430_v3  ;;  %4881 = vmatmul.mubr.msk.f32.gmra.mrb[88].mxu1 %vm258_vm2, %v67_v56 }
  0xcc   :  { %4883 = vmatprep.mubr.msk.f32.mxu1 %vm5431_vm0, %v5430_v3 }
  0xce   :  { %4137 = vmatmul.mubr.msk.f32.gmra.mrb[88].mxu0 %vm258_vm2, %v67_v56 }
  0xcf   :  { %1251 = vmatprep.mubr.f32.mxu0 %v5430_v3  ;;  %4884 = vmatmul.mubr.msk.f32.gmra.mrb[90].mxu1 %vm258_vm2, %v68_v57 }
  0xd0   :  { %4886 = vmatprep.mubr.msk.f32.mxu1 %vm5431_vm0, %v5430_v3 }
  0xd2   :  { %4138 = vmatmul.mubr.msk.f32.gmra.mrb[90].mxu0 %vm258_vm2, %v68_v57  ;;  %v87_v57 = vld [vmem:[%s9366_s0 + $0x200] sm:$0xff] }
  0xd3   :  { %1257 = vmatprep.mubr.f32.mxu0 %v5430_v3  ;;  %4887 = vmatmul.mubr.msk.f32.gmra.mrb[92].mxu1 %vm258_vm2, %v69_v58 }
  0xd4   :  { %4889 = vmatprep.mubr.msk.f32.mxu1 %vm5431_vm0, %v5430_v3 }
  0xd6   :  { %4139 = vmatmul.mubr.msk.f32.gmra.mrb[92].mxu0 %vm258_vm2, %v69_v58 }
  0xd7   :  { %1263 = vmatprep.mubr.f32.mxu0 %v5430_v3  ;;  %4890 = vmatmul.mubr.msk.f32.gmra.mrb[94].mxu1 %vm258_vm2, %v70_v59 }
  0xd8   :  { %4892 = vmatprep.mubr.msk.f32.mxu1 %vm5431_vm0, %v5430_v3 }
  0xda   :  { %4140 = vmatmul.mubr.msk.f32.gmra.mrb[94].mxu0 %vm258_vm2, %v70_v59 }
  0xdb   :  { %1269 = vmatprep.mubr.f32.mxu0 %v5430_v3  ;;  %4893 = vmatmul.mubr.msk.f32.gmra.mrb[96].mxu1 %vm258_vm2, %v71_v60 }
  0xdc   :  { %4895 = vmatprep.mubr.msk.f32.mxu1 %vm5431_vm0, %v5430_v3 }
  0xde   :  { %4141 = vmatmul.mubr.msk.f32.gmra.mrb[96].mxu0 %vm258_vm2, %v71_v60 }
  0xdf   :  { %1275 = vmatprep.mubr.f32.mxu0 %v5430_v3  ;;  %4896 = vmatmul.mubr.msk.f32.gmra.mrb[98].mxu1 %vm258_vm2, %v72_v61 }
  0xe0   :  { %4898 = vmatprep.mubr.msk.f32.mxu1 %vm5431_vm0, %v5430_v3 }
  0xe2   :  { %4142 = vmatmul.mubr.msk.f32.gmra.mrb[98].mxu0 %vm258_vm2, %v72_v61 }
  0xe3   :  { %1281 = vmatprep.mubr.f32.mxu0 %v5430_v3  ;;  %4899 = vmatmul.mubr.msk.f32.gmra.mrb[100].mxu1 %vm258_vm2, %v73_v62 }
  0xe4   :  { %4901 = vmatprep.mubr.msk.f32.mxu1 %vm5431_vm0, %v5430_v3 }
  0xe6   :  { %4143 = vmatmul.mubr.msk.f32.gmra.mrb[100].mxu0 %vm258_vm2, %v73_v62  ;;  %v88_v62 = vld [vmem:[%s9366_s0 + $0x208] sm:$0xff] }
  0xe7   :  { %1287 = vmatprep.mubr.f32.mxu0 %v5430_v3  ;;  %4902 = vmatmul.mubr.msk.f32.gmra.mrb[102].mxu1 %vm258_vm2, %v74_v63 }
  0xe8   :  { %4904 = vmatprep.mubr.msk.f32.mxu1 %vm5431_vm0, %v5430_v3 }
  0xea   :  { %4144 = vmatmul.mubr.msk.f32.gmra.mrb[102].mxu0 %vm258_vm2, %v74_v63 }
  0xeb   :  { %1293 = vmatprep.mubr.f32.mxu0 %v5430_v3  ;;  %4905 = vmatmul.mubr.msk.f32.gmra.mrb[104].mxu1 %vm258_vm2, %v75_v0 }
  0xec   :  { %4907 = vmatprep.mubr.msk.f32.mxu1 %vm5431_vm0, %v5430_v3 }
  0xee   :  { %4145 = vmatmul.mubr.msk.f32.gmra.mrb[104].mxu0 %vm258_vm2, %v75_v0  ;;  %v2350_v2 = vpop.f32.mrb[0].mxu1 }
  0xef   :  { %1299 = vmatprep.mubr.f32.mxu0 %v5430_v3  ;;  %3437 = vst.msk [vmem:[%s9368_s2 + $0x10] sm:$0xff] %vm3436_vm3, %v2350_v2  ;;  %v4750_v5 = vpop.f32.mrb[1].mxu1  ;;  %4908 = vmatmul.mubr.msk.f32.gmra.mrb[106].mxu1 %vm258_vm2, %v76_v1 }
  0xf0   :  { %4910 = vmatprep.mubr.msk.f32.mxu1 %vm5431_vm0, %v5430_v3 }
  0xf1   :  { %v983_v4 = vpop.f32.mrb[0].mxu0 }
  0xf2   :  { %3434 = vst [vmem:[%s9368_s2] sm:$0xff] %v983_v4  ;;  %v985_v6 = vpop.f32.mrb[1].mxu0  ;;  %4146 = vmatmul.mubr.msk.f32.gmra.mrb[106].mxu0 %vm258_vm2, %v76_v1  ;;  %v2355_v8 = vpop.f32.mrb[2].mxu1  ;;  %v89_v4 = vld [vmem:[%s9366_s0 + $0x210] sm:$0xff] }
  0xf3   :  { %3435 = vst [vmem:[%s9368_s2 + $0x8] sm:$0xff] %v985_v6  ;;  %1305 = vmatprep.mubr.f32.mxu0 %v5430_v3  ;;  %3440 = vst.msk [vmem:[%s9368_s2 + $0x28] sm:$0xff] %vm3436_vm3, %v2355_v8  ;;  %v4753_v10 = vpop.f32.mrb[3].mxu1  ;;  %4911 = vmatmul.mubr.msk.f32.gmra.mrb[108].mxu1 %vm258_vm2, %v77_v7 }
  0xf4   :  { %4913 = vmatprep.mubr.msk.f32.mxu1 %vm5431_vm0, %v5430_v3 }
  0xf5   :  { %v989_v9 = vpop.f32.mrb[2].mxu0 }
  0xf6   :  { %3438 = vst [vmem:[%s9368_s2 + $0x18] sm:$0xff] %v989_v9  ;;  %v991_v11 = vpop.f32.mrb[3].mxu0  ;;  %4147 = vmatmul.mubr.msk.f32.gmra.mrb[108].mxu0 %vm258_vm2, %v77_v7  ;;  %v2360_v13 = vpop.f32.mrb[4].mxu1  ;;  %v90_v9 = vld [vmem:[%s9366_s0 + $0x218] sm:$0xff] }
  0xf7   :  { %3439 = vst [vmem:[%s9368_s2 + $0x20] sm:$0xff] %v991_v11  ;;  %1311 = vmatprep.mubr.f32.mxu0 %v5430_v3  ;;  %3443 = vst.msk [vmem:[%s9368_s2 + $0x40] sm:$0xff] %vm3436_vm3, %v2360_v13  ;;  %v4756_v15 = vpop.f32.mrb[5].mxu1  ;;  %4914 = vmatmul.mubr.msk.f32.gmra.mrb[110].mxu1 %vm258_vm2, %v78_v12 }
  0xf8   :  { %4916 = vmatprep.mubr.msk.f32.mxu1 %vm5431_vm0, %v5430_v3 }
  0xf9   :  { %v995_v14 = vpop.f32.mrb[4].mxu0 }
  0xfa   :  { %3441 = vst [vmem:[%s9368_s2 + $0x30] sm:$0xff] %v995_v14  ;;  %v997_v16 = vpop.f32.mrb[5].mxu0  ;;  %4148 = vmatmul.mubr.msk.f32.gmra.mrb[110].mxu0 %vm258_vm2, %v78_v12  ;;  %v2365_v18 = vpop.f32.mrb[6].mxu1  ;;  %v91_v14 = vld [vmem:[%s9366_s0 + $0x220] sm:$0xff] }
  0xfb   :  { %3442 = vst [vmem:[%s9368_s2 + $0x38] sm:$0xff] %v997_v16  ;;  %1317 = vmatprep.mubr.f32.mxu0 %v5430_v3  ;;  %3446 = vst.msk [vmem:[%s9368_s2 + $0x58] sm:$0xff] %vm3436_vm3, %v2365_v18  ;;  %v4759_v20 = vpop.f32.mrb[7].mxu1  ;;  %4917 = vmatmul.mubr.msk.f32.gmra.mrb[112].mxu1 %vm258_vm2, %v79_v17 }
  0xfc   :  { %4919 = vmatprep.mubr.msk.f32.mxu1 %vm5431_vm0, %v5430_v3 }
  0xfd   :  { %v1001_v19 = vpop.f32.mrb[6].mxu0 }
  0xfe   :  { %3444 = vst [vmem:[%s9368_s2 + $0x48] sm:$0xff] %v1001_v19  ;;  %v1003_v21 = vpop.f32.mrb[7].mxu0  ;;  %4149 = vmatmul.mubr.msk.f32.gmra.mrb[112].mxu0 %vm258_vm2, %v79_v17  ;;  %v2370_v23 = vpop.f32.mrb[8].mxu1  ;;  %v92_v19 = vld [vmem:[%s9366_s0 + $0x228] sm:$0xff] }
  0xff   :  { %3445 = vst [vmem:[%s9368_s2 + $0x50] sm:$0xff] %v1003_v21  ;;  %1323 = vmatprep.mubr.f32.mxu0 %v5430_v3  ;;  %3449 = vst.msk [vmem:[%s9368_s2 + $0x70] sm:$0xff] %vm3436_vm3, %v2370_v23  ;;  %v4762_v25 = vpop.f32.mrb[9].mxu1  ;;  %4920 = vmatmul.mubr.msk.f32.gmra.mrb[114].mxu1 %vm258_vm2, %v80_v22 }
 0x100   :  { %4922 = vmatprep.mubr.msk.f32.mxu1 %vm5431_vm0, %v5430_v3 }
 0x101   :  { %v1007_v24 = vpop.f32.mrb[8].mxu0 }
 0x102   :  { %3447 = vst [vmem:[%s9368_s2 + $0x60] sm:$0xff] %v1007_v24  ;;  %v1009_v26 = vpop.f32.mrb[9].mxu0  ;;  %4150 = vmatmul.mubr.msk.f32.gmra.mrb[114].mxu0 %vm258_vm2, %v80_v22  ;;  %v2375_v28 = vpop.f32.mrb[10].mxu1  ;;  %v93_v24 = vld [vmem:[%s9366_s0 + $0x230] sm:$0xff] }
 0x103   :  { %3448 = vst [vmem:[%s9368_s2 + $0x68] sm:$0xff] %v1009_v26  ;;  %1329 = vmatprep.mubr.f32.mxu0 %v5430_v3  ;;  %3452 = vst.msk [vmem:[%s9368_s2 + $0x88] sm:$0xff] %vm3436_vm3, %v2375_v28  ;;  %v4765_v30 = vpop.f32.mrb[11].mxu1  ;;  %4923 = vmatmul.mubr.msk.f32.gmra.mrb[116].mxu1 %vm258_vm2, %v81_v27 }
 0x104   :  { %4925 = vmatprep.mubr.msk.f32.mxu1 %vm5431_vm0, %v5430_v3 }
 0x105   :  { %v1013_v29 = vpop.f32.mrb[10].mxu0 }
 0x106   :  { %3450 = vst [vmem:[%s9368_s2 + $0x78] sm:$0xff] %v1013_v29  ;;  %v1015_v31 = vpop.f32.mrb[11].mxu0  ;;  %4151 = vmatmul.mubr.msk.f32.gmra.mrb[116].mxu0 %vm258_vm2, %v81_v27  ;;  %v2380_v33 = vpop.f32.mrb[12].mxu1  ;;  %v94_v29 = vld [vmem:[%s9366_s0 + $0x238] sm:$0xff] }
 0x107   :  { %3451 = vst [vmem:[%s9368_s2 + $0x80] sm:$0xff] %v1015_v31  ;;  %1335 = vmatprep.mubr.f32.mxu0 %v5430_v3  ;;  %3455 = vst.msk [vmem:[%s9368_s2 + $0xa0] sm:$0xff] %vm3436_vm3, %v2380_v33  ;;  %v4768_v35 = vpop.f32.mrb[13].mxu1  ;;  %4926 = vmatmul.mubr.msk.f32.gmra.mrb[118].mxu1 %vm258_vm2, %v82_v32 }
 0x108   :  { %4928 = vmatprep.mubr.msk.f32.mxu1 %vm5431_vm0, %v5430_v3 }
 0x109   :  { %v1019_v34 = vpop.f32.mrb[12].mxu0 }
 0x10a   :  { %3453 = vst [vmem:[%s9368_s2 + $0x90] sm:$0xff] %v1019_v34  ;;  %v1021_v36 = vpop.f32.mrb[13].mxu0  ;;  %4152 = vmatmul.mubr.msk.f32.gmra.mrb[118].mxu0 %vm258_vm2, %v82_v32  ;;  %v2385_v38 = vpop.f32.mrb[14].mxu1  ;;  %v95_v34 = vld [vmem:[%s9366_s0 + $0x240] sm:$0xff] }
 0x10b   :  { %3454 = vst [vmem:[%s9368_s2 + $0x98] sm:$0xff] %v1021_v36  ;;  %1341 = vmatprep.mubr.f32.mxu0 %v5430_v3  ;;  %3458 = vst.msk [vmem:[%s9368_s2 + $0xb8] sm:$0xff] %vm3436_vm3, %v2385_v38  ;;  %v4771_v40 = vpop.f32.mrb[15].mxu1  ;;  %4929 = vmatmul.mubr.msk.f32.gmra.mrb[120].mxu1 %vm258_vm2, %v83_v37 }
 0x10c   :  { %4931 = vmatprep.mubr.msk.f32.mxu1 %vm5431_vm0, %v5430_v3 }
 0x10d   :  { %v1025_v39 = vpop.f32.mrb[14].mxu0 }
 0x10e   :  { %3456 = vst [vmem:[%s9368_s2 + $0xa8] sm:$0xff] %v1025_v39  ;;  %v1027_v41 = vpop.f32.mrb[15].mxu0  ;;  %4153 = vmatmul.mubr.msk.f32.gmra.mrb[120].mxu0 %vm258_vm2, %v83_v37  ;;  %v2390_v43 = vpop.f32.mrb[16].mxu1  ;;  %v96_v39 = vld [vmem:[%s9366_s0 + $0x248] sm:$0xff] }
 0x10f   :  { %3457 = vst [vmem:[%s9368_s2 + $0xb0] sm:$0xff] %v1027_v41  ;;  %1347 = vmatprep.mubr.f32.mxu0 %v5430_v3  ;;  %3461 = vst.msk [vmem:[%s9368_s2 + $0xd0] sm:$0xff] %vm3436_vm3, %v2390_v43  ;;  %v4774_v45 = vpop.f32.mrb[17].mxu1  ;;  %4932 = vmatmul.mubr.msk.f32.gmra.mrb[122].mxu1 %vm258_vm2, %v84_v42 }
 0x110   :  { %4934 = vmatprep.mubr.msk.f32.mxu1 %vm5431_vm0, %v5430_v3 }
 0x111   :  { %v1031_v44 = vpop.f32.mrb[16].mxu0 }
 0x112   :  { %3459 = vst [vmem:[%s9368_s2 + $0xc0] sm:$0xff] %v1031_v44  ;;  %v1033_v46 = vpop.f32.mrb[17].mxu0  ;;  %4154 = vmatmul.mubr.msk.f32.gmra.mrb[122].mxu0 %vm258_vm2, %v84_v42  ;;  %v2395_v48 = vpop.f32.mrb[18].mxu1  ;;  %v97_v44 = vld [vmem:[%s9366_s0 + $0x250] sm:$0xff] }
 0x113   :  { %3460 = vst [vmem:[%s9368_s2 + $0xc8] sm:$0xff] %v1033_v46  ;;  %1353 = vmatprep.mubr.f32.mxu0 %v5430_v3  ;;  %3464 = vst.msk [vmem:[%s9368_s2 + $0xe8] sm:$0xff] %vm3436_vm3, %v2395_v48  ;;  %v4777_v50 = vpop.f32.mrb[19].mxu1  ;;  %4935 = vmatmul.mubr.msk.f32.gmra.mrb[124].mxu1 %vm258_vm2, %v85_v47 }
 0x114   :  { %4937 = vmatprep.mubr.msk.f32.mxu1 %vm5431_vm0, %v5430_v3 }
 0x115   :  { %v1037_v49 = vpop.f32.mrb[18].mxu0 }
 0x116   :  { %3462 = vst [vmem:[%s9368_s2 + $0xd8] sm:$0xff] %v1037_v49  ;;  %v1039_v51 = vpop.f32.mrb[19].mxu0  ;;  %4155 = vmatmul.mubr.msk.f32.gmra.mrb[124].mxu0 %vm258_vm2, %v85_v47  ;;  %v2400_v53 = vpop.f32.mrb[20].mxu1  ;;  %v98_v49 = vld [vmem:[%s9366_s0 + $0x258] sm:$0xff] }
 0x117   :  { %3463 = vst [vmem:[%s9368_s2 + $0xe0] sm:$0xff] %v1039_v51  ;;  %1359 = vmatprep.mubr.f32.mxu0 %v5430_v3  ;;  %3467 = vst.msk [vmem:[%s9368_s2 + $0x100] sm:$0xff] %vm3436_vm3, %v2400_v53  ;;  %v4780_v55 = vpop.f32.mrb[21].mxu1  ;;  %4938 = vmatmul.mubr.msk.f32.gmra.mrb[126].mxu1 %vm258_vm2, %v86_v52 }
 0x118   :  { %4940 = vmatprep.mubr.msk.f32.mxu1 %vm5431_vm0, %v5430_v3 }
 0x119   :  { %v1043_v54 = vpop.f32.mrb[20].mxu0 }
 0x11a   :  { %3465 = vst [vmem:[%s9368_s2 + $0xf0] sm:$0xff] %v1043_v54  ;;  %v1045_v56 = vpop.f32.mrb[21].mxu0  ;;  %4156 = vmatmul.mubr.msk.f32.gmra.mrb[126].mxu0 %vm258_vm2, %v86_v52  ;;  %v2405_v58 = vpop.f32.mrb[22].mxu1  ;;  %v99_v54 = vld [vmem:[%s9366_s0 + $0x260] sm:$0xff] }
 0x11b   :  { %3466 = vst [vmem:[%s9368_s2 + $0xf8] sm:$0xff] %v1045_v56  ;;  %1365 = vmatprep.mubr.f32.mxu0 %v5430_v3  ;;  %3470 = vst.msk [vmem:[%s9368_s2 + $0x118] sm:$0xff] %vm3436_vm3, %v2405_v58  ;;  %v4783_v60 = vpop.f32.mrb[23].mxu1  ;;  %4941 = vmatmul.mubr.msk.f32.gmra.mrb[128].mxu1 %vm258_vm2, %v87_v57 }
 0x11c   :  { %4943 = vmatprep.mubr.msk.f32.mxu1 %vm5431_vm0, %v5430_v3 }
 0x11d   :  { %v1049_v59 = vpop.f32.mrb[22].mxu0 }
 0x11e   :  { %3468 = vst [vmem:[%s9368_s2 + $0x108] sm:$0xff] %v1049_v59  ;;  %v1051_v61 = vpop.f32.mrb[23].mxu0  ;;  %4157 = vmatmul.mubr.msk.f32.gmra.mrb[128].mxu0 %vm258_vm2, %v87_v57  ;;  %v2410_v63 = vpop.f32.mrb[24].mxu1  ;;  %v100_v59 = vld [vmem:[%s9366_s0 + $0x268] sm:$0xff] }
 0x11f   :  { %3469 = vst [vmem:[%s9368_s2 + $0x110] sm:$0xff] %v1051_v61  ;;  %1371 = vmatprep.mubr.f32.mxu0 %v5430_v3  ;;  %3473 = vst.msk [vmem:[%s9368_s2 + $0x130] sm:$0xff] %vm3436_vm3, %v2410_v63  ;;  %v4786_v1 = vpop.f32.mrb[25].mxu1  ;;  %4944 = vmatmul.mubr.msk.f32.gmra.mrb[130].mxu1 %vm258_vm2, %v88_v62 }
 0x120   :  { %4946 = vmatprep.mubr.msk.f32.mxu1 %vm5431_vm0, %v5430_v3 }
 0x121   :  { %v1055_v0 = vpop.f32.mrb[24].mxu0 }
 0x122   :  { %3471 = vst [vmem:[%s9368_s2 + $0x120] sm:$0xff] %v1055_v0  ;;  %v1057_v2 = vpop.f32.mrb[25].mxu0  ;;  %4158 = vmatmul.mubr.msk.f32.gmra.mrb[130].mxu0 %vm258_vm2, %v88_v62  ;;  %v2415_v5 = vpop.f32.mrb[26].mxu1  ;;  %v101_v0 = vld [vmem:[%s9366_s0 + $0x270] sm:$0xff] }
 0x123   :  { %3472 = vst [vmem:[%s9368_s2 + $0x128] sm:$0xff] %v1057_v2  ;;  %1377 = vmatprep.mubr.f32.mxu0 %v5430_v3  ;;  %3476 = vst.msk [vmem:[%s9368_s2 + $0x148] sm:$0xff] %vm3436_vm3, %v2415_v5  ;;  %v4789_v7 = vpop.f32.mrb[27].mxu1  ;;  %4947 = vmatmul.mubr.msk.f32.gmra.mrb[132].mxu1 %vm258_vm2, %v89_v4 }
 0x124   :  { %4949 = vmatprep.mubr.msk.f32.mxu1 %vm5431_vm0, %v5430_v3 }
 0x125   :  { %v1061_v6 = vpop.f32.mrb[26].mxu0 }
 0x126   :  { %3474 = vst [vmem:[%s9368_s2 + $0x138] sm:$0xff] %v1061_v6  ;;  %v1063_v8 = vpop.f32.mrb[27].mxu0  ;;  %4159 = vmatmul.mubr.msk.f32.gmra.mrb[132].mxu0 %vm258_vm2, %v89_v4  ;;  %v2420_v10 = vpop.f32.mrb[28].mxu1  ;;  %v102_v6 = vld [vmem:[%s9366_s0 + $0x278] sm:$0xff] }
 0x127   :  { %3475 = vst [vmem:[%s9368_s2 + $0x140] sm:$0xff] %v1063_v8  ;;  %1383 = vmatprep.mubr.f32.mxu0 %v5430_v3  ;;  %3479 = vst.msk [vmem:[%s9368_s2 + $0x160] sm:$0xff] %vm3436_vm3, %v2420_v10  ;;  %v4792_v12 = vpop.f32.mrb[29].mxu1  ;;  %4950 = vmatmul.mubr.msk.f32.gmra.mrb[134].mxu1 %vm258_vm2, %v90_v9 }
 0x128   :  { %4952 = vmatprep.mubr.msk.f32.mxu1 %vm5431_vm0, %v5430_v3 }
 0x129   :  { %v1067_v11 = vpop.f32.mrb[28].mxu0 }
 0x12a   :  { %3477 = vst [vmem:[%s9368_s2 + $0x150] sm:$0xff] %v1067_v11  ;;  %v1069_v13 = vpop.f32.mrb[29].mxu0  ;;  %4160 = vmatmul.mubr.msk.f32.gmra.mrb[134].mxu0 %vm258_vm2, %v90_v9  ;;  %v2425_v15 = vpop.f32.mrb[30].mxu1  ;;  %v103_v11 = vld [vmem:[%s9366_s0 + $0x280] sm:$0xff] }
 0x12b   :  { %3478 = vst [vmem:[%s9368_s2 + $0x158] sm:$0xff] %v1069_v13  ;;  %1389 = vmatprep.mubr.f32.mxu0 %v5430_v3  ;;  %3482 = vst.msk [vmem:[%s9368_s2 + $0x178] sm:$0xff] %vm3436_vm3, %v2425_v15  ;;  %v4795_v17 = vpop.f32.mrb[31].mxu1  ;;  %4953 = vmatmul.mubr.msk.f32.gmra.mrb[136].mxu1 %vm258_vm2, %v91_v14 }
 0x12c   :  { %4955 = vmatprep.mubr.msk.f32.mxu1 %vm5431_vm0, %v5430_v3 }
 0x12d   :  { %v1073_v16 = vpop.f32.mrb[30].mxu0 }
 0x12e   :  { %3480 = vst [vmem:[%s9368_s2 + $0x168] sm:$0xff] %v1073_v16  ;;  %v1075_v18 = vpop.f32.mrb[31].mxu0  ;;  %4161 = vmatmul.mubr.msk.f32.gmra.mrb[136].mxu0 %vm258_vm2, %v91_v14  ;;  %v2430_v20 = vpop.f32.mrb[32].mxu1  ;;  %v104_v16 = vld [vmem:[%s9366_s0 + $0x288] sm:$0xff] }
 0x12f   :  { %3481 = vst [vmem:[%s9368_s2 + $0x170] sm:$0xff] %v1075_v18  ;;  %1395 = vmatprep.mubr.f32.mxu0 %v5430_v3  ;;  %3485 = vst.msk [vmem:[%s9368_s2 + $0x190] sm:$0xff] %vm3436_vm3, %v2430_v20  ;;  %v4798_v22 = vpop.f32.mrb[33].mxu1  ;;  %4956 = vmatmul.mubr.msk.f32.gmra.mrb[138].mxu1 %vm258_vm2, %v92_v19 }
 0x130   :  { %4958 = vmatprep.mubr.msk.f32.mxu1 %vm5431_vm0, %v5430_v3 }
 0x131   :  { %v1079_v21 = vpop.f32.mrb[32].mxu0 }
 0x132   :  { %3483 = vst [vmem:[%s9368_s2 + $0x180] sm:$0xff] %v1079_v21  ;;  %v1081_v23 = vpop.f32.mrb[33].mxu0  ;;  %4162 = vmatmul.mubr.msk.f32.gmra.mrb[138].mxu0 %vm258_vm2, %v92_v19  ;;  %v2435_v25 = vpop.f32.mrb[34].mxu1  ;;  %v105_v21 = vld [vmem:[%s9366_s0 + $0x290] sm:$0xff] }
 0x133   :  { %3484 = vst [vmem:[%s9368_s2 + $0x188] sm:$0xff] %v1081_v23  ;;  %1401 = vmatprep.mubr.f32.mxu0 %v5430_v3  ;;  %3488 = vst.msk [vmem:[%s9368_s2 + $0x1a8] sm:$0xff] %vm3436_vm3, %v2435_v25  ;;  %v4801_v27 = vpop.f32.mrb[35].mxu1  ;;  %4959 = vmatmul.mubr.msk.f32.gmra.mrb[140].mxu1 %vm258_vm2, %v93_v24 }
 0x134   :  { %4961 = vmatprep.mubr.msk.f32.mxu1 %vm5431_vm0, %v5430_v3 }
 0x135   :  { %v1085_v26 = vpop.f32.mrb[34].mxu0 }
 0x136   :  { %3486 = vst [vmem:[%s9368_s2 + $0x198] sm:$0xff] %v1085_v26  ;;  %v1087_v28 = vpop.f32.mrb[35].mxu0  ;;  %4163 = vmatmul.mubr.msk.f32.gmra.mrb[140].mxu0 %vm258_vm2, %v93_v24  ;;  %v2440_v30 = vpop.f32.mrb[36].mxu1  ;;  %v106_v26 = vld [vmem:[%s9366_s0 + $0x298] sm:$0xff] }
 0x137   :  { %3487 = vst [vmem:[%s9368_s2 + $0x1a0] sm:$0xff] %v1087_v28  ;;  %1407 = vmatprep.mubr.f32.mxu0 %v5430_v3  ;;  %3491 = vst.msk [vmem:[%s9368_s2 + $0x1c0] sm:$0xff] %vm3436_vm3, %v2440_v30  ;;  %v4804_v32 = vpop.f32.mrb[37].mxu1  ;;  %4962 = vmatmul.mubr.msk.f32.gmra.mrb[142].mxu1 %vm258_vm2, %v94_v29 }
 0x138   :  { %4964 = vmatprep.mubr.msk.f32.mxu1 %vm5431_vm0, %v5430_v3 }
 0x139   :  { %v1091_v31 = vpop.f32.mrb[36].mxu0 }
 0x13a   :  { %3489 = vst [vmem:[%s9368_s2 + $0x1b0] sm:$0xff] %v1091_v31  ;;  %v1093_v33 = vpop.f32.mrb[37].mxu0  ;;  %4164 = vmatmul.mubr.msk.f32.gmra.mrb[142].mxu0 %vm258_vm2, %v94_v29  ;;  %v2445_v35 = vpop.f32.mrb[38].mxu1  ;;  %v107_v31 = vld [vmem:[%s9366_s0 + $0x2a0] sm:$0xff] }
 0x13b   :  { %3490 = vst [vmem:[%s9368_s2 + $0x1b8] sm:$0xff] %v1093_v33  ;;  %1413 = vmatprep.mubr.f32.mxu0 %v5430_v3  ;;  %3494 = vst.msk [vmem:[%s9368_s2 + $0x1d8] sm:$0xff] %vm3436_vm3, %v2445_v35  ;;  %v4807_v37 = vpop.f32.mrb[39].mxu1  ;;  %4965 = vmatmul.mubr.msk.f32.gmra.mrb[144].mxu1 %vm258_vm2, %v95_v34 }
 0x13c   :  { %4967 = vmatprep.mubr.msk.f32.mxu1 %vm5431_vm0, %v5430_v3 }
 0x13d   :  { %v1097_v36 = vpop.f32.mrb[38].mxu0 }
 0x13e   :  { %3492 = vst [vmem:[%s9368_s2 + $0x1c8] sm:$0xff] %v1097_v36  ;;  %v1099_v38 = vpop.f32.mrb[39].mxu0  ;;  %4165 = vmatmul.mubr.msk.f32.gmra.mrb[144].mxu0 %vm258_vm2, %v95_v34  ;;  %v2450_v40 = vpop.f32.mrb[40].mxu1  ;;  %v108_v36 = vld [vmem:[%s9366_s0 + $0x2a8] sm:$0xff] }
 0x13f   :  { %3493 = vst [vmem:[%s9368_s2 + $0x1d0] sm:$0xff] %v1099_v38  ;;  %1419 = vmatprep.mubr.f32.mxu0 %v5430_v3  ;;  %3497 = vst.msk [vmem:[%s9368_s2 + $0x1f0] sm:$0xff] %vm3436_vm3, %v2450_v40  ;;  %v4810_v42 = vpop.f32.mrb[41].mxu1  ;;  %4968 = vmatmul.mubr.msk.f32.gmra.mrb[146].mxu1 %vm258_vm2, %v96_v39 }
 0x140   :  { %4970 = vmatprep.mubr.msk.f32.mxu1 %vm5431_vm0, %v5430_v3 }
 0x141   :  { %v1103_v41 = vpop.f32.mrb[40].mxu0 }
 0x142   :  { %3495 = vst [vmem:[%s9368_s2 + $0x1e0] sm:$0xff] %v1103_v41  ;;  %v1105_v43 = vpop.f32.mrb[41].mxu0  ;;  %4166 = vmatmul.mubr.msk.f32.gmra.mrb[146].mxu0 %vm258_vm2, %v96_v39  ;;  %v2455_v45 = vpop.f32.mrb[42].mxu1  ;;  %v109_v41 = vld [vmem:[%s9366_s0 + $0x2b0] sm:$0xff] }
 0x143   :  { %3496 = vst [vmem:[%s9368_s2 + $0x1e8] sm:$0xff] %v1105_v43  ;;  %1425 = vmatprep.mubr.f32.mxu0 %v5430_v3  ;;  %3500 = vst.msk [vmem:[%s9368_s2 + $0x208] sm:$0xff] %vm3436_vm3, %v2455_v45  ;;  %v4813_v47 = vpop.f32.mrb[43].mxu1  ;;  %4971 = vmatmul.mubr.msk.f32.gmra.mrb[148].mxu1 %vm258_vm2, %v97_v44 }
 0x144   :  { %4973 = vmatprep.mubr.msk.f32.mxu1 %vm5431_vm0, %v5430_v3 }
 0x145   :  { %v1109_v46 = vpop.f32.mrb[42].mxu0 }
 0x146   :  { %3498 = vst [vmem:[%s9368_s2 + $0x1f8] sm:$0xff] %v1109_v46  ;;  %v1111_v48 = vpop.f32.mrb[43].mxu0  ;;  %4167 = vmatmul.mubr.msk.f32.gmra.mrb[148].mxu0 %vm258_vm2, %v97_v44  ;;  %v2460_v50 = vpop.f32.mrb[44].mxu1  ;;  %v110_v46 = vld [vmem:[%s9366_s0 + $0x2b8] sm:$0xff] }
 0x147   :  { %3499 = vst [vmem:[%s9368_s2 + $0x200] sm:$0xff] %v1111_v48  ;;  %1431 = vmatprep.mubr.f32.mxu0 %v5430_v3  ;;  %3503 = vst.msk [vmem:[%s9368_s2 + $0x220] sm:$0xff] %vm3436_vm3, %v2460_v50  ;;  %v4816_v52 = vpop.f32.mrb[45].mxu1  ;;  %4974 = vmatmul.mubr.msk.f32.gmra.mrb[150].mxu1 %vm258_vm2, %v98_v49 }
 0x148   :  { %4976 = vmatprep.mubr.msk.f32.mxu1 %vm5431_vm0, %v5430_v3 }
 0x149   :  { %v1115_v51 = vpop.f32.mrb[44].mxu0 }
 0x14a   :  { %3501 = vst [vmem:[%s9368_s2 + $0x210] sm:$0xff] %v1115_v51  ;;  %v1117_v53 = vpop.f32.mrb[45].mxu0  ;;  %4168 = vmatmul.mubr.msk.f32.gmra.mrb[150].mxu0 %vm258_vm2, %v98_v49  ;;  %v2465_v55 = vpop.f32.mrb[46].mxu1  ;;  %v111_v51 = vld [vmem:[%s9366_s0 + $0x2c0] sm:$0xff] }
 0x14b   :  { %3502 = vst [vmem:[%s9368_s2 + $0x218] sm:$0xff] %v1117_v53  ;;  %1437 = vmatprep.mubr.f32.mxu0 %v5430_v3  ;;  %3506 = vst.msk [vmem:[%s9368_s2 + $0x238] sm:$0xff] %vm3436_vm3, %v2465_v55  ;;  %v4819_v57 = vpop.f32.mrb[47].mxu1  ;;  %4977 = vmatmul.mubr.msk.f32.gmra.mrb[152].mxu1 %vm258_vm2, %v99_v54 }
 0x14c   :  { %4979 = vmatprep.mubr.msk.f32.mxu1 %vm5431_vm0, %v5430_v3 }
 0x14d   :  { %v1121_v56 = vpop.f32.mrb[46].mxu0 }
 0x14e   :  { %3504 = vst [vmem:[%s9368_s2 + $0x228] sm:$0xff] %v1121_v56  ;;  %v1123_v58 = vpop.f32.mrb[47].mxu0  ;;  %4169 = vmatmul.mubr.msk.f32.gmra.mrb[152].mxu0 %vm258_vm2, %v99_v54  ;;  %v2470_v60 = vpop.f32.mrb[48].mxu1  ;;  %v112_v56 = vld [vmem:[%s9366_s0 + $0x2c8] sm:$0xff] }
 0x14f   :  { %3505 = vst [vmem:[%s9368_s2 + $0x230] sm:$0xff] %v1123_v58  ;;  %1443 = vmatprep.mubr.f32.mxu0 %v5430_v3  ;;  %3509 = vst.msk [vmem:[%s9368_s2 + $0x250] sm:$0xff] %vm3436_vm3, %v2470_v60  ;;  %v4822_v62 = vpop.f32.mrb[49].mxu1  ;;  %4980 = vmatmul.mubr.msk.f32.gmra.mrb[154].mxu1 %vm258_vm2, %v100_v59 }
 0x150   :  { %4982 = vmatprep.mubr.msk.f32.mxu1 %vm5431_vm0, %v5430_v3 }
 0x151   :  { %v1127_v61 = vpop.f32.mrb[48].mxu0 }
 0x152   :  { %3507 = vst [vmem:[%s9368_s2 + $0x240] sm:$0xff] %v1127_v61  ;;  %v1129_v63 = vpop.f32.mrb[49].mxu0  ;;  %4170 = vmatmul.mubr.msk.f32.gmra.mrb[154].mxu0 %vm258_vm2, %v100_v59  ;;  %v2475_v1 = vpop.f32.mrb[50].mxu1  ;;  %v113_v61 = vld [vmem:[%s9366_s0 + $0x2d0] sm:$0xff] }
 0x153   :  { %3508 = vst [vmem:[%s9368_s2 + $0x248] sm:$0xff] %v1129_v63  ;;  %1449 = vmatprep.mubr.f32.mxu0 %v5430_v3  ;;  %3512 = vst.msk [vmem:[%s9368_s2 + $0x268] sm:$0xff] %vm3436_vm3, %v2475_v1  ;;  %v4825_v4 = vpop.f32.mrb[51].mxu1  ;;  %4983 = vmatmul.mubr.msk.f32.gmra.mrb[156].mxu1 %vm258_vm2, %v101_v0 }
 0x154   :  { %4985 = vmatprep.mubr.msk.f32.mxu1 %vm5431_vm0, %v5430_v3 }
 0x155   :  { %v1133_v2 = vpop.f32.mrb[50].mxu0 }
 0x156   :  { %3510 = vst [vmem:[%s9368_s2 + $0x258] sm:$0xff] %v1133_v2  ;;  %v1135_v5 = vpop.f32.mrb[51].mxu0  ;;  %4171 = vmatmul.mubr.msk.f32.gmra.mrb[156].mxu0 %vm258_vm2, %v101_v0  ;;  %v2480_v7 = vpop.f32.mrb[52].mxu1  ;;  %v114_v2 = vld [vmem:[%s9366_s0 + $0x2d8] sm:$0xff] }
 0x157   :  { %3511 = vst [vmem:[%s9368_s2 + $0x260] sm:$0xff] %v1135_v5  ;;  %1455 = vmatprep.mubr.f32.mxu0 %v5430_v3  ;;  %3515 = vst.msk [vmem:[%s9368_s2 + $0x280] sm:$0xff] %vm3436_vm3, %v2480_v7  ;;  %v4828_v9 = vpop.f32.mrb[53].mxu1  ;;  %4986 = vmatmul.mubr.msk.f32.gmra.mrb[158].mxu1 %vm258_vm2, %v102_v6 }
 0x158   :  { %4988 = vmatprep.mubr.msk.f32.mxu1 %vm5431_vm0, %v5430_v3 }
 0x159   :  { %v1139_v8 = vpop.f32.mrb[52].mxu0 }
 0x15a   :  { %3513 = vst [vmem:[%s9368_s2 + $0x270] sm:$0xff] %v1139_v8  ;;  %v1141_v10 = vpop.f32.mrb[53].mxu0  ;;  %4172 = vmatmul.mubr.msk.f32.gmra.mrb[158].mxu0 %vm258_vm2, %v102_v6  ;;  %v2485_v12 = vpop.f32.mrb[54].mxu1  ;;  %v115_v8 = vld [vmem:[%s9366_s0 + $0x2e0] sm:$0xff] }
 0x15b   :  { %3514 = vst [vmem:[%s9368_s2 + $0x278] sm:$0xff] %v1141_v10  ;;  %1461 = vmatprep.mubr.f32.mxu0 %v5430_v3  ;;  %3518 = vst.msk [vmem:[%s9368_s2 + $0x298] sm:$0xff] %vm3436_vm3, %v2485_v12  ;;  %v4831_v14 = vpop.f32.mrb[55].mxu1  ;;  %4989 = vmatmul.mubr.msk.f32.gmra.mrb[160].mxu1 %vm258_vm2, %v103_v11 }
 0x15c   :  { %4991 = vmatprep.mubr.msk.f32.mxu1 %vm5431_vm0, %v5430_v3 }
 0x15d   :  { %v1145_v13 = vpop.f32.mrb[54].mxu0 }
 0x15e   :  { %3516 = vst [vmem:[%s9368_s2 + $0x288] sm:$0xff] %v1145_v13  ;;  %v1147_v15 = vpop.f32.mrb[55].mxu0  ;;  %4173 = vmatmul.mubr.msk.f32.gmra.mrb[160].mxu0 %vm258_vm2, %v103_v11  ;;  %v2490_v17 = vpop.f32.mrb[56].mxu1  ;;  %v116_v13 = vld [vmem:[%s9366_s0 + $0x2e8] sm:$0xff] }
 0x15f   :  { %3517 = vst [vmem:[%s9368_s2 + $0x290] sm:$0xff] %v1147_v15  ;;  %1467 = vmatprep.mubr.f32.mxu0 %v5430_v3  ;;  %3521 = vst.msk [vmem:[%s9368_s2 + $0x2b0] sm:$0xff] %vm3436_vm3, %v2490_v17  ;;  %v4834_v19 = vpop.f32.mrb[57].mxu1  ;;  %4992 = vmatmul.mubr.msk.f32.gmra.mrb[162].mxu1 %vm258_vm2, %v104_v16 }
 0x160   :  { %4994 = vmatprep.mubr.msk.f32.mxu1 %vm5431_vm0, %v5430_v3 }
 0x161   :  { %v1151_v18 = vpop.f32.mrb[56].mxu0 }
 0x162   :  { %3519 = vst [vmem:[%s9368_s2 + $0x2a0] sm:$0xff] %v1151_v18  ;;  %v1153_v20 = vpop.f32.mrb[57].mxu0  ;;  %4174 = vmatmul.mubr.msk.f32.gmra.mrb[162].mxu0 %vm258_vm2, %v104_v16  ;;  %v2495_v22 = vpop.f32.mrb[58].mxu1  ;;  %v117_v18 = vld [vmem:[%s9366_s0 + $0x2f0] sm:$0xff] }
 0x163   :  { %3520 = vst [vmem:[%s9368_s2 + $0x2a8] sm:$0xff] %v1153_v20  ;;  %1473 = vmatprep.mubr.f32.mxu0 %v5430_v3  ;;  %3524 = vst.msk [vmem:[%s9368_s2 + $0x2c8] sm:$0xff] %vm3436_vm3, %v2495_v22  ;;  %v4837_v24 = vpop.f32.mrb[59].mxu1  ;;  %4995 = vmatmul.mubr.msk.f32.gmra.mrb[164].mxu1 %vm258_vm2, %v105_v21 }
 0x164   :  { %4997 = vmatprep.mubr.msk.f32.mxu1 %vm5431_vm0, %v5430_v3 }
 0x165   :  { %v1157_v23 = vpop.f32.mrb[58].mxu0 }
 0x166   :  { %3522 = vst [vmem:[%s9368_s2 + $0x2b8] sm:$0xff] %v1157_v23  ;;  %v1159_v25 = vpop.f32.mrb[59].mxu0  ;;  %4175 = vmatmul.mubr.msk.f32.gmra.mrb[164].mxu0 %vm258_vm2, %v105_v21  ;;  %v2500_v27 = vpop.f32.mrb[60].mxu1  ;;  %v118_v23 = vld [vmem:[%s9366_s0 + $0x2f8] sm:$0xff] }
 0x167   :  { %3523 = vst [vmem:[%s9368_s2 + $0x2c0] sm:$0xff] %v1159_v25  ;;  %1479 = vmatprep.mubr.f32.mxu0 %v5430_v3  ;;  %3527 = vst.msk [vmem:[%s9368_s2 + $0x2e0] sm:$0xff] %vm3436_vm3, %v2500_v27  ;;  %v4840_v29 = vpop.f32.mrb[61].mxu1  ;;  %4998 = vmatmul.mubr.msk.f32.gmra.mrb[166].mxu1 %vm258_vm2, %v106_v26 }
 0x168   :  { %5000 = vmatprep.mubr.msk.f32.mxu1 %vm5431_vm0, %v5430_v3 }
 0x169   :  { %v1163_v28 = vpop.f32.mrb[60].mxu0 }
 0x16a   :  { %3525 = vst [vmem:[%s9368_s2 + $0x2d0] sm:$0xff] %v1163_v28  ;;  %v1165_v30 = vpop.f32.mrb[61].mxu0  ;;  %4176 = vmatmul.mubr.msk.f32.gmra.mrb[166].mxu0 %vm258_vm2, %v106_v26  ;;  %v2505_v32 = vpop.f32.mrb[62].mxu1  ;;  %v119_v28 = vld [vmem:[%s9366_s0 + $0x300] sm:$0xff] }
 0x16b   :  { %3526 = vst [vmem:[%s9368_s2 + $0x2d8] sm:$0xff] %v1165_v30  ;;  %1485 = vmatprep.mubr.f32.mxu0 %v5430_v3  ;;  %3530 = vst.msk [vmem:[%s9368_s2 + $0x2f8] sm:$0xff] %vm3436_vm3, %v2505_v32  ;;  %v4843_v34 = vpop.f32.mrb[63].mxu1  ;;  %5001 = vmatmul.mubr.msk.f32.gmra.mrb[168].mxu1 %vm258_vm2, %v107_v31 }
 0x16c   :  { %5003 = vmatprep.mubr.msk.f32.mxu1 %vm5431_vm0, %v5430_v3 }
 0x16d   :  { %v1169_v33 = vpop.f32.mrb[62].mxu0 }
 0x16e   :  { %3528 = vst [vmem:[%s9368_s2 + $0x2e8] sm:$0xff] %v1169_v33  ;;  %v1171_v35 = vpop.f32.mrb[63].mxu0  ;;  %4177 = vmatmul.mubr.msk.f32.gmra.mrb[168].mxu0 %vm258_vm2, %v107_v31  ;;  %v2510_v37 = vpop.f32.mrb[64].mxu1  ;;  %v120_v33 = vld [vmem:[%s9366_s0 + $0x308] sm:$0xff] }
 0x16f   :  { %3529 = vst [vmem:[%s9368_s2 + $0x2f0] sm:$0xff] %v1171_v35  ;;  %1491 = vmatprep.mubr.f32.mxu0 %v5430_v3  ;;  %3533 = vst.msk [vmem:[%s9368_s2 + $0x310] sm:$0xff] %vm3436_vm3, %v2510_v37  ;;  %v4846_v39 = vpop.f32.mrb[65].mxu1  ;;  %5004 = vmatmul.mubr.msk.f32.gmra.mrb[170].mxu1 %vm258_vm2, %v108_v36 }
 0x170   :  { %5006 = vmatprep.mubr.msk.f32.mxu1 %vm5431_vm0, %v5430_v3 }
 0x171   :  { %v1175_v38 = vpop.f32.mrb[64].mxu0 }
 0x172   :  { %3531 = vst [vmem:[%s9368_s2 + $0x300] sm:$0xff] %v1175_v38  ;;  %v1177_v40 = vpop.f32.mrb[65].mxu0  ;;  %4178 = vmatmul.mubr.msk.f32.gmra.mrb[170].mxu0 %vm258_vm2, %v108_v36  ;;  %v2515_v42 = vpop.f32.mrb[66].mxu1  ;;  %v121_v38 = vld [vmem:[%s9366_s0 + $0x310] sm:$0xff] }
 0x173   :  { %3532 = vst [vmem:[%s9368_s2 + $0x308] sm:$0xff] %v1177_v40  ;;  %1497 = vmatprep.mubr.f32.mxu0 %v5430_v3  ;;  %3536 = vst.msk [vmem:[%s9368_s2 + $0x328] sm:$0xff] %vm3436_vm3, %v2515_v42  ;;  %v4849_v44 = vpop.f32.mrb[67].mxu1  ;;  %5007 = vmatmul.mubr.msk.f32.gmra.mrb[172].mxu1 %vm258_vm2, %v109_v41 }
 0x174   :  { %5009 = vmatprep.mubr.msk.f32.mxu1 %vm5431_vm0, %v5430_v3 }
 0x175   :  { %v1181_v43 = vpop.f32.mrb[66].mxu0 }
 0x176   :  { %3534 = vst [vmem:[%s9368_s2 + $0x318] sm:$0xff] %v1181_v43  ;;  %v1183_v45 = vpop.f32.mrb[67].mxu0  ;;  %4179 = vmatmul.mubr.msk.f32.gmra.mrb[172].mxu0 %vm258_vm2, %v109_v41  ;;  %v2520_v47 = vpop.f32.mrb[68].mxu1  ;;  %v122_v43 = vld [vmem:[%s9366_s0 + $0x318] sm:$0xff] }
 0x177   :  { %3535 = vst [vmem:[%s9368_s2 + $0x320] sm:$0xff] %v1183_v45  ;;  %1503 = vmatprep.mubr.f32.mxu0 %v5430_v3  ;;  %3539 = vst.msk [vmem:[%s9368_s2 + $0x340] sm:$0xff] %vm3436_vm3, %v2520_v47  ;;  %v4852_v49 = vpop.f32.mrb[69].mxu1  ;;  %5010 = vmatmul.mubr.msk.f32.gmra.mrb[174].mxu1 %vm258_vm2, %v110_v46 }
 0x178   :  { %5012 = vmatprep.mubr.msk.f32.mxu1 %vm5431_vm0, %v5430_v3 }
 0x179   :  { %v1187_v48 = vpop.f32.mrb[68].mxu0 }
 0x17a   :  { %3537 = vst [vmem:[%s9368_s2 + $0x330] sm:$0xff] %v1187_v48  ;;  %v1189_v50 = vpop.f32.mrb[69].mxu0  ;;  %4180 = vmatmul.mubr.msk.f32.gmra.mrb[174].mxu0 %vm258_vm2, %v110_v46  ;;  %v2525_v52 = vpop.f32.mrb[70].mxu1  ;;  %v123_v48 = vld [vmem:[%s9366_s0 + $0x320] sm:$0xff] }
 0x17b   :  { %3538 = vst [vmem:[%s9368_s2 + $0x338] sm:$0xff] %v1189_v50  ;;  %1509 = vmatprep.mubr.f32.mxu0 %v5430_v3  ;;  %3542 = vst.msk [vmem:[%s9368_s2 + $0x358] sm:$0xff] %vm3436_vm3, %v2525_v52  ;;  %v4855_v54 = vpop.f32.mrb[71].mxu1  ;;  %5013 = vmatmul.mubr.msk.f32.gmra.mrb[176].mxu1 %vm258_vm2, %v111_v51 }
 0x17c   :  { %5015 = vmatprep.mubr.msk.f32.mxu1 %vm5431_vm0, %v5430_v3 }
 0x17d   :  { %v1193_v53 = vpop.f32.mrb[70].mxu0 }
 0x17e   :  { %3540 = vst [vmem:[%s9368_s2 + $0x348] sm:$0xff] %v1193_v53  ;;  %v1195_v55 = vpop.f32.mrb[71].mxu0  ;;  %4181 = vmatmul.mubr.msk.f32.gmra.mrb[176].mxu0 %vm258_vm2, %v111_v51  ;;  %v2530_v57 = vpop.f32.mrb[72].mxu1  ;;  %v124_v53 = vld [vmem:[%s9366_s0 + $0x328] sm:$0xff] }
 0x17f   :  { %3541 = vst [vmem:[%s9368_s2 + $0x350] sm:$0xff] %v1195_v55  ;;  %1515 = vmatprep.mubr.f32.mxu0 %v5430_v3  ;;  %3545 = vst.msk [vmem:[%s9368_s2 + $0x370] sm:$0xff] %vm3436_vm3, %v2530_v57  ;;  %v4858_v59 = vpop.f32.mrb[73].mxu1  ;;  %5016 = vmatmul.mubr.msk.f32.gmra.mrb[178].mxu1 %vm258_vm2, %v112_v56 }
 0x180   :  { %5018 = vmatprep.mubr.msk.f32.mxu1 %vm5431_vm0, %v5430_v3 }
 0x181   :  { %v1199_v58 = vpop.f32.mrb[72].mxu0 }
 0x182   :  { %3543 = vst [vmem:[%s9368_s2 + $0x360] sm:$0xff] %v1199_v58  ;;  %v1201_v60 = vpop.f32.mrb[73].mxu0  ;;  %4182 = vmatmul.mubr.msk.f32.gmra.mrb[178].mxu0 %vm258_vm2, %v112_v56  ;;  %v2535_v62 = vpop.f32.mrb[74].mxu1  ;;  %v125_v58 = vld [vmem:[%s9366_s0 + $0x330] sm:$0xff] }
 0x183   :  { %3544 = vst [vmem:[%s9368_s2 + $0x368] sm:$0xff] %v1201_v60  ;;  %1521 = vmatprep.mubr.f32.mxu0 %v5430_v3  ;;  %3548 = vst.msk [vmem:[%s9368_s2 + $0x388] sm:$0xff] %vm3436_vm3, %v2535_v62  ;;  %v4861_v0 = vpop.f32.mrb[75].mxu1  ;;  %5019 = vmatmul.mubr.msk.f32.gmra.mrb[180].mxu1 %vm258_vm2, %v113_v61 }
 0x184   :  { %5021 = vmatprep.mubr.msk.f32.mxu1 %vm5431_vm0, %v5430_v3 }
 0x185   :  { %v1205_v63 = vpop.f32.mrb[74].mxu0 }
 0x186   :  { %3546 = vst [vmem:[%s9368_s2 + $0x378] sm:$0xff] %v1205_v63  ;;  %v1207_v1 = vpop.f32.mrb[75].mxu0  ;;  %4183 = vmatmul.mubr.msk.f32.gmra.mrb[180].mxu0 %vm258_vm2, %v113_v61  ;;  %v2540_v4 = vpop.f32.mrb[76].mxu1  ;;  %v126_v63 = vld [vmem:[%s9366_s0 + $0x338] sm:$0xff] }
 0x187   :  { %3547 = vst [vmem:[%s9368_s2 + $0x380] sm:$0xff] %v1207_v1  ;;  %1527 = vmatprep.mubr.f32.mxu0 %v5430_v3  ;;  %3551 = vst.msk [vmem:[%s9368_s2 + $0x3a0] sm:$0xff] %vm3436_vm3, %v2540_v4  ;;  %v4864_v6 = vpop.f32.mrb[77].mxu1  ;;  %5022 = vmatmul.mubr.msk.f32.gmra.mrb[182].mxu1 %vm258_vm2, %v114_v2 }
 0x188   :  { %5024 = vmatprep.mubr.msk.f32.mxu1 %vm5431_vm0, %v5430_v3 }
 0x189   :  { %v1211_v5 = vpop.f32.mrb[76].mxu0 }
 0x18a   :  { %3549 = vst [vmem:[%s9368_s2 + $0x390] sm:$0xff] %v1211_v5  ;;  %v1213_v7 = vpop.f32.mrb[77].mxu0  ;;  %4184 = vmatmul.mubr.msk.f32.gmra.mrb[182].mxu0 %vm258_vm2, %v114_v2  ;;  %v2545_v9 = vpop.f32.mrb[78].mxu1  ;;  %v127_v5 = vld [vmem:[%s9366_s0 + $0x340] sm:$0xff] }
 0x18b   :  { %3550 = vst [vmem:[%s9368_s2 + $0x398] sm:$0xff] %v1213_v7  ;;  %1533 = vmatprep.mubr.f32.mxu0 %v5430_v3  ;;  %3554 = vst.msk [vmem:[%s9368_s2 + $0x3b8] sm:$0xff] %vm3436_vm3, %v2545_v9  ;;  %v4867_v11 = vpop.f32.mrb[79].mxu1  ;;  %5025 = vmatmul.mubr.msk.f32.gmra.mrb[184].mxu1 %vm258_vm2, %v115_v8 }
 0x18c   :  { %5027 = vmatprep.mubr.msk.f32.mxu1 %vm5431_vm0, %v5430_v3 }
 0x18d   :  { %v1217_v10 = vpop.f32.mrb[78].mxu0 }
 0x18e   :  { %3552 = vst [vmem:[%s9368_s2 + $0x3a8] sm:$0xff] %v1217_v10  ;;  %v1219_v12 = vpop.f32.mrb[79].mxu0  ;;  %4185 = vmatmul.mubr.msk.f32.gmra.mrb[184].mxu0 %vm258_vm2, %v115_v8  ;;  %v2550_v14 = vpop.f32.mrb[80].mxu1  ;;  %v128_v10 = vld [vmem:[%s9366_s0 + $0x348] sm:$0xff] }
 0x18f   :  { %3553 = vst [vmem:[%s9368_s2 + $0x3b0] sm:$0xff] %v1219_v12  ;;  %1539 = vmatprep.mubr.f32.mxu0 %v5430_v3  ;;  %3557 = vst.msk [vmem:[%s9368_s2 + $0x3d0] sm:$0xff] %vm3436_vm3, %v2550_v14  ;;  %v4870_v16 = vpop.f32.mrb[81].mxu1  ;;  %5028 = vmatmul.mubr.msk.f32.gmra.mrb[186].mxu1 %vm258_vm2, %v116_v13 }
 0x190   :  { %5030 = vmatprep.mubr.msk.f32.mxu1 %vm5431_vm0, %v5430_v3 }
 0x191   :  { %v1223_v15 = vpop.f32.mrb[80].mxu0 }
 0x192   :  { %3555 = vst [vmem:[%s9368_s2 + $0x3c0] sm:$0xff] %v1223_v15  ;;  %v1225_v17 = vpop.f32.mrb[81].mxu0  ;;  %4186 = vmatmul.mubr.msk.f32.gmra.mrb[186].mxu0 %vm258_vm2, %v116_v13  ;;  %v2555_v19 = vpop.f32.mrb[82].mxu1  ;;  %v129_v15 = vld [vmem:[%s9366_s0 + $0x350] sm:$0xff] }
 0x193   :  { %3556 = vst [vmem:[%s9368_s2 + $0x3c8] sm:$0xff] %v1225_v17  ;;  %1545 = vmatprep.mubr.f32.mxu0 %v5430_v3  ;;  %3560 = vst.msk [vmem:[%s9368_s2 + $0x3e8] sm:$0xff] %vm3436_vm3, %v2555_v19  ;;  %v4873_v21 = vpop.f32.mrb[83].mxu1  ;;  %5031 = vmatmul.mubr.msk.f32.gmra.mrb[188].mxu1 %vm258_vm2, %v117_v18 }
 0x194   :  { %5033 = vmatprep.mubr.msk.f32.mxu1 %vm5431_vm0, %v5430_v3 }
 0x195   :  { %v1229_v20 = vpop.f32.mrb[82].mxu0 }
 0x196   :  { %3558 = vst [vmem:[%s9368_s2 + $0x3d8] sm:$0xff] %v1229_v20  ;;  %v1231_v22 = vpop.f32.mrb[83].mxu0  ;;  %4187 = vmatmul.mubr.msk.f32.gmra.mrb[188].mxu0 %vm258_vm2, %v117_v18  ;;  %v2560_v24 = vpop.f32.mrb[84].mxu1  ;;  %v130_v20 = vld [vmem:[%s9366_s0 + $0x358] sm:$0xff] }
 0x197   :  { %3559 = vst [vmem:[%s9368_s2 + $0x3e0] sm:$0xff] %v1231_v22  ;;  %1551 = vmatprep.mubr.f32.mxu0 %v5430_v3  ;;  %3563 = vst.msk [vmem:[%s9368_s2 + $0x400] sm:$0xff] %vm3436_vm3, %v2560_v24  ;;  %v4876_v26 = vpop.f32.mrb[85].mxu1  ;;  %5034 = vmatmul.mubr.msk.f32.gmra.mrb[190].mxu1 %vm258_vm2, %v118_v23 }
 0x198   :  { %5036 = vmatprep.mubr.msk.f32.mxu1 %vm5431_vm0, %v5430_v3 }
 0x199   :  { %v1235_v25 = vpop.f32.mrb[84].mxu0 }
 0x19a   :  { %3561 = vst [vmem:[%s9368_s2 + $0x3f0] sm:$0xff] %v1235_v25  ;;  %v1237_v27 = vpop.f32.mrb[85].mxu0  ;;  %4188 = vmatmul.mubr.msk.f32.gmra.mrb[190].mxu0 %vm258_vm2, %v118_v23  ;;  %v2565_v29 = vpop.f32.mrb[86].mxu1  ;;  %v131_v25 = vld [vmem:[%s9366_s0 + $0x360] sm:$0xff] }
 0x19b   :  { %3562 = vst [vmem:[%s9368_s2 + $0x3f8] sm:$0xff] %v1237_v27  ;;  %1557 = vmatprep.mubr.f32.mxu0 %v5430_v3  ;;  %3566 = vst.msk [vmem:[%s9368_s2 + $0x418] sm:$0xff] %vm3436_vm3, %v2565_v29  ;;  %v4879_v31 = vpop.f32.mrb[87].mxu1  ;;  %5037 = vmatmul.mubr.msk.f32.gmra.mrb[192].mxu1 %vm258_vm2, %v119_v28 }
 0x19c   :  { %5039 = vmatprep.mubr.msk.f32.mxu1 %vm5431_vm0, %v5430_v3 }
 0x19d   :  { %v1241_v30 = vpop.f32.mrb[86].mxu0 }
 0x19e   :  { %3564 = vst [vmem:[%s9368_s2 + $0x408] sm:$0xff] %v1241_v30  ;;  %v1243_v32 = vpop.f32.mrb[87].mxu0  ;;  %4189 = vmatmul.mubr.msk.f32.gmra.mrb[192].mxu0 %vm258_vm2, %v119_v28  ;;  %v2570_v34 = vpop.f32.mrb[88].mxu1  ;;  %v132_v30 = vld [vmem:[%s9366_s0 + $0x368] sm:$0xff] }
 0x19f   :  { %3565 = vst [vmem:[%s9368_s2 + $0x410] sm:$0xff] %v1243_v32  ;;  %1563 = vmatprep.mubr.f32.mxu0 %v5430_v3  ;;  %3569 = vst.msk [vmem:[%s9368_s2 + $0x430] sm:$0xff] %vm3436_vm3, %v2570_v34  ;;  %v4882_v36 = vpop.f32.mrb[89].mxu1  ;;  %5040 = vmatmul.mubr.msk.f32.gmra.mrb[194].mxu1 %vm258_vm2, %v120_v33 }
 0x1a0   :  { %5042 = vmatprep.mubr.msk.f32.mxu1 %vm5431_vm0, %v5430_v3 }
 0x1a1   :  { %v1247_v35 = vpop.f32.mrb[88].mxu0 }
 0x1a2   :  { %3567 = vst [vmem:[%s9368_s2 + $0x420] sm:$0xff] %v1247_v35  ;;  %v1249_v37 = vpop.f32.mrb[89].mxu0  ;;  %4190 = vmatmul.mubr.msk.f32.gmra.mrb[194].mxu0 %vm258_vm2, %v120_v33  ;;  %v2575_v39 = vpop.f32.mrb[90].mxu1  ;;  %v133_v35 = vld [vmem:[%s9366_s0 + $0x370] sm:$0xff] }
 0x1a3   :  { %3568 = vst [vmem:[%s9368_s2 + $0x428] sm:$0xff] %v1249_v37  ;;  %1569 = vmatprep.mubr.f32.mxu0 %v5430_v3  ;;  %3572 = vst.msk [vmem:[%s9368_s2 + $0x448] sm:$0xff] %vm3436_vm3, %v2575_v39  ;;  %v4885_v41 = vpop.f32.mrb[91].mxu1  ;;  %5043 = vmatmul.mubr.msk.f32.gmra.mrb[196].mxu1 %vm258_vm2, %v121_v38 }
 0x1a4   :  { %5045 = vmatprep.mubr.msk.f32.mxu1 %vm5431_vm0, %v5430_v3 }
 0x1a5   :  { %v1253_v40 = vpop.f32.mrb[90].mxu0 }
 0x1a6   :  { %3570 = vst [vmem:[%s9368_s2 + $0x438] sm:$0xff] %v1253_v40  ;;  %v1255_v42 = vpop.f32.mrb[91].mxu0  ;;  %4191 = vmatmul.mubr.msk.f32.gmra.mrb[196].mxu0 %vm258_vm2, %v121_v38  ;;  %v2580_v44 = vpop.f32.mrb[92].mxu1  ;;  %v134_v40 = vld [vmem:[%s9366_s0 + $0x378] sm:$0xff] }
 0x1a7   :  { %3571 = vst [vmem:[%s9368_s2 + $0x440] sm:$0xff] %v1255_v42  ;;  %1575 = vmatprep.mubr.f32.mxu0 %v5430_v3  ;;  %3575 = vst.msk [vmem:[%s9368_s2 + $0x460] sm:$0xff] %vm3436_vm3, %v2580_v44  ;;  %v4888_v46 = vpop.f32.mrb[93].mxu1  ;;  %5046 = vmatmul.mubr.msk.f32.gmra.mrb[198].mxu1 %vm258_vm2, %v122_v43 }
 0x1a8   :  { %5048 = vmatprep.mubr.msk.f32.mxu1 %vm5431_vm0, %v5430_v3 }
 0x1a9   :  { %v1259_v45 = vpop.f32.mrb[92].mxu0 }
 0x1aa   :  { %3573 = vst [vmem:[%s9368_s2 + $0x450] sm:$0xff] %v1259_v45  ;;  %v1261_v47 = vpop.f32.mrb[93].mxu0  ;;  %4192 = vmatmul.mubr.msk.f32.gmra.mrb[198].mxu0 %vm258_vm2, %v122_v43  ;;  %v2585_v49 = vpop.f32.mrb[94].mxu1  ;;  %v135_v45 = vld [vmem:[%s9366_s0 + $0x380] sm:$0xff] }
 0x1ab   :  { %3574 = vst [vmem:[%s9368_s2 + $0x458] sm:$0xff] %v1261_v47  ;;  %1581 = vmatprep.mubr.f32.mxu0 %v5430_v3  ;;  %3578 = vst.msk [vmem:[%s9368_s2 + $0x478] sm:$0xff] %vm3436_vm3, %v2585_v49  ;;  %v4891_v51 = vpop.f32.mrb[95].mxu1  ;;  %5049 = vmatmul.mubr.msk.f32.gmra.mrb[200].mxu1 %vm258_vm2, %v123_v48 }
 0x1ac   :  { %5051 = vmatprep.mubr.msk.f32.mxu1 %vm5431_vm0, %v5430_v3 }
 0x1ad   :  { %v1265_v50 = vpop.f32.mrb[94].mxu0 }
 0x1ae   :  { %3576 = vst [vmem:[%s9368_s2 + $0x468] sm:$0xff] %v1265_v50  ;;  %v1267_v52 = vpop.f32.mrb[95].mxu0  ;;  %4193 = vmatmul.mubr.msk.f32.gmra.mrb[200].mxu0 %vm258_vm2, %v123_v48  ;;  %v2590_v54 = vpop.f32.mrb[96].mxu1  ;;  %v136_v50 = vld [vmem:[%s9366_s0 + $0x388] sm:$0xff] }
 0x1af   :  { %3577 = vst [vmem:[%s9368_s2 + $0x470] sm:$0xff] %v1267_v52  ;;  %1587 = vmatprep.mubr.f32.mxu0 %v5430_v3  ;;  %3581 = vst.msk [vmem:[%s9368_s2 + $0x490] sm:$0xff] %vm3436_vm3, %v2590_v54  ;;  %v4894_v56 = vpop.f32.mrb[97].mxu1  ;;  %5052 = vmatmul.mubr.msk.f32.gmra.mrb[202].mxu1 %vm258_vm2, %v124_v53 }
 0x1b0   :  { %5054 = vmatprep.mubr.msk.f32.mxu1 %vm5431_vm0, %v5430_v3 }
 0x1b1   :  { %v1271_v55 = vpop.f32.mrb[96].mxu0 }
 0x1b2   :  { %3579 = vst [vmem:[%s9368_s2 + $0x480] sm:$0xff] %v1271_v55  ;;  %v1273_v57 = vpop.f32.mrb[97].mxu0  ;;  %4194 = vmatmul.mubr.msk.f32.gmra.mrb[202].mxu0 %vm258_vm2, %v124_v53  ;;  %v2595_v59 = vpop.f32.mrb[98].mxu1  ;;  %v137_v55 = vld [vmem:[%s9366_s0 + $0x390] sm:$0xff] }
 0x1b3   :  { %3580 = vst [vmem:[%s9368_s2 + $0x488] sm:$0xff] %v1273_v57  ;;  %1593 = vmatprep.mubr.f32.mxu0 %v5430_v3  ;;  %3584 = vst.msk [vmem:[%s9368_s2 + $0x4a8] sm:$0xff] %vm3436_vm3, %v2595_v59  ;;  %v4897_v61 = vpop.f32.mrb[99].mxu1  ;;  %5055 = vmatmul.mubr.msk.f32.gmra.mrb[204].mxu1 %vm258_vm2, %v125_v58 }
 0x1b4   :  { %5057 = vmatprep.mubr.msk.f32.mxu1 %vm5431_vm0, %v5430_v3 }
 0x1b5   :  { %v1277_v60 = vpop.f32.mrb[98].mxu0 }
 0x1b6   :  { %3582 = vst [vmem:[%s9368_s2 + $0x498] sm:$0xff] %v1277_v60  ;;  %v1279_v62 = vpop.f32.mrb[99].mxu0  ;;  %4195 = vmatmul.mubr.msk.f32.gmra.mrb[204].mxu0 %vm258_vm2, %v125_v58  ;;  %v2600_v0 = vpop.f32.mrb[100].mxu1  ;;  %v138_v60 = vld [vmem:[%s9366_s0 + $0x398] sm:$0xff] }
 0x1b7   :  { %3583 = vst [vmem:[%s9368_s2 + $0x4a0] sm:$0xff] %v1279_v62  ;;  %1599 = vmatprep.mubr.f32.mxu0 %v5430_v3  ;;  %3587 = vst.msk [vmem:[%s9368_s2 + $0x4c0] sm:$0xff] %vm3436_vm3, %v2600_v0  ;;  %v4900_v2 = vpop.f32.mrb[101].mxu1  ;;  %5058 = vmatmul.mubr.msk.f32.gmra.mrb[206].mxu1 %vm258_vm2, %v126_v63 }
 0x1b8   :  { %5060 = vmatprep.mubr.msk.f32.mxu1 %vm5431_vm0, %v5430_v3 }
 0x1b9   :  { %v1283_v1 = vpop.f32.mrb[100].mxu0 }
 0x1ba   :  { %3585 = vst [vmem:[%s9368_s2 + $0x4b0] sm:$0xff] %v1283_v1  ;;  %v1285_v4 = vpop.f32.mrb[101].mxu0  ;;  %4196 = vmatmul.mubr.msk.f32.gmra.mrb[206].mxu0 %vm258_vm2, %v126_v63  ;;  %v2605_v6 = vpop.f32.mrb[102].mxu1  ;;  %v139_v1 = vld [vmem:[%s9366_s0 + $0x3a0] sm:$0xff] }
 0x1bb   :  { %3586 = vst [vmem:[%s9368_s2 + $0x4b8] sm:$0xff] %v1285_v4  ;;  %1605 = vmatprep.mubr.f32.mxu0 %v5430_v3  ;;  %3590 = vst.msk [vmem:[%s9368_s2 + $0x4d8] sm:$0xff] %vm3436_vm3, %v2605_v6  ;;  %v4903_v8 = vpop.f32.mrb[103].mxu1  ;;  %5061 = vmatmul.mubr.msk.f32.gmra.mrb[208].mxu1 %vm258_vm2, %v127_v5 }
 0x1bc   :  { %5063 = vmatprep.mubr.msk.f32.mxu1 %vm5431_vm0, %v5430_v3 }
 0x1bd   :  { %v1289_v7 = vpop.f32.mrb[102].mxu0 }
 0x1be   :  { %3588 = vst [vmem:[%s9368_s2 + $0x4c8] sm:$0xff] %v1289_v7  ;;  %v1291_v9 = vpop.f32.mrb[103].mxu0  ;;  %4197 = vmatmul.mubr.msk.f32.gmra.mrb[208].mxu0 %vm258_vm2, %v127_v5  ;;  %v2610_v11 = vpop.f32.mrb[104].mxu1  ;;  %v140_v7 = vld [vmem:[%s9366_s0 + $0x3a8] sm:$0xff] }
 0x1bf   :  { %3589 = vst [vmem:[%s9368_s2 + $0x4d0] sm:$0xff] %v1291_v9  ;;  %1611 = vmatprep.mubr.f32.mxu0 %v5430_v3  ;;  %3593 = vst.msk [vmem:[%s9368_s2 + $0x4f0] sm:$0xff] %vm3436_vm3, %v2610_v11  ;;  %v4906_v13 = vpop.f32.mrb[105].mxu1  ;;  %5064 = vmatmul.mubr.msk.f32.gmra.mrb[210].mxu1 %vm258_vm2, %v128_v10 }
 0x1c0   :  { %5066 = vmatprep.mubr.msk.f32.mxu1 %vm5431_vm0, %v5430_v3 }
 0x1c1   :  { %v1295_v12 = vpop.f32.mrb[104].mxu0 }
 0x1c2   :  { %3591 = vst [vmem:[%s9368_s2 + $0x4e0] sm:$0xff] %v1295_v12  ;;  %v1297_v14 = vpop.f32.mrb[105].mxu0  ;;  %4198 = vmatmul.mubr.msk.f32.gmra.mrb[210].mxu0 %vm258_vm2, %v128_v10  ;;  %v2615_v16 = vpop.f32.mrb[106].mxu1  ;;  %v141_v12 = vld [vmem:[%s9366_s0 + $0x3b0] sm:$0xff] }
 0x1c3   :  { %3592 = vst [vmem:[%s9368_s2 + $0x4e8] sm:$0xff] %v1297_v14  ;;  %1617 = vmatprep.mubr.f32.mxu0 %v5430_v3  ;;  %3596 = vst.msk [vmem:[%s9368_s2 + $0x508] sm:$0xff] %vm3436_vm3, %v2615_v16  ;;  %v4909_v18 = vpop.f32.mrb[107].mxu1  ;;  %5067 = vmatmul.mubr.msk.f32.gmra.mrb[212].mxu1 %vm258_vm2, %v129_v15 }
 0x1c4   :  { %5069 = vmatprep.mubr.msk.f32.mxu1 %vm5431_vm0, %v5430_v3 }
 0x1c5   :  { %v1301_v17 = vpop.f32.mrb[106].mxu0 }
 0x1c6   :  { %3594 = vst [vmem:[%s9368_s2 + $0x4f8] sm:$0xff] %v1301_v17  ;;  %v1303_v19 = vpop.f32.mrb[107].mxu0  ;;  %4199 = vmatmul.mubr.msk.f32.gmra.mrb[212].mxu0 %vm258_vm2, %v129_v15  ;;  %v2620_v21 = vpop.f32.mrb[108].mxu1  ;;  %v142_v17 = vld [vmem:[%s9366_s0 + $0x3b8] sm:$0xff] }
 0x1c7   :  { %3595 = vst [vmem:[%s9368_s2 + $0x500] sm:$0xff] %v1303_v19  ;;  %1623 = vmatprep.mubr.f32.mxu0 %v5430_v3  ;;  %3599 = vst.msk [vmem:[%s9368_s2 + $0x520] sm:$0xff] %vm3436_vm3, %v2620_v21  ;;  %v4912_v23 = vpop.f32.mrb[109].mxu1  ;;  %5070 = vmatmul.mubr.msk.f32.gmra.mrb[214].mxu1 %vm258_vm2, %v130_v20 }
 0x1c8   :  { %5072 = vmatprep.mubr.msk.f32.mxu1 %vm5431_vm0, %v5430_v3 }
 0x1c9   :  { %v1307_v22 = vpop.f32.mrb[108].mxu0 }
 0x1ca   :  { %3597 = vst [vmem:[%s9368_s2 + $0x510] sm:$0xff] %v1307_v22  ;;  %v1309_v24 = vpop.f32.mrb[109].mxu0  ;;  %4200 = vmatmul.mubr.msk.f32.gmra.mrb[214].mxu0 %vm258_vm2, %v130_v20  ;;  %v2625_v26 = vpop.f32.mrb[110].mxu1  ;;  %v143_v22 = vld [vmem:[%s9366_s0 + $0x3c0] sm:$0xff] }
 0x1cb   :  { %3598 = vst [vmem:[%s9368_s2 + $0x518] sm:$0xff] %v1309_v24  ;;  %1629 = vmatprep.mubr.f32.mxu0 %v5430_v3  ;;  %3602 = vst.msk [vmem:[%s9368_s2 + $0x538] sm:$0xff] %vm3436_vm3, %v2625_v26  ;;  %v4915_v28 = vpop.f32.mrb[111].mxu1  ;;  %5073 = vmatmul.mubr.msk.f32.gmra.mrb[216].mxu1 %vm258_vm2, %v131_v25 }
 0x1cc   :  { %5075 = vmatprep.mubr.msk.f32.mxu1 %vm5431_vm0, %v5430_v3 }
 0x1cd   :  { %v1313_v27 = vpop.f32.mrb[110].mxu0 }
 0x1ce   :  { %3600 = vst [vmem:[%s9368_s2 + $0x528] sm:$0xff] %v1313_v27  ;;  %v1315_v29 = vpop.f32.mrb[111].mxu0  ;;  %4201 = vmatmul.mubr.msk.f32.gmra.mrb[216].mxu0 %vm258_vm2, %v131_v25  ;;  %v2630_v31 = vpop.f32.mrb[112].mxu1  ;;  %v144_v27 = vld [vmem:[%s9366_s0 + $0x3c8] sm:$0xff] }
 0x1cf   :  { %3601 = vst [vmem:[%s9368_s2 + $0x530] sm:$0xff] %v1315_v29  ;;  %1635 = vmatprep.mubr.f32.mxu0 %v5430_v3  ;;  %3605 = vst.msk [vmem:[%s9368_s2 + $0x550] sm:$0xff] %vm3436_vm3, %v2630_v31  ;;  %v4918_v33 = vpop.f32.mrb[113].mxu1  ;;  %5076 = vmatmul.mubr.msk.f32.gmra.mrb[218].mxu1 %vm258_vm2, %v132_v30 }
 0x1d0   :  { %5078 = vmatprep.mubr.msk.f32.mxu1 %vm5431_vm0, %v5430_v3 }
 0x1d1   :  { %v1319_v32 = vpop.f32.mrb[112].mxu0 }
 0x1d2   :  { %3603 = vst [vmem:[%s9368_s2 + $0x540] sm:$0xff] %v1319_v32  ;;  %v1321_v34 = vpop.f32.mrb[113].mxu0  ;;  %4202 = vmatmul.mubr.msk.f32.gmra.mrb[218].mxu0 %vm258_vm2, %v132_v30  ;;  %v2635_v36 = vpop.f32.mrb[114].mxu1  ;;  %v145_v32 = vld [vmem:[%s9366_s0 + $0x3d0] sm:$0xff] }
 0x1d3   :  { %3604 = vst [vmem:[%s9368_s2 + $0x548] sm:$0xff] %v1321_v34  ;;  %1641 = vmatprep.mubr.f32.mxu0 %v5430_v3  ;;  %3608 = vst.msk [vmem:[%s9368_s2 + $0x568] sm:$0xff] %vm3436_vm3, %v2635_v36  ;;  %v4921_v38 = vpop.f32.mrb[115].mxu1  ;;  %5079 = vmatmul.mubr.msk.f32.gmra.mrb[220].mxu1 %vm258_vm2, %v133_v35 }
 0x1d4   :  { %5081 = vmatprep.mubr.msk.f32.mxu1 %vm5431_vm0, %v5430_v3 }
 0x1d5   :  { %v1325_v37 = vpop.f32.mrb[114].mxu0 }
 0x1d6   :  { %3606 = vst [vmem:[%s9368_s2 + $0x558] sm:$0xff] %v1325_v37  ;;  %v1327_v39 = vpop.f32.mrb[115].mxu0  ;;  %4203 = vmatmul.mubr.msk.f32.gmra.mrb[220].mxu0 %vm258_vm2, %v133_v35  ;;  %v2640_v41 = vpop.f32.mrb[116].mxu1  ;;  %v146_v37 = vld [vmem:[%s9366_s0 + $0x3d8] sm:$0xff] }
 0x1d7   :  { %3607 = vst [vmem:[%s9368_s2 + $0x560] sm:$0xff] %v1327_v39  ;;  %1647 = vmatprep.mubr.f32.mxu0 %v5430_v3  ;;  %3611 = vst.msk [vmem:[%s9368_s2 + $0x580] sm:$0xff] %vm3436_vm3, %v2640_v41  ;;  %v4924_v43 = vpop.f32.mrb[117].mxu1  ;;  %5082 = vmatmul.mubr.msk.f32.gmra.mrb[222].mxu1 %vm258_vm2, %v134_v40 }
 0x1d8   :  { %5084 = vmatprep.mubr.msk.f32.mxu1 %vm5431_vm0, %v5430_v3 }
 0x1d9   :  { %v1331_v42 = vpop.f32.mrb[116].mxu0 }
 0x1da   :  { %3609 = vst [vmem:[%s9368_s2 + $0x570] sm:$0xff] %v1331_v42  ;;  %v1333_v44 = vpop.f32.mrb[117].mxu0  ;;  %4204 = vmatmul.mubr.msk.f32.gmra.mrb[222].mxu0 %vm258_vm2, %v134_v40  ;;  %v2645_v46 = vpop.f32.mrb[118].mxu1  ;;  %v147_v42 = vld [vmem:[%s9366_s0 + $0x3e0] sm:$0xff] }
 0x1db   :  { %3610 = vst [vmem:[%s9368_s2 + $0x578] sm:$0xff] %v1333_v44  ;;  %1653 = vmatprep.mubr.f32.mxu0 %v5430_v3  ;;  %3614 = vst.msk [vmem:[%s9368_s2 + $0x598] sm:$0xff] %vm3436_vm3, %v2645_v46  ;;  %v4927_v48 = vpop.f32.mrb[119].mxu1  ;;  %5085 = vmatmul.mubr.msk.f32.gmra.mrb[224].mxu1 %vm258_vm2, %v135_v45 }
 0x1dc   :  { %5087 = vmatprep.mubr.msk.f32.mxu1 %vm5431_vm0, %v5430_v3 }
 0x1dd   :  { %v1337_v47 = vpop.f32.mrb[118].mxu0 }
 0x1de   :  { %3612 = vst [vmem:[%s9368_s2 + $0x588] sm:$0xff] %v1337_v47  ;;  %v1339_v49 = vpop.f32.mrb[119].mxu0  ;;  %4205 = vmatmul.mubr.msk.f32.gmra.mrb[224].mxu0 %vm258_vm2, %v135_v45  ;;  %v2650_v51 = vpop.f32.mrb[120].mxu1  ;;  %v148_v47 = vld [vmem:[%s9366_s0 + $0x3e8] sm:$0xff] }
 0x1df   :  { %3613 = vst [vmem:[%s9368_s2 + $0x590] sm:$0xff] %v1339_v49  ;;  %1659 = vmatprep.mubr.f32.mxu0 %v5430_v3  ;;  %3617 = vst.msk [vmem:[%s9368_s2 + $0x5b0] sm:$0xff] %vm3436_vm3, %v2650_v51  ;;  %v4930_v53 = vpop.f32.mrb[121].mxu1  ;;  %5088 = vmatmul.mubr.msk.f32.gmra.mrb[226].mxu1 %vm258_vm2, %v136_v50 }
 0x1e0   :  { %5090 = vmatprep.mubr.msk.f32.mxu1 %vm5431_vm0, %v5430_v3 }
 0x1e1   :  { %v1343_v52 = vpop.f32.mrb[120].mxu0 }
 0x1e2   :  { %3615 = vst [vmem:[%s9368_s2 + $0x5a0] sm:$0xff] %v1343_v52  ;;  %v1345_v54 = vpop.f32.mrb[121].mxu0  ;;  %4206 = vmatmul.mubr.msk.f32.gmra.mrb[226].mxu0 %vm258_vm2, %v136_v50  ;;  %v2655_v56 = vpop.f32.mrb[122].mxu1  ;;  %v149_v52 = vld [vmem:[%s9366_s0 + $0x3f0] sm:$0xff] }
 0x1e3   :  { %3616 = vst [vmem:[%s9368_s2 + $0x5a8] sm:$0xff] %v1345_v54  ;;  %1665 = vmatprep.mubr.f32.mxu0 %v5430_v3  ;;  %3620 = vst.msk [vmem:[%s9368_s2 + $0x5c8] sm:$0xff] %vm3436_vm3, %v2655_v56  ;;  %v4933_v58 = vpop.f32.mrb[123].mxu1  ;;  %5091 = vmatmul.mubr.msk.f32.gmra.mrb[228].mxu1 %vm258_vm2, %v137_v55 }
 0x1e4   :  { %5093 = vmatprep.mubr.msk.f32.mxu1 %vm5431_vm0, %v5430_v3 }
 0x1e5   :  { %v1349_v57 = vpop.f32.mrb[122].mxu0 }
 0x1e6   :  { %3618 = vst [vmem:[%s9368_s2 + $0x5b8] sm:$0xff] %v1349_v57  ;;  %v1351_v59 = vpop.f32.mrb[123].mxu0  ;;  %4207 = vmatmul.mubr.msk.f32.gmra.mrb[228].mxu0 %vm258_vm2, %v137_v55  ;;  %v2660_v61 = vpop.f32.mrb[124].mxu1  ;;  %v150_v57 = vld [vmem:[%s9366_s0 + $0x3f8] sm:$0xff] }
 0x1e7   :  { %3619 = vst [vmem:[%s9368_s2 + $0x5c0] sm:$0xff] %v1351_v59  ;;  %1671 = vmatprep.mubr.f32.mxu0 %v5430_v3  ;;  %3623 = vst.msk [vmem:[%s9368_s2 + $0x5e0] sm:$0xff] %vm3436_vm3, %v2660_v61  ;;  %v4936_v63 = vpop.f32.mrb[125].mxu1  ;;  %5094 = vmatmul.mubr.msk.f32.gmra.mrb[230].mxu1 %vm258_vm2, %v138_v60 }
 0x1e8   :  { %5096 = vmatprep.mubr.msk.f32.mxu1 %vm5431_vm0, %v5430_v3 }
 0x1e9   :  { %v1355_v62 = vpop.f32.mrb[124].mxu0 }
 0x1ea   :  { %3621 = vst [vmem:[%s9368_s2 + $0x5d0] sm:$0xff] %v1355_v62  ;;  %v1357_v0 = vpop.f32.mrb[125].mxu0  ;;  %4208 = vmatmul.mubr.msk.f32.gmra.mrb[230].mxu0 %vm258_vm2, %v138_v60  ;;  %v2665_v2 = vpop.f32.mrb[126].mxu1  ;;  %v151_v62 = vld [vmem:[%s9366_s0 + $0x400] sm:$0xff] }
 0x1eb   :  { %3622 = vst [vmem:[%s9368_s2 + $0x5d8] sm:$0xff] %v1357_v0  ;;  %1677 = vmatprep.mubr.f32.mxu0 %v5430_v3  ;;  %3626 = vst.msk [vmem:[%s9368_s2 + $0x5f8] sm:$0xff] %vm3436_vm3, %v2665_v2  ;;  %v4939_v5 = vpop.f32.mrb[127].mxu1  ;;  %5097 = vmatmul.mubr.msk.f32.gmra.mrb[232].mxu1 %vm258_vm2, %v139_v1 }
 0x1ec   :  { %5099 = vmatprep.mubr.msk.f32.mxu1 %vm5431_vm0, %v5430_v3 }
 0x1ed   :  { %v1361_v4 = vpop.f32.mrb[126].mxu0 }
 0x1ee   :  { %3624 = vst [vmem:[%s9368_s2 + $0x5e8] sm:$0xff] %v1361_v4  ;;  %v1363_v6 = vpop.f32.mrb[127].mxu0  ;;  %4209 = vmatmul.mubr.msk.f32.gmra.mrb[232].mxu0 %vm258_vm2, %v139_v1  ;;  %v2670_v8 = vpop.f32.mrb[128].mxu1  ;;  %v152_v4 = vld [vmem:[%s9366_s0 + $0x408] sm:$0xff] }
 0x1ef   :  { %3625 = vst [vmem:[%s9368_s2 + $0x5f0] sm:$0xff] %v1363_v6  ;;  %1683 = vmatprep.mubr.f32.mxu0 %v5430_v3  ;;  %3629 = vst.msk [vmem:[%s9368_s2 + $0x610] sm:$0xff] %vm3436_vm3, %v2670_v8  ;;  %v4942_v10 = vpop.f32.mrb[129].mxu1  ;;  %5100 = vmatmul.mubr.msk.f32.gmra.mrb[234].mxu1 %vm258_vm2, %v140_v7 }
 0x1f0   :  { %5102 = vmatprep.mubr.msk.f32.mxu1 %vm5431_vm0, %v5430_v3 }
 0x1f1   :  { %v1367_v9 = vpop.f32.mrb[128].mxu0 }
 0x1f2   :  { %3627 = vst [vmem:[%s9368_s2 + $0x600] sm:$0xff] %v1367_v9  ;;  %v1369_v11 = vpop.f32.mrb[129].mxu0  ;;  %4210 = vmatmul.mubr.msk.f32.gmra.mrb[234].mxu0 %vm258_vm2, %v140_v7  ;;  %v2675_v13 = vpop.f32.mrb[130].mxu1  ;;  %v153_v9 = vld [vmem:[%s9366_s0 + $0x410] sm:$0xff] }
 0x1f3   :  { %3628 = vst [vmem:[%s9368_s2 + $0x608] sm:$0xff] %v1369_v11  ;;  %1689 = vmatprep.mubr.f32.mxu0 %v5430_v3  ;;  %3632 = vst.msk [vmem:[%s9368_s2 + $0x628] sm:$0xff] %vm3436_vm3, %v2675_v13  ;;  %v4945_v15 = vpop.f32.mrb[131].mxu1  ;;  %5103 = vmatmul.mubr.msk.f32.gmra.mrb[236].mxu1 %vm258_vm2, %v141_v12 }
 0x1f4   :  { %5105 = vmatprep.mubr.msk.f32.mxu1 %vm5431_vm0, %v5430_v3 }
 0x1f5   :  { %v1373_v14 = vpop.f32.mrb[130].mxu0 }
 0x1f6   :  { %3630 = vst [vmem:[%s9368_s2 + $0x618] sm:$0xff] %v1373_v14  ;;  %v1375_v16 = vpop.f32.mrb[131].mxu0  ;;  %4211 = vmatmul.mubr.msk.f32.gmra.mrb[236].mxu0 %vm258_vm2, %v141_v12  ;;  %v2680_v18 = vpop.f32.mrb[132].mxu1  ;;  %v154_v14 = vld [vmem:[%s9366_s0 + $0x418] sm:$0xff] }
 0x1f7   :  { %3631 = vst [vmem:[%s9368_s2 + $0x620] sm:$0xff] %v1375_v16  ;;  %1695 = vmatprep.mubr.f32.mxu0 %v5430_v3  ;;  %3635 = vst.msk [vmem:[%s9368_s2 + $0x640] sm:$0xff] %vm3436_vm3, %v2680_v18  ;;  %v4948_v20 = vpop.f32.mrb[133].mxu1  ;;  %5106 = vmatmul.mubr.msk.f32.gmra.mrb[238].mxu1 %vm258_vm2, %v142_v17 }
 0x1f8   :  { %5108 = vmatprep.mubr.msk.f32.mxu1 %vm5431_vm0, %v5430_v3 }
 0x1f9   :  { %v1379_v19 = vpop.f32.mrb[132].mxu0 }
 0x1fa   :  { %3633 = vst [vmem:[%s9368_s2 + $0x630] sm:$0xff] %v1379_v19  ;;  %v1381_v21 = vpop.f32.mrb[133].mxu0  ;;  %4212 = vmatmul.mubr.msk.f32.gmra.mrb[238].mxu0 %vm258_vm2, %v142_v17  ;;  %v2685_v23 = vpop.f32.mrb[134].mxu1  ;;  %v155_v19 = vld [vmem:[%s9366_s0 + $0x420] sm:$0xff] }
 0x1fb   :  { %3634 = vst [vmem:[%s9368_s2 + $0x638] sm:$0xff] %v1381_v21  ;;  %1701 = vmatprep.mubr.f32.mxu0 %v5430_v3  ;;  %3638 = vst.msk [vmem:[%s9368_s2 + $0x658] sm:$0xff] %vm3436_vm3, %v2685_v23  ;;  %v4951_v25 = vpop.f32.mrb[135].mxu1  ;;  %5109 = vmatmul.mubr.msk.f32.gmra.mrb[240].mxu1 %vm258_vm2, %v143_v22 }
 0x1fc   :  { %5111 = vmatprep.mubr.msk.f32.mxu1 %vm5431_vm0, %v5430_v3 }
 0x1fd   :  { %v1385_v24 = vpop.f32.mrb[134].mxu0 }
 0x1fe   :  { %3636 = vst [vmem:[%s9368_s2 + $0x648] sm:$0xff] %v1385_v24  ;;  %v1387_v26 = vpop.f32.mrb[135].mxu0  ;;  %4213 = vmatmul.mubr.msk.f32.gmra.mrb[240].mxu0 %vm258_vm2, %v143_v22  ;;  %v2690_v28 = vpop.f32.mrb[136].mxu1  ;;  %v156_v24 = vld [vmem:[%s9366_s0 + $0x428] sm:$0xff] }
 0x1ff   :  { %3637 = vst [vmem:[%s9368_s2 + $0x650] sm:$0xff] %v1387_v26  ;;  %1707 = vmatprep.mubr.f32.mxu0 %v5430_v3  ;;  %3641 = vst.msk [vmem:[%s9368_s2 + $0x670] sm:$0xff] %vm3436_vm3, %v2690_v28  ;;  %v4954_v30 = vpop.f32.mrb[137].mxu1  ;;  %5112 = vmatmul.mubr.msk.f32.gmra.mrb[242].mxu1 %vm258_vm2, %v144_v27 }
 0x200   :  { %5114 = vmatprep.mubr.msk.f32.mxu1 %vm5431_vm0, %v5430_v3 }
 0x201   :  { %v1391_v29 = vpop.f32.mrb[136].mxu0 }
 0x202   :  { %3639 = vst [vmem:[%s9368_s2 + $0x660] sm:$0xff] %v1391_v29  ;;  %v1393_v31 = vpop.f32.mrb[137].mxu0  ;;  %4214 = vmatmul.mubr.msk.f32.gmra.mrb[242].mxu0 %vm258_vm2, %v144_v27  ;;  %v2695_v33 = vpop.f32.mrb[138].mxu1  ;;  %v157_v29 = vld [vmem:[%s9366_s0 + $0x430] sm:$0xff] }
 0x203   :  { %3640 = vst [vmem:[%s9368_s2 + $0x668] sm:$0xff] %v1393_v31  ;;  %1713 = vmatprep.mubr.f32.mxu0 %v5430_v3  ;;  %3644 = vst.msk [vmem:[%s9368_s2 + $0x688] sm:$0xff] %vm3436_vm3, %v2695_v33  ;;  %v4957_v35 = vpop.f32.mrb[139].mxu1  ;;  %5115 = vmatmul.mubr.msk.f32.gmra.mrb[244].mxu1 %vm258_vm2, %v145_v32 }
 0x204   :  { %5117 = vmatprep.mubr.msk.f32.mxu1 %vm5431_vm0, %v5430_v3 }
 0x205   :  { %v1397_v34 = vpop.f32.mrb[138].mxu0 }
 0x206   :  { %3642 = vst [vmem:[%s9368_s2 + $0x678] sm:$0xff] %v1397_v34  ;;  %v1399_v36 = vpop.f32.mrb[139].mxu0  ;;  %4215 = vmatmul.mubr.msk.f32.gmra.mrb[244].mxu0 %vm258_vm2, %v145_v32  ;;  %v2700_v38 = vpop.f32.mrb[140].mxu1  ;;  %v158_v34 = vld [vmem:[%s9366_s0 + $0x438] sm:$0xff] }
 0x207   :  { %3643 = vst [vmem:[%s9368_s2 + $0x680] sm:$0xff] %v1399_v36  ;;  %1719 = vmatprep.mubr.f32.mxu0 %v5430_v3  ;;  %3647 = vst.msk [vmem:[%s9368_s2 + $0x6a0] sm:$0xff] %vm3436_vm3, %v2700_v38  ;;  %v4960_v40 = vpop.f32.mrb[141].mxu1  ;;  %5118 = vmatmul.mubr.msk.f32.gmra.mrb[246].mxu1 %vm258_vm2, %v146_v37 }
 0x208   :  { %5120 = vmatprep.mubr.msk.f32.mxu1 %vm5431_vm0, %v5430_v3 }
 0x209   :  { %v1403_v39 = vpop.f32.mrb[140].mxu0 }
 0x20a   :  { %3645 = vst [vmem:[%s9368_s2 + $0x690] sm:$0xff] %v1403_v39  ;;  %v1405_v41 = vpop.f32.mrb[141].mxu0  ;;  %4216 = vmatmul.mubr.msk.f32.gmra.mrb[246].mxu0 %vm258_vm2, %v146_v37  ;;  %v2705_v43 = vpop.f32.mrb[142].mxu1  ;;  %v159_v39 = vld [vmem:[%s9366_s0 + $0x440] sm:$0xff] }
 0x20b   :  { %3646 = vst [vmem:[%s9368_s2 + $0x698] sm:$0xff] %v1405_v41  ;;  %1725 = vmatprep.mubr.f32.mxu0 %v5430_v3  ;;  %3650 = vst.msk [vmem:[%s9368_s2 + $0x6b8] sm:$0xff] %vm3436_vm3, %v2705_v43  ;;  %v4963_v45 = vpop.f32.mrb[143].mxu1  ;;  %5121 = vmatmul.mubr.msk.f32.gmra.mrb[248].mxu1 %vm258_vm2, %v147_v42 }
 0x20c   :  { %5123 = vmatprep.mubr.msk.f32.mxu1 %vm5431_vm0, %v5430_v3 }
 0x20d   :  { %v1409_v44 = vpop.f32.mrb[142].mxu0 }
 0x20e   :  { %3648 = vst [vmem:[%s9368_s2 + $0x6a8] sm:$0xff] %v1409_v44  ;;  %v1411_v46 = vpop.f32.mrb[143].mxu0  ;;  %4217 = vmatmul.mubr.msk.f32.gmra.mrb[248].mxu0 %vm258_vm2, %v147_v42  ;;  %v2710_v48 = vpop.f32.mrb[144].mxu1  ;;  %v160_v44 = vld [vmem:[%s9366_s0 + $0x448] sm:$0xff] }
 0x20f   :  { %3649 = vst [vmem:[%s9368_s2 + $0x6b0] sm:$0xff] %v1411_v46  ;;  %1731 = vmatprep.mubr.f32.mxu0 %v5430_v3  ;;  %3653 = vst.msk [vmem:[%s9368_s2 + $0x6d0] sm:$0xff] %vm3436_vm3, %v2710_v48  ;;  %v4966_v50 = vpop.f32.mrb[145].mxu1  ;;  %5124 = vmatmul.mubr.msk.f32.gmra.mrb[250].mxu1 %vm258_vm2, %v148_v47 }
 0x210   :  { %5126 = vmatprep.mubr.msk.f32.mxu1 %vm5431_vm0, %v5430_v3 }
 0x211   :  { %v1415_v49 = vpop.f32.mrb[144].mxu0 }
 0x212   :  { %3651 = vst [vmem:[%s9368_s2 + $0x6c0] sm:$0xff] %v1415_v49  ;;  %v1417_v51 = vpop.f32.mrb[145].mxu0  ;;  %4218 = vmatmul.mubr.msk.f32.gmra.mrb[250].mxu0 %vm258_vm2, %v148_v47  ;;  %v2715_v53 = vpop.f32.mrb[146].mxu1  ;;  %v161_v49 = vld [vmem:[%s9366_s0 + $0x450] sm:$0xff] }
 0x213   :  { %3652 = vst [vmem:[%s9368_s2 + $0x6c8] sm:$0xff] %v1417_v51  ;;  %1737 = vmatprep.mubr.f32.mxu0 %v5430_v3  ;;  %3656 = vst.msk [vmem:[%s9368_s2 + $0x6e8] sm:$0xff] %vm3436_vm3, %v2715_v53  ;;  %v4969_v55 = vpop.f32.mrb[147].mxu1  ;;  %5127 = vmatmul.mubr.msk.f32.gmra.mrb[252].mxu1 %vm258_vm2, %v149_v52 }
 0x214   :  { %5129 = vmatprep.mubr.msk.f32.mxu1 %vm5431_vm0, %v5430_v3 }
 0x215   :  { %v1421_v54 = vpop.f32.mrb[146].mxu0 }
 0x216   :  { %3654 = vst [vmem:[%s9368_s2 + $0x6d8] sm:$0xff] %v1421_v54  ;;  %v1423_v56 = vpop.f32.mrb[147].mxu0  ;;  %4219 = vmatmul.mubr.msk.f32.gmra.mrb[252].mxu0 %vm258_vm2, %v149_v52  ;;  %v2720_v58 = vpop.f32.mrb[148].mxu1  ;;  %v162_v54 = vld [vmem:[%s9366_s0 + $0x458] sm:$0xff] }
 0x217   :  { %3655 = vst [vmem:[%s9368_s2 + $0x6e0] sm:$0xff] %v1423_v56  ;;  %1743 = vmatprep.mubr.f32.mxu0 %v5430_v3  ;;  %3659 = vst.msk [vmem:[%s9368_s2 + $0x700] sm:$0xff] %vm3436_vm3, %v2720_v58  ;;  %v4972_v60 = vpop.f32.mrb[149].mxu1  ;;  %5130 = vmatmul.mubr.msk.f32.gmra.mrb[254].mxu1 %vm258_vm2, %v150_v57 }
 0x218   :  { %5132 = vmatprep.mubr.msk.f32.mxu1 %vm5431_vm0, %v5430_v3 }
 0x219   :  { %v1427_v59 = vpop.f32.mrb[148].mxu0 }
 0x21a   :  { %3657 = vst [vmem:[%s9368_s2 + $0x6f0] sm:$0xff] %v1427_v59  ;;  %v1429_v61 = vpop.f32.mrb[149].mxu0  ;;  %4220 = vmatmul.mubr.msk.f32.gmra.mrb[254].mxu0 %vm258_vm2, %v150_v57  ;;  %v2725_v63 = vpop.f32.mrb[150].mxu1  ;;  %v163_v59 = vld [vmem:[%s9366_s0 + $0x460] sm:$0xff] }
 0x21b   :  { %3658 = vst [vmem:[%s9368_s2 + $0x6f8] sm:$0xff] %v1429_v61  ;;  %1749 = vmatprep.mubr.f32.mxu0 %v5430_v3  ;;  %3662 = vst.msk [vmem:[%s9368_s2 + $0x718] sm:$0xff] %vm3436_vm3, %v2725_v63  ;;  %v4975_v1 = vpop.f32.mrb[151].mxu1  ;;  %5133 = vmatmul.mubr.msk.f32.gmra.mrb[0].mxu1 %vm258_vm2, %v151_v62 }
 0x21c   :  { %5135 = vmatprep.mubr.msk.f32.mxu1 %vm5431_vm0, %v5430_v3 }
 0x21d   :  { %v1433_v0 = vpop.f32.mrb[150].mxu0 }
 0x21e   :  { %3660 = vst [vmem:[%s9368_s2 + $0x708] sm:$0xff] %v1433_v0  ;;  %v1435_v2 = vpop.f32.mrb[151].mxu0  ;;  %4221 = vmatmul.mubr.msk.f32.gmra.mrb[0].mxu0 %vm258_vm2, %v151_v62  ;;  %v2730_v5 = vpop.f32.mrb[152].mxu1  ;;  %v164_v0 = vld [vmem:[%s9366_s0 + $0x468] sm:$0xff] }
 0x21f   :  { %3661 = vst [vmem:[%s9368_s2 + $0x710] sm:$0xff] %v1435_v2  ;;  %1755 = vmatprep.mubr.f32.mxu0 %v5430_v3  ;;  %3665 = vst.msk [vmem:[%s9368_s2 + $0x730] sm:$0xff] %vm3436_vm3, %v2730_v5  ;;  %v4978_v7 = vpop.f32.mrb[153].mxu1  ;;  %5136 = vmatmul.mubr.msk.f32.gmra.mrb[2].mxu1 %vm258_vm2, %v152_v4 }
 0x220   :  { %5138 = vmatprep.mubr.msk.f32.mxu1 %vm5431_vm0, %v5430_v3 }
 0x221   :  { %v1439_v6 = vpop.f32.mrb[152].mxu0 }
 0x222   :  { %3663 = vst [vmem:[%s9368_s2 + $0x720] sm:$0xff] %v1439_v6  ;;  %v1441_v8 = vpop.f32.mrb[153].mxu0  ;;  %4222 = vmatmul.mubr.msk.f32.gmra.mrb[2].mxu0 %vm258_vm2, %v152_v4  ;;  %v2735_v10 = vpop.f32.mrb[154].mxu1  ;;  %v165_v6 = vld [vmem:[%s9366_s0 + $0x470] sm:$0xff] }
 0x223   :  { %3664 = vst [vmem:[%s9368_s2 + $0x728] sm:$0xff] %v1441_v8  ;;  %1761 = vmatprep.mubr.f32.mxu0 %v5430_v3  ;;  %3668 = vst.msk [vmem:[%s9368_s2 + $0x748] sm:$0xff] %vm3436_vm3, %v2735_v10  ;;  %v4981_v12 = vpop.f32.mrb[155].mxu1  ;;  %5139 = vmatmul.mubr.msk.f32.gmra.mrb[4].mxu1 %vm258_vm2, %v153_v9 }
 0x224   :  { %5141 = vmatprep.mubr.msk.f32.mxu1 %vm5431_vm0, %v5430_v3 }
 0x225   :  { %v1445_v11 = vpop.f32.mrb[154].mxu0 }
 0x226   :  { %3666 = vst [vmem:[%s9368_s2 + $0x738] sm:$0xff] %v1445_v11  ;;  %v1447_v13 = vpop.f32.mrb[155].mxu0  ;;  %4223 = vmatmul.mubr.msk.f32.gmra.mrb[4].mxu0 %vm258_vm2, %v153_v9  ;;  %v2740_v15 = vpop.f32.mrb[156].mxu1  ;;  %v166_v11 = vld [vmem:[%s9366_s0 + $0x478] sm:$0xff] }
 0x227   :  { %3667 = vst [vmem:[%s9368_s2 + $0x740] sm:$0xff] %v1447_v13  ;;  %1767 = vmatprep.mubr.f32.mxu0 %v5430_v3  ;;  %3671 = vst.msk [vmem:[%s9368_s2 + $0x760] sm:$0xff] %vm3436_vm3, %v2740_v15  ;;  %v4984_v17 = vpop.f32.mrb[157].mxu1  ;;  %5142 = vmatmul.mubr.msk.f32.gmra.mrb[6].mxu1 %vm258_vm2, %v154_v14 }
 0x228   :  { %5144 = vmatprep.mubr.msk.f32.mxu1 %vm5431_vm0, %v5430_v3 }
 0x229   :  { %v1451_v16 = vpop.f32.mrb[156].mxu0 }
 0x22a   :  { %3669 = vst [vmem:[%s9368_s2 + $0x750] sm:$0xff] %v1451_v16  ;;  %v1453_v18 = vpop.f32.mrb[157].mxu0  ;;  %4224 = vmatmul.mubr.msk.f32.gmra.mrb[6].mxu0 %vm258_vm2, %v154_v14  ;;  %v2745_v20 = vpop.f32.mrb[158].mxu1  ;;  %v167_v16 = vld [vmem:[%s9366_s0 + $0x480] sm:$0xff] }
 0x22b   :  { %3670 = vst [vmem:[%s9368_s2 + $0x758] sm:$0xff] %v1453_v18  ;;  %1773 = vmatprep.mubr.f32.mxu0 %v5430_v3  ;;  %3674 = vst.msk [vmem:[%s9368_s2 + $0x778] sm:$0xff] %vm3436_vm3, %v2745_v20  ;;  %v4987_v22 = vpop.f32.mrb[159].mxu1  ;;  %5145 = vmatmul.mubr.msk.f32.gmra.mrb[8].mxu1 %vm258_vm2, %v155_v19 }
 0x22c   :  { %5147 = vmatprep.mubr.msk.f32.mxu1 %vm5431_vm0, %v5430_v3 }
 0x22d   :  { %v1457_v21 = vpop.f32.mrb[158].mxu0 }
 0x22e   :  { %3672 = vst [vmem:[%s9368_s2 + $0x768] sm:$0xff] %v1457_v21  ;;  %v1459_v23 = vpop.f32.mrb[159].mxu0  ;;  %4225 = vmatmul.mubr.msk.f32.gmra.mrb[8].mxu0 %vm258_vm2, %v155_v19  ;;  %v2750_v25 = vpop.f32.mrb[160].mxu1  ;;  %v168_v21 = vld [vmem:[%s9366_s0 + $0x488] sm:$0xff] }
 0x22f   :  { %3673 = vst [vmem:[%s9368_s2 + $0x770] sm:$0xff] %v1459_v23  ;;  %1779 = vmatprep.mubr.f32.mxu0 %v5430_v3  ;;  %3677 = vst.msk [vmem:[%s9368_s2 + $0x790] sm:$0xff] %vm3436_vm3, %v2750_v25  ;;  %v4990_v27 = vpop.f32.mrb[161].mxu1  ;;  %5148 = vmatmul.mubr.msk.f32.gmra.mrb[10].mxu1 %vm258_vm2, %v156_v24 }
 0x230   :  { %5150 = vmatprep.mubr.msk.f32.mxu1 %vm5431_vm0, %v5430_v3 }
 0x231   :  { %v1463_v26 = vpop.f32.mrb[160].mxu0 }
 0x232   :  { %3675 = vst [vmem:[%s9368_s2 + $0x780] sm:$0xff] %v1463_v26  ;;  %v1465_v28 = vpop.f32.mrb[161].mxu0  ;;  %4226 = vmatmul.mubr.msk.f32.gmra.mrb[10].mxu0 %vm258_vm2, %v156_v24  ;;  %v2755_v30 = vpop.f32.mrb[162].mxu1  ;;  %v169_v26 = vld [vmem:[%s9366_s0 + $0x490] sm:$0xff] }
 0x233   :  { %3676 = vst [vmem:[%s9368_s2 + $0x788] sm:$0xff] %v1465_v28  ;;  %1785 = vmatprep.mubr.f32.mxu0 %v5430_v3  ;;  %3680 = vst.msk [vmem:[%s9368_s2 + $0x7a8] sm:$0xff] %vm3436_vm3, %v2755_v30  ;;  %v4993_v32 = vpop.f32.mrb[163].mxu1  ;;  %5151 = vmatmul.mubr.msk.f32.gmra.mrb[12].mxu1 %vm258_vm2, %v157_v29 }
 0x234   :  { %5153 = vmatprep.mubr.msk.f32.mxu1 %vm5431_vm0, %v5430_v3 }
 0x235   :  { %v1469_v31 = vpop.f32.mrb[162].mxu0 }
 0x236   :  { %3678 = vst [vmem:[%s9368_s2 + $0x798] sm:$0xff] %v1469_v31  ;;  %v1471_v33 = vpop.f32.mrb[163].mxu0  ;;  %4227 = vmatmul.mubr.msk.f32.gmra.mrb[12].mxu0 %vm258_vm2, %v157_v29  ;;  %v2760_v35 = vpop.f32.mrb[164].mxu1  ;;  %v170_v31 = vld [vmem:[%s9366_s0 + $0x498] sm:$0xff] }
 0x237   :  { %3679 = vst [vmem:[%s9368_s2 + $0x7a0] sm:$0xff] %v1471_v33  ;;  %1791 = vmatprep.mubr.f32.mxu0 %v5430_v3  ;;  %3683 = vst.msk [vmem:[%s9368_s2 + $0x7c0] sm:$0xff] %vm3436_vm3, %v2760_v35  ;;  %v4996_v37 = vpop.f32.mrb[165].mxu1  ;;  %5154 = vmatmul.mubr.msk.f32.gmra.mrb[14].mxu1 %vm258_vm2, %v158_v34 }
 0x238   :  { %5156 = vmatprep.mubr.msk.f32.mxu1 %vm5431_vm0, %v5430_v3 }
 0x239   :  { %v1475_v36 = vpop.f32.mrb[164].mxu0 }
 0x23a   :  { %3681 = vst [vmem:[%s9368_s2 + $0x7b0] sm:$0xff] %v1475_v36  ;;  %v1477_v38 = vpop.f32.mrb[165].mxu0  ;;  %4228 = vmatmul.mubr.msk.f32.gmra.mrb[14].mxu0 %vm258_vm2, %v158_v34  ;;  %v2765_v40 = vpop.f32.mrb[166].mxu1  ;;  %v171_v36 = vld [vmem:[%s9366_s0 + $0x4a0] sm:$0xff] }
 0x23b   :  { %3682 = vst [vmem:[%s9368_s2 + $0x7b8] sm:$0xff] %v1477_v38  ;;  %1797 = vmatprep.mubr.f32.mxu0 %v5430_v3  ;;  %3686 = vst.msk [vmem:[%s9368_s2 + $0x7d8] sm:$0xff] %vm3436_vm3, %v2765_v40  ;;  %v4999_v42 = vpop.f32.mrb[167].mxu1  ;;  %5157 = vmatmul.mubr.msk.f32.gmra.mrb[16].mxu1 %vm258_vm2, %v159_v39 }
 0x23c   :  { %5159 = vmatprep.mubr.msk.f32.mxu1 %vm5431_vm0, %v5430_v3 }
 0x23d   :  { %v1481_v41 = vpop.f32.mrb[166].mxu0 }
 0x23e   :  { %3684 = vst [vmem:[%s9368_s2 + $0x7c8] sm:$0xff] %v1481_v41  ;;  %v1483_v43 = vpop.f32.mrb[167].mxu0  ;;  %4229 = vmatmul.mubr.msk.f32.gmra.mrb[16].mxu0 %vm258_vm2, %v159_v39  ;;  %v2770_v45 = vpop.f32.mrb[168].mxu1  ;;  %v172_v41 = vld [vmem:[%s9366_s0 + $0x4a8] sm:$0xff] }
 0x23f   :  { %3685 = vst [vmem:[%s9368_s2 + $0x7d0] sm:$0xff] %v1483_v43  ;;  %1803 = vmatprep.mubr.f32.mxu0 %v5430_v3  ;;  %3689 = vst.msk [vmem:[%s9368_s2 + $0x7f0] sm:$0xff] %vm3436_vm3, %v2770_v45  ;;  %v5002_v47 = vpop.f32.mrb[169].mxu1  ;;  %5160 = vmatmul.mubr.msk.f32.gmra.mrb[18].mxu1 %vm258_vm2, %v160_v44 }
 0x240   :  { %5162 = vmatprep.mubr.msk.f32.mxu1 %vm5431_vm0, %v5430_v3 }
 0x241   :  { %v1487_v46 = vpop.f32.mrb[168].mxu0 }
 0x242   :  { %3687 = vst [vmem:[%s9368_s2 + $0x7e0] sm:$0xff] %v1487_v46  ;;  %v1489_v48 = vpop.f32.mrb[169].mxu0  ;;  %4230 = vmatmul.mubr.msk.f32.gmra.mrb[18].mxu0 %vm258_vm2, %v160_v44  ;;  %v2775_v50 = vpop.f32.mrb[170].mxu1  ;;  %v173_v46 = vld [vmem:[%s9366_s0 + $0x4b0] sm:$0xff] }
 0x243   :  { %3688 = vst [vmem:[%s9368_s2 + $0x7e8] sm:$0xff] %v1489_v48  ;;  %1809 = vmatprep.mubr.f32.mxu0 %v5430_v3  ;;  %3692 = vst.msk [vmem:[%s9368_s2 + $0x808] sm:$0xff] %vm3436_vm3, %v2775_v50  ;;  %v5005_v52 = vpop.f32.mrb[171].mxu1  ;;  %5163 = vmatmul.mubr.msk.f32.gmra.mrb[20].mxu1 %vm258_vm2, %v161_v49 }
 0x244   :  { %5165 = vmatprep.mubr.msk.f32.mxu1 %vm5431_vm0, %v5430_v3 }
 0x245   :  { %v1493_v51 = vpop.f32.mrb[170].mxu0 }
 0x246   :  { %3690 = vst [vmem:[%s9368_s2 + $0x7f8] sm:$0xff] %v1493_v51  ;;  %v1495_v53 = vpop.f32.mrb[171].mxu0  ;;  %4231 = vmatmul.mubr.msk.f32.gmra.mrb[20].mxu0 %vm258_vm2, %v161_v49  ;;  %v2780_v55 = vpop.f32.mrb[172].mxu1  ;;  %v174_v51 = vld [vmem:[%s9366_s0 + $0x4b8] sm:$0xff] }
 0x247   :  { %3691 = vst [vmem:[%s9368_s2 + $0x800] sm:$0xff] %v1495_v53  ;;  %1815 = vmatprep.mubr.f32.mxu0 %v5430_v3  ;;  %3695 = vst.msk [vmem:[%s9368_s2 + $0x820] sm:$0xff] %vm3436_vm3, %v2780_v55  ;;  %v5008_v57 = vpop.f32.mrb[173].mxu1  ;;  %5166 = vmatmul.mubr.msk.f32.gmra.mrb[22].mxu1 %vm258_vm2, %v162_v54 }
 0x248   :  { %5168 = vmatprep.mubr.msk.f32.mxu1 %vm5431_vm0, %v5430_v3 }
 0x249   :  { %v1499_v56 = vpop.f32.mrb[172].mxu0 }
 0x24a   :  { %3693 = vst [vmem:[%s9368_s2 + $0x810] sm:$0xff] %v1499_v56  ;;  %v1501_v58 = vpop.f32.mrb[173].mxu0  ;;  %4232 = vmatmul.mubr.msk.f32.gmra.mrb[22].mxu0 %vm258_vm2, %v162_v54  ;;  %v2785_v60 = vpop.f32.mrb[174].mxu1  ;;  %v175_v56 = vld [vmem:[%s9366_s0 + $0x4c0] sm:$0xff] }
 0x24b   :  { %3694 = vst [vmem:[%s9368_s2 + $0x818] sm:$0xff] %v1501_v58  ;;  %1821 = vmatprep.mubr.f32.mxu0 %v5430_v3  ;;  %3698 = vst.msk [vmem:[%s9368_s2 + $0x838] sm:$0xff] %vm3436_vm3, %v2785_v60  ;;  %v5011_v62 = vpop.f32.mrb[175].mxu1  ;;  %5169 = vmatmul.mubr.msk.f32.gmra.mrb[24].mxu1 %vm258_vm2, %v163_v59 }
 0x24c   :  { %5171 = vmatprep.mubr.msk.f32.mxu1 %vm5431_vm0, %v5430_v3 }
 0x24d   :  { %v1505_v61 = vpop.f32.mrb[174].mxu0 }
 0x24e   :  { %3696 = vst [vmem:[%s9368_s2 + $0x828] sm:$0xff] %v1505_v61  ;;  %v1507_v63 = vpop.f32.mrb[175].mxu0  ;;  %4233 = vmatmul.mubr.msk.f32.gmra.mrb[24].mxu0 %vm258_vm2, %v163_v59  ;;  %v2790_v1 = vpop.f32.mrb[176].mxu1  ;;  %v176_v61 = vld [vmem:[%s9366_s0 + $0x4c8] sm:$0xff] }
 0x24f   :  { %3697 = vst [vmem:[%s9368_s2 + $0x830] sm:$0xff] %v1507_v63  ;;  %1827 = vmatprep.mubr.f32.mxu0 %v5430_v3  ;;  %3701 = vst.msk [vmem:[%s9368_s2 + $0x850] sm:$0xff] %vm3436_vm3, %v2790_v1  ;;  %v5014_v4 = vpop.f32.mrb[177].mxu1  ;;  %5172 = vmatmul.mubr.msk.f32.gmra.mrb[26].mxu1 %vm258_vm2, %v164_v0 }
 0x250   :  { %5174 = vmatprep.mubr.msk.f32.mxu1 %vm5431_vm0, %v5430_v3 }
 0x251   :  { %v1511_v2 = vpop.f32.mrb[176].mxu0 }
 0x252   :  { %3699 = vst [vmem:[%s9368_s2 + $0x840] sm:$0xff] %v1511_v2  ;;  %v1513_v5 = vpop.f32.mrb[177].mxu0  ;;  %4234 = vmatmul.mubr.msk.f32.gmra.mrb[26].mxu0 %vm258_vm2, %v164_v0  ;;  %v2795_v7 = vpop.f32.mrb[178].mxu1  ;;  %v177_v2 = vld [vmem:[%s9366_s0 + $0x4d0] sm:$0xff] }
 0x253   :  { %3700 = vst [vmem:[%s9368_s2 + $0x848] sm:$0xff] %v1513_v5  ;;  %1833 = vmatprep.mubr.f32.mxu0 %v5430_v3  ;;  %3704 = vst.msk [vmem:[%s9368_s2 + $0x868] sm:$0xff] %vm3436_vm3, %v2795_v7  ;;  %v5017_v9 = vpop.f32.mrb[179].mxu1  ;;  %5175 = vmatmul.mubr.msk.f32.gmra.mrb[28].mxu1 %vm258_vm2, %v165_v6 }
 0x254   :  { %5177 = vmatprep.mubr.msk.f32.mxu1 %vm5431_vm0, %v5430_v3 }
 0x255   :  { %v1517_v8 = vpop.f32.mrb[178].mxu0 }
 0x256   :  { %3702 = vst [vmem:[%s9368_s2 + $0x858] sm:$0xff] %v1517_v8  ;;  %v1519_v10 = vpop.f32.mrb[179].mxu0  ;;  %4235 = vmatmul.mubr.msk.f32.gmra.mrb[28].mxu0 %vm258_vm2, %v165_v6  ;;  %v2800_v12 = vpop.f32.mrb[180].mxu1  ;;  %v178_v8 = vld [vmem:[%s9366_s0 + $0x4d8] sm:$0xff] }
 0x257   :  { %3703 = vst [vmem:[%s9368_s2 + $0x860] sm:$0xff] %v1519_v10  ;;  %1839 = vmatprep.mubr.f32.mxu0 %v5430_v3  ;;  %3707 = vst.msk [vmem:[%s9368_s2 + $0x880] sm:$0xff] %vm3436_vm3, %v2800_v12  ;;  %v5020_v14 = vpop.f32.mrb[181].mxu1  ;;  %5178 = vmatmul.mubr.msk.f32.gmra.mrb[30].mxu1 %vm258_vm2, %v166_v11 }
 0x258   :  { %5180 = vmatprep.mubr.msk.f32.mxu1 %vm5431_vm0, %v5430_v3 }
 0x259   :  { %v1523_v13 = vpop.f32.mrb[180].mxu0 }
 0x25a   :  { %3705 = vst [vmem:[%s9368_s2 + $0x870] sm:$0xff] %v1523_v13  ;;  %v1525_v15 = vpop.f32.mrb[181].mxu0  ;;  %4236 = vmatmul.mubr.msk.f32.gmra.mrb[30].mxu0 %vm258_vm2, %v166_v11  ;;  %v2805_v17 = vpop.f32.mrb[182].mxu1  ;;  %v179_v13 = vld [vmem:[%s9366_s0 + $0x4e0] sm:$0xff] }
 0x25b   :  { %3706 = vst [vmem:[%s9368_s2 + $0x878] sm:$0xff] %v1525_v15  ;;  %1845 = vmatprep.mubr.f32.mxu0 %v5430_v3  ;;  %3710 = vst.msk [vmem:[%s9368_s2 + $0x898] sm:$0xff] %vm3436_vm3, %v2805_v17  ;;  %v5023_v19 = vpop.f32.mrb[183].mxu1  ;;  %5181 = vmatmul.mubr.msk.f32.gmra.mrb[32].mxu1 %vm258_vm2, %v167_v16 }
 0x25c   :  { %5183 = vmatprep.mubr.msk.f32.mxu1 %vm5431_vm0, %v5430_v3 }
 0x25d   :  { %v1529_v18 = vpop.f32.mrb[182].mxu0 }
 0x25e   :  { %3708 = vst [vmem:[%s9368_s2 + $0x888] sm:$0xff] %v1529_v18  ;;  %v1531_v20 = vpop.f32.mrb[183].mxu0  ;;  %4237 = vmatmul.mubr.msk.f32.gmra.mrb[32].mxu0 %vm258_vm2, %v167_v16  ;;  %v2810_v22 = vpop.f32.mrb[184].mxu1  ;;  %v180_v18 = vld [vmem:[%s9366_s0 + $0x4e8] sm:$0xff] }
 0x25f   :  { %3709 = vst [vmem:[%s9368_s2 + $0x890] sm:$0xff] %v1531_v20  ;;  %1851 = vmatprep.mubr.f32.mxu0 %v5430_v3  ;;  %3713 = vst.msk [vmem:[%s9368_s2 + $0x8b0] sm:$0xff] %vm3436_vm3, %v2810_v22  ;;  %v5026_v24 = vpop.f32.mrb[185].mxu1  ;;  %5184 = vmatmul.mubr.msk.f32.gmra.mrb[34].mxu1 %vm258_vm2, %v168_v21 }
 0x260   :  { %5186 = vmatprep.mubr.msk.f32.mxu1 %vm5431_vm0, %v5430_v3 }
 0x261   :  { %v1535_v23 = vpop.f32.mrb[184].mxu0 }
 0x262   :  { %3711 = vst [vmem:[%s9368_s2 + $0x8a0] sm:$0xff] %v1535_v23  ;;  %v1537_v25 = vpop.f32.mrb[185].mxu0  ;;  %4238 = vmatmul.mubr.msk.f32.gmra.mrb[34].mxu0 %vm258_vm2, %v168_v21  ;;  %v2815_v27 = vpop.f32.mrb[186].mxu1  ;;  %v181_v23 = vld [vmem:[%s9366_s0 + $0x4f0] sm:$0xff] }
 0x263   :  { %3712 = vst [vmem:[%s9368_s2 + $0x8a8] sm:$0xff] %v1537_v25  ;;  %1857 = vmatprep.mubr.f32.mxu0 %v5430_v3  ;;  %3716 = vst.msk [vmem:[%s9368_s2 + $0x8c8] sm:$0xff] %vm3436_vm3, %v2815_v27  ;;  %v5029_v29 = vpop.f32.mrb[187].mxu1  ;;  %5187 = vmatmul.mubr.msk.f32.gmra.mrb[36].mxu1 %vm258_vm2, %v169_v26 }
 0x264   :  { %5189 = vmatprep.mubr.msk.f32.mxu1 %vm5431_vm0, %v5430_v3 }
 0x265   :  { %v1541_v28 = vpop.f32.mrb[186].mxu0 }
 0x266   :  { %3714 = vst [vmem:[%s9368_s2 + $0x8b8] sm:$0xff] %v1541_v28  ;;  %v1543_v30 = vpop.f32.mrb[187].mxu0  ;;  %4239 = vmatmul.mubr.msk.f32.gmra.mrb[36].mxu0 %vm258_vm2, %v169_v26  ;;  %v2820_v32 = vpop.f32.mrb[188].mxu1  ;;  %v182_v28 = vld [vmem:[%s9366_s0 + $0x4f8] sm:$0xff] }
 0x267   :  { %3715 = vst [vmem:[%s9368_s2 + $0x8c0] sm:$0xff] %v1543_v30  ;;  %1863 = vmatprep.mubr.f32.mxu0 %v5430_v3  ;;  %3719 = vst.msk [vmem:[%s9368_s2 + $0x8e0] sm:$0xff] %vm3436_vm3, %v2820_v32  ;;  %v5032_v34 = vpop.f32.mrb[189].mxu1  ;;  %5190 = vmatmul.mubr.msk.f32.gmra.mrb[38].mxu1 %vm258_vm2, %v170_v31 }
 0x268   :  { %5192 = vmatprep.mubr.msk.f32.mxu1 %vm5431_vm0, %v5430_v3 }
 0x269   :  { %v1547_v33 = vpop.f32.mrb[188].mxu0 }
 0x26a   :  { %3717 = vst [vmem:[%s9368_s2 + $0x8d0] sm:$0xff] %v1547_v33  ;;  %v1549_v35 = vpop.f32.mrb[189].mxu0  ;;  %4240 = vmatmul.mubr.msk.f32.gmra.mrb[38].mxu0 %vm258_vm2, %v170_v31  ;;  %v2825_v37 = vpop.f32.mrb[190].mxu1  ;;  %v183_v33 = vld [vmem:[%s9366_s0 + $0x500] sm:$0xff] }
 0x26b   :  { %3718 = vst [vmem:[%s9368_s2 + $0x8d8] sm:$0xff] %v1549_v35  ;;  %1869 = vmatprep.mubr.f32.mxu0 %v5430_v3  ;;  %3722 = vst.msk [vmem:[%s9368_s2 + $0x8f8] sm:$0xff] %vm3436_vm3, %v2825_v37  ;;  %v5035_v39 = vpop.f32.mrb[191].mxu1  ;;  %5193 = vmatmul.mubr.msk.f32.gmra.mrb[40].mxu1 %vm258_vm2, %v171_v36 }
 0x26c   :  { %5195 = vmatprep.mubr.msk.f32.mxu1 %vm5431_vm0, %v5430_v3 }
 0x26d   :  { %v1553_v38 = vpop.f32.mrb[190].mxu0 }
 0x26e   :  { %3720 = vst [vmem:[%s9368_s2 + $0x8e8] sm:$0xff] %v1553_v38  ;;  %v1555_v40 = vpop.f32.mrb[191].mxu0  ;;  %4241 = vmatmul.mubr.msk.f32.gmra.mrb[40].mxu0 %vm258_vm2, %v171_v36  ;;  %v2830_v42 = vpop.f32.mrb[192].mxu1  ;;  %v184_v38 = vld [vmem:[%s9366_s0 + $0x508] sm:$0xff] }
 0x26f   :  { %3721 = vst [vmem:[%s9368_s2 + $0x8f0] sm:$0xff] %v1555_v40  ;;  %1875 = vmatprep.mubr.f32.mxu0 %v5430_v3  ;;  %3725 = vst.msk [vmem:[%s9368_s2 + $0x910] sm:$0xff] %vm3436_vm3, %v2830_v42  ;;  %v5038_v44 = vpop.f32.mrb[193].mxu1  ;;  %5196 = vmatmul.mubr.msk.f32.gmra.mrb[42].mxu1 %vm258_vm2, %v172_v41 }
 0x270   :  { %5198 = vmatprep.mubr.msk.f32.mxu1 %vm5431_vm0, %v5430_v3 }
 0x271   :  { %v1559_v43 = vpop.f32.mrb[192].mxu0 }
 0x272   :  { %3723 = vst [vmem:[%s9368_s2 + $0x900] sm:$0xff] %v1559_v43  ;;  %v1561_v45 = vpop.f32.mrb[193].mxu0  ;;  %4242 = vmatmul.mubr.msk.f32.gmra.mrb[42].mxu0 %vm258_vm2, %v172_v41  ;;  %v2835_v47 = vpop.f32.mrb[194].mxu1  ;;  %v185_v43 = vld [vmem:[%s9366_s0 + $0x510] sm:$0xff] }
 0x273   :  { %3724 = vst [vmem:[%s9368_s2 + $0x908] sm:$0xff] %v1561_v45  ;;  %1881 = vmatprep.mubr.f32.mxu0 %v5430_v3  ;;  %3728 = vst.msk [vmem:[%s9368_s2 + $0x928] sm:$0xff] %vm3436_vm3, %v2835_v47  ;;  %v5041_v49 = vpop.f32.mrb[195].mxu1  ;;  %5199 = vmatmul.mubr.msk.f32.gmra.mrb[44].mxu1 %vm258_vm2, %v173_v46 }
 0x274   :  { %5201 = vmatprep.mubr.msk.f32.mxu1 %vm5431_vm0, %v5430_v3 }
 0x275   :  { %v1565_v48 = vpop.f32.mrb[194].mxu0 }
 0x276   :  { %3726 = vst [vmem:[%s9368_s2 + $0x918] sm:$0xff] %v1565_v48  ;;  %v1567_v50 = vpop.f32.mrb[195].mxu0  ;;  %4243 = vmatmul.mubr.msk.f32.gmra.mrb[44].mxu0 %vm258_vm2, %v173_v46  ;;  %v2840_v52 = vpop.f32.mrb[196].mxu1  ;;  %v186_v48 = vld [vmem:[%s9366_s0 + $0x518] sm:$0xff] }
 0x277   :  { %3727 = vst [vmem:[%s9368_s2 + $0x920] sm:$0xff] %v1567_v50  ;;  %1887 = vmatprep.mubr.f32.mxu0 %v5430_v3  ;;  %3731 = vst.msk [vmem:[%s9368_s2 + $0x940] sm:$0xff] %vm3436_vm3, %v2840_v52  ;;  %v5044_v54 = vpop.f32.mrb[197].mxu1  ;;  %5202 = vmatmul.mubr.msk.f32.gmra.mrb[46].mxu1 %vm258_vm2, %v174_v51 }
 0x278   :  { %5204 = vmatprep.mubr.msk.f32.mxu1 %vm5431_vm0, %v5430_v3 }
 0x279   :  { %v1571_v53 = vpop.f32.mrb[196].mxu0 }
 0x27a   :  { %3729 = vst [vmem:[%s9368_s2 + $0x930] sm:$0xff] %v1571_v53  ;;  %v1573_v55 = vpop.f32.mrb[197].mxu0  ;;  %4244 = vmatmul.mubr.msk.f32.gmra.mrb[46].mxu0 %vm258_vm2, %v174_v51  ;;  %v2845_v57 = vpop.f32.mrb[198].mxu1  ;;  %v187_v53 = vld [vmem:[%s9366_s0 + $0x520] sm:$0xff] }
 0x27b   :  { %3730 = vst [vmem:[%s9368_s2 + $0x938] sm:$0xff] %v1573_v55  ;;  %1893 = vmatprep.mubr.f32.mxu0 %v5430_v3  ;;  %3734 = vst.msk [vmem:[%s9368_s2 + $0x958] sm:$0xff] %vm3436_vm3, %v2845_v57  ;;  %v5047_v59 = vpop.f32.mrb[199].mxu1  ;;  %5205 = vmatmul.mubr.msk.f32.gmra.mrb[48].mxu1 %vm258_vm2, %v175_v56 }
 0x27c   :  { %5207 = vmatprep.mubr.msk.f32.mxu1 %vm5431_vm0, %v5430_v3 }
 0x27d   :  { %v1577_v58 = vpop.f32.mrb[198].mxu0 }
 0x27e   :  { %3732 = vst [vmem:[%s9368_s2 + $0x948] sm:$0xff] %v1577_v58  ;;  %v1579_v60 = vpop.f32.mrb[199].mxu0  ;;  %4245 = vmatmul.mubr.msk.f32.gmra.mrb[48].mxu0 %vm258_vm2, %v175_v56  ;;  %v2850_v62 = vpop.f32.mrb[200].mxu1  ;;  %v188_v58 = vld [vmem:[%s9366_s0 + $0x528] sm:$0xff] }
 0x27f   :  { %3733 = vst [vmem:[%s9368_s2 + $0x950] sm:$0xff] %v1579_v60  ;;  %1899 = vmatprep.mubr.f32.mxu0 %v5430_v3  ;;  %3737 = vst.msk [vmem:[%s9368_s2 + $0x970] sm:$0xff] %vm3436_vm3, %v2850_v62  ;;  %v5050_v0 = vpop.f32.mrb[201].mxu1  ;;  %5208 = vmatmul.mubr.msk.f32.gmra.mrb[50].mxu1 %vm258_vm2, %v176_v61 }
 0x280   :  { %5210 = vmatprep.mubr.msk.f32.mxu1 %vm5431_vm0, %v5430_v3 }
 0x281   :  { %v1583_v63 = vpop.f32.mrb[200].mxu0 }
 0x282   :  { %3735 = vst [vmem:[%s9368_s2 + $0x960] sm:$0xff] %v1583_v63  ;;  %v1585_v1 = vpop.f32.mrb[201].mxu0  ;;  %4246 = vmatmul.mubr.msk.f32.gmra.mrb[50].mxu0 %vm258_vm2, %v176_v61  ;;  %v2855_v4 = vpop.f32.mrb[202].mxu1  ;;  %v189_v63 = vld [vmem:[%s9366_s0 + $0x530] sm:$0xff] }
 0x283   :  { %3736 = vst [vmem:[%s9368_s2 + $0x968] sm:$0xff] %v1585_v1  ;;  %1905 = vmatprep.mubr.f32.mxu0 %v5430_v3  ;;  %3740 = vst.msk [vmem:[%s9368_s2 + $0x988] sm:$0xff] %vm3436_vm3, %v2855_v4  ;;  %v5053_v6 = vpop.f32.mrb[203].mxu1  ;;  %5211 = vmatmul.mubr.msk.f32.gmra.mrb[52].mxu1 %vm258_vm2, %v177_v2 }
 0x284   :  { %5213 = vmatprep.mubr.msk.f32.mxu1 %vm5431_vm0, %v5430_v3 }
 0x285   :  { %v1589_v5 = vpop.f32.mrb[202].mxu0 }
 0x286   :  { %3738 = vst [vmem:[%s9368_s2 + $0x978] sm:$0xff] %v1589_v5  ;;  %v1591_v7 = vpop.f32.mrb[203].mxu0  ;;  %4247 = vmatmul.mubr.msk.f32.gmra.mrb[52].mxu0 %vm258_vm2, %v177_v2  ;;  %v2860_v9 = vpop.f32.mrb[204].mxu1  ;;  %v190_v5 = vld [vmem:[%s9366_s0 + $0x538] sm:$0xff] }
 0x287   :  { %3739 = vst [vmem:[%s9368_s2 + $0x980] sm:$0xff] %v1591_v7  ;;  %1911 = vmatprep.mubr.f32.mxu0 %v5430_v3  ;;  %3743 = vst.msk [vmem:[%s9368_s2 + $0x9a0] sm:$0xff] %vm3436_vm3, %v2860_v9  ;;  %v5056_v11 = vpop.f32.mrb[205].mxu1  ;;  %5214 = vmatmul.mubr.msk.f32.gmra.mrb[54].mxu1 %vm258_vm2, %v178_v8 }
 0x288   :  { %5216 = vmatprep.mubr.msk.f32.mxu1 %vm5431_vm0, %v5430_v3 }
 0x289   :  { %v1595_v10 = vpop.f32.mrb[204].mxu0 }
 0x28a   :  { %3741 = vst [vmem:[%s9368_s2 + $0x990] sm:$0xff] %v1595_v10  ;;  %v1597_v12 = vpop.f32.mrb[205].mxu0  ;;  %4248 = vmatmul.mubr.msk.f32.gmra.mrb[54].mxu0 %vm258_vm2, %v178_v8  ;;  %v2865_v14 = vpop.f32.mrb[206].mxu1  ;;  %v191_v10 = vld [vmem:[%s9366_s0 + $0x540] sm:$0xff] }
 0x28b   :  { %3742 = vst [vmem:[%s9368_s2 + $0x998] sm:$0xff] %v1597_v12  ;;  %1917 = vmatprep.mubr.f32.mxu0 %v5430_v3  ;;  %3746 = vst.msk [vmem:[%s9368_s2 + $0x9b8] sm:$0xff] %vm3436_vm3, %v2865_v14  ;;  %v5059_v16 = vpop.f32.mrb[207].mxu1  ;;  %5217 = vmatmul.mubr.msk.f32.gmra.mrb[56].mxu1 %vm258_vm2, %v179_v13 }
 0x28c   :  { %5219 = vmatprep.mubr.msk.f32.mxu1 %vm5431_vm0, %v5430_v3 }
 0x28d   :  { %v1601_v15 = vpop.f32.mrb[206].mxu0 }
 0x28e   :  { %3744 = vst [vmem:[%s9368_s2 + $0x9a8] sm:$0xff] %v1601_v15  ;;  %v1603_v17 = vpop.f32.mrb[207].mxu0  ;;  %4249 = vmatmul.mubr.msk.f32.gmra.mrb[56].mxu0 %vm258_vm2, %v179_v13  ;;  %v2870_v19 = vpop.f32.mrb[208].mxu1  ;;  %v192_v15 = vld [vmem:[%s9366_s0 + $0x548] sm:$0xff] }
 0x28f   :  { %3745 = vst [vmem:[%s9368_s2 + $0x9b0] sm:$0xff] %v1603_v17  ;;  %1923 = vmatprep.mubr.f32.mxu0 %v5430_v3  ;;  %3749 = vst.msk [vmem:[%s9368_s2 + $0x9d0] sm:$0xff] %vm3436_vm3, %v2870_v19  ;;  %v5062_v21 = vpop.f32.mrb[209].mxu1  ;;  %5220 = vmatmul.mubr.msk.f32.gmra.mrb[58].mxu1 %vm258_vm2, %v180_v18 }
 0x290   :  { %5222 = vmatprep.mubr.msk.f32.mxu1 %vm5431_vm0, %v5430_v3 }
 0x291   :  { %v1607_v20 = vpop.f32.mrb[208].mxu0 }
 0x292   :  { %3747 = vst [vmem:[%s9368_s2 + $0x9c0] sm:$0xff] %v1607_v20  ;;  %v1609_v22 = vpop.f32.mrb[209].mxu0  ;;  %4250 = vmatmul.mubr.msk.f32.gmra.mrb[58].mxu0 %vm258_vm2, %v180_v18  ;;  %v2875_v24 = vpop.f32.mrb[210].mxu1  ;;  %v193_v20 = vld [vmem:[%s9366_s0 + $0x550] sm:$0xff] }
 0x293   :  { %3748 = vst [vmem:[%s9368_s2 + $0x9c8] sm:$0xff] %v1609_v22  ;;  %1929 = vmatprep.mubr.f32.mxu0 %v5430_v3  ;;  %3752 = vst.msk [vmem:[%s9368_s2 + $0x9e8] sm:$0xff] %vm3436_vm3, %v2875_v24  ;;  %v5065_v26 = vpop.f32.mrb[211].mxu1  ;;  %5223 = vmatmul.mubr.msk.f32.gmra.mrb[60].mxu1 %vm258_vm2, %v181_v23 }
 0x294   :  { %5225 = vmatprep.mubr.msk.f32.mxu1 %vm5431_vm0, %v5430_v3 }
 0x295   :  { %v1613_v25 = vpop.f32.mrb[210].mxu0 }
 0x296   :  { %3750 = vst [vmem:[%s9368_s2 + $0x9d8] sm:$0xff] %v1613_v25  ;;  %v1615_v27 = vpop.f32.mrb[211].mxu0  ;;  %4251 = vmatmul.mubr.msk.f32.gmra.mrb[60].mxu0 %vm258_vm2, %v181_v23  ;;  %v2880_v29 = vpop.f32.mrb[212].mxu1  ;;  %v194_v25 = vld [vmem:[%s9366_s0 + $0x558] sm:$0xff] }
 0x297   :  { %3751 = vst [vmem:[%s9368_s2 + $0x9e0] sm:$0xff] %v1615_v27  ;;  %1935 = vmatprep.mubr.f32.mxu0 %v5430_v3  ;;  %3755 = vst.msk [vmem:[%s9368_s2 + $0xa00] sm:$0xff] %vm3436_vm3, %v2880_v29  ;;  %v5068_v31 = vpop.f32.mrb[213].mxu1  ;;  %5226 = vmatmul.mubr.msk.f32.gmra.mrb[62].mxu1 %vm258_vm2, %v182_v28 }
 0x298   :  { %5228 = vmatprep.mubr.msk.f32.mxu1 %vm5431_vm0, %v5430_v3 }
 0x299   :  { %v1619_v30 = vpop.f32.mrb[212].mxu0 }
 0x29a   :  { %3753 = vst [vmem:[%s9368_s2 + $0x9f0] sm:$0xff] %v1619_v30  ;;  %v1621_v32 = vpop.f32.mrb[213].mxu0  ;;  %4252 = vmatmul.mubr.msk.f32.gmra.mrb[62].mxu0 %vm258_vm2, %v182_v28  ;;  %v2885_v34 = vpop.f32.mrb[214].mxu1  ;;  %v195_v30 = vld [vmem:[%s9366_s0 + $0x560] sm:$0xff] }
 0x29b   :  { %3754 = vst [vmem:[%s9368_s2 + $0x9f8] sm:$0xff] %v1621_v32  ;;  %1941 = vmatprep.mubr.f32.mxu0 %v5430_v3  ;;  %3758 = vst.msk [vmem:[%s9368_s2 + $0xa18] sm:$0xff] %vm3436_vm3, %v2885_v34  ;;  %v5071_v36 = vpop.f32.mrb[215].mxu1  ;;  %5229 = vmatmul.mubr.msk.f32.gmra.mrb[64].mxu1 %vm258_vm2, %v183_v33 }
 0x29c   :  { %5231 = vmatprep.mubr.msk.f32.mxu1 %vm5431_vm0, %v5430_v3 }
 0x29d   :  { %v1625_v35 = vpop.f32.mrb[214].mxu0 }
 0x29e   :  { %3756 = vst [vmem:[%s9368_s2 + $0xa08] sm:$0xff] %v1625_v35  ;;  %v1627_v37 = vpop.f32.mrb[215].mxu0  ;;  %4253 = vmatmul.mubr.msk.f32.gmra.mrb[64].mxu0 %vm258_vm2, %v183_v33  ;;  %v2890_v39 = vpop.f32.mrb[216].mxu1  ;;  %v196_v35 = vld [vmem:[%s9366_s0 + $0x568] sm:$0xff] }
 0x29f   :  { %3757 = vst [vmem:[%s9368_s2 + $0xa10] sm:$0xff] %v1627_v37  ;;  %1947 = vmatprep.mubr.f32.mxu0 %v5430_v3  ;;  %3761 = vst.msk [vmem:[%s9368_s2 + $0xa30] sm:$0xff] %vm3436_vm3, %v2890_v39  ;;  %v5074_v41 = vpop.f32.mrb[217].mxu1  ;;  %5232 = vmatmul.mubr.msk.f32.gmra.mrb[66].mxu1 %vm258_vm2, %v184_v38 }
 0x2a0   :  { %5234 = vmatprep.mubr.msk.f32.mxu1 %vm5431_vm0, %v5430_v3 }
 0x2a1   :  { %v1631_v40 = vpop.f32.mrb[216].mxu0 }
 0x2a2   :  { %3759 = vst [vmem:[%s9368_s2 + $0xa20] sm:$0xff] %v1631_v40  ;;  %v1633_v42 = vpop.f32.mrb[217].mxu0  ;;  %4254 = vmatmul.mubr.msk.f32.gmra.mrb[66].mxu0 %vm258_vm2, %v184_v38  ;;  %v2895_v44 = vpop.f32.mrb[218].mxu1  ;;  %v197_v40 = vld [vmem:[%s9366_s0 + $0x570] sm:$0xff] }
 0x2a3   :  { %3760 = vst [vmem:[%s9368_s2 + $0xa28] sm:$0xff] %v1633_v42  ;;  %1953 = vmatprep.mubr.f32.mxu0 %v5430_v3  ;;  %3764 = vst.msk [vmem:[%s9368_s2 + $0xa48] sm:$0xff] %vm3436_vm3, %v2895_v44  ;;  %v5077_v46 = vpop.f32.mrb[219].mxu1  ;;  %5235 = vmatmul.mubr.msk.f32.gmra.mrb[68].mxu1 %vm258_vm2, %v185_v43 }
 0x2a4   :  { %5237 = vmatprep.mubr.msk.f32.mxu1 %vm5431_vm0, %v5430_v3 }
 0x2a5   :  { %v1637_v45 = vpop.f32.mrb[218].mxu0 }
 0x2a6   :  { %3762 = vst [vmem:[%s9368_s2 + $0xa38] sm:$0xff] %v1637_v45  ;;  %v1639_v47 = vpop.f32.mrb[219].mxu0  ;;  %4255 = vmatmul.mubr.msk.f32.gmra.mrb[68].mxu0 %vm258_vm2, %v185_v43  ;;  %v2900_v49 = vpop.f32.mrb[220].mxu1  ;;  %v198_v45 = vld [vmem:[%s9366_s0 + $0x578] sm:$0xff] }
 0x2a7   :  { %3763 = vst [vmem:[%s9368_s2 + $0xa40] sm:$0xff] %v1639_v47  ;;  %1959 = vmatprep.mubr.f32.mxu0 %v5430_v3  ;;  %3767 = vst.msk [vmem:[%s9368_s2 + $0xa60] sm:$0xff] %vm3436_vm3, %v2900_v49  ;;  %v5080_v51 = vpop.f32.mrb[221].mxu1  ;;  %5238 = vmatmul.mubr.msk.f32.gmra.mrb[70].mxu1 %vm258_vm2, %v186_v48 }
 0x2a8   :  { %5240 = vmatprep.mubr.msk.f32.mxu1 %vm5431_vm0, %v5430_v3 }
 0x2a9   :  { %v1643_v50 = vpop.f32.mrb[220].mxu0 }
 0x2aa   :  { %3765 = vst [vmem:[%s9368_s2 + $0xa50] sm:$0xff] %v1643_v50  ;;  %v1645_v52 = vpop.f32.mrb[221].mxu0  ;;  %4256 = vmatmul.mubr.msk.f32.gmra.mrb[70].mxu0 %vm258_vm2, %v186_v48  ;;  %v2905_v54 = vpop.f32.mrb[222].mxu1  ;;  %v199_v50 = vld [vmem:[%s9366_s0 + $0x580] sm:$0xff] }
 0x2ab   :  { %3766 = vst [vmem:[%s9368_s2 + $0xa58] sm:$0xff] %v1645_v52  ;;  %1965 = vmatprep.mubr.f32.mxu0 %v5430_v3  ;;  %3770 = vst.msk [vmem:[%s9368_s2 + $0xa78] sm:$0xff] %vm3436_vm3, %v2905_v54  ;;  %v5083_v56 = vpop.f32.mrb[223].mxu1  ;;  %5241 = vmatmul.mubr.msk.f32.gmra.mrb[72].mxu1 %vm258_vm2, %v187_v53 }
 0x2ac   :  { %5243 = vmatprep.mubr.msk.f32.mxu1 %vm5431_vm0, %v5430_v3 }
 0x2ad   :  { %v1649_v55 = vpop.f32.mrb[222].mxu0 }
 0x2ae   :  { %3768 = vst [vmem:[%s9368_s2 + $0xa68] sm:$0xff] %v1649_v55  ;;  %v1651_v57 = vpop.f32.mrb[223].mxu0  ;;  %4257 = vmatmul.mubr.msk.f32.gmra.mrb[72].mxu0 %vm258_vm2, %v187_v53  ;;  %v2910_v59 = vpop.f32.mrb[224].mxu1  ;;  %v200_v55 = vld [vmem:[%s9366_s0 + $0x588] sm:$0xff] }
 0x2af   :  { %3769 = vst [vmem:[%s9368_s2 + $0xa70] sm:$0xff] %v1651_v57  ;;  %1971 = vmatprep.mubr.f32.mxu0 %v5430_v3  ;;  %3773 = vst.msk [vmem:[%s9368_s2 + $0xa90] sm:$0xff] %vm3436_vm3, %v2910_v59  ;;  %v5086_v61 = vpop.f32.mrb[225].mxu1  ;;  %5244 = vmatmul.mubr.msk.f32.gmra.mrb[74].mxu1 %vm258_vm2, %v188_v58 }
 0x2b0   :  { %5246 = vmatprep.mubr.msk.f32.mxu1 %vm5431_vm0, %v5430_v3 }
 0x2b1   :  { %v1655_v60 = vpop.f32.mrb[224].mxu0 }
 0x2b2   :  { %3771 = vst [vmem:[%s9368_s2 + $0xa80] sm:$0xff] %v1655_v60  ;;  %v1657_v62 = vpop.f32.mrb[225].mxu0  ;;  %4258 = vmatmul.mubr.msk.f32.gmra.mrb[74].mxu0 %vm258_vm2, %v188_v58  ;;  %v2915_v0 = vpop.f32.mrb[226].mxu1  ;;  %v201_v60 = vld [vmem:[%s9366_s0 + $0x590] sm:$0xff] }
 0x2b3   :  { %3772 = vst [vmem:[%s9368_s2 + $0xa88] sm:$0xff] %v1657_v62  ;;  %1977 = vmatprep.mubr.f32.mxu0 %v5430_v3  ;;  %3776 = vst.msk [vmem:[%s9368_s2 + $0xaa8] sm:$0xff] %vm3436_vm3, %v2915_v0  ;;  %v5089_v2 = vpop.f32.mrb[227].mxu1  ;;  %5247 = vmatmul.mubr.msk.f32.gmra.mrb[76].mxu1 %vm258_vm2, %v189_v63 }
 0x2b4   :  { %5249 = vmatprep.mubr.msk.f32.mxu1 %vm5431_vm0, %v5430_v3 }
 0x2b5   :  { %v1661_v1 = vpop.f32.mrb[226].mxu0 }
 0x2b6   :  { %3774 = vst [vmem:[%s9368_s2 + $0xa98] sm:$0xff] %v1661_v1  ;;  %v1663_v4 = vpop.f32.mrb[227].mxu0  ;;  %4259 = vmatmul.mubr.msk.f32.gmra.mrb[76].mxu0 %vm258_vm2, %v189_v63  ;;  %v2920_v6 = vpop.f32.mrb[228].mxu1  ;;  %v202_v1 = vld [vmem:[%s9366_s0 + $0x598] sm:$0xff] }
 0x2b7   :  { %3775 = vst [vmem:[%s9368_s2 + $0xaa0] sm:$0xff] %v1663_v4  ;;  %1983 = vmatprep.mubr.f32.mxu0 %v5430_v3  ;;  %3779 = vst.msk [vmem:[%s9368_s2 + $0xac0] sm:$0xff] %vm3436_vm3, %v2920_v6  ;;  %v5092_v8 = vpop.f32.mrb[229].mxu1  ;;  %5250 = vmatmul.mubr.msk.f32.gmra.mrb[78].mxu1 %vm258_vm2, %v190_v5 }
 0x2b8   :  { %5252 = vmatprep.mubr.msk.f32.mxu1 %vm5431_vm0, %v5430_v3 }
 0x2b9   :  { %v1667_v7 = vpop.f32.mrb[228].mxu0 }
 0x2ba   :  { %3777 = vst [vmem:[%s9368_s2 + $0xab0] sm:$0xff] %v1667_v7  ;;  %v1669_v9 = vpop.f32.mrb[229].mxu0  ;;  %4260 = vmatmul.mubr.msk.f32.gmra.mrb[78].mxu0 %vm258_vm2, %v190_v5  ;;  %v2925_v11 = vpop.f32.mrb[230].mxu1  ;;  %v203_v7 = vld [vmem:[%s9366_s0 + $0x5a0] sm:$0xff] }
 0x2bb   :  { %3778 = vst [vmem:[%s9368_s2 + $0xab8] sm:$0xff] %v1669_v9  ;;  %1989 = vmatprep.mubr.f32.mxu0 %v5430_v3  ;;  %3782 = vst.msk [vmem:[%s9368_s2 + $0xad8] sm:$0xff] %vm3436_vm3, %v2925_v11  ;;  %v5095_v13 = vpop.f32.mrb[231].mxu1  ;;  %5253 = vmatmul.mubr.msk.f32.gmra.mrb[80].mxu1 %vm258_vm2, %v191_v10 }
 0x2bc   :  { %5255 = vmatprep.mubr.msk.f32.mxu1 %vm5431_vm0, %v5430_v3 }
 0x2bd   :  { %v1673_v12 = vpop.f32.mrb[230].mxu0 }
 0x2be   :  { %3780 = vst [vmem:[%s9368_s2 + $0xac8] sm:$0xff] %v1673_v12  ;;  %v1675_v14 = vpop.f32.mrb[231].mxu0  ;;  %4261 = vmatmul.mubr.msk.f32.gmra.mrb[80].mxu0 %vm258_vm2, %v191_v10  ;;  %v2930_v16 = vpop.f32.mrb[232].mxu1  ;;  %v204_v12 = vld [vmem:[%s9366_s0 + $0x5a8] sm:$0xff] }
 0x2bf   :  { %3781 = vst [vmem:[%s9368_s2 + $0xad0] sm:$0xff] %v1675_v14  ;;  %1995 = vmatprep.mubr.f32.mxu0 %v5430_v3  ;;  %3785 = vst.msk [vmem:[%s9368_s2 + $0xaf0] sm:$0xff] %vm3436_vm3, %v2930_v16  ;;  %v5098_v18 = vpop.f32.mrb[233].mxu1  ;;  %5256 = vmatmul.mubr.msk.f32.gmra.mrb[82].mxu1 %vm258_vm2, %v192_v15 }
 0x2c0   :  { %5258 = vmatprep.mubr.msk.f32.mxu1 %vm5431_vm0, %v5430_v3 }
 0x2c1   :  { %v1679_v17 = vpop.f32.mrb[232].mxu0 }
 0x2c2   :  { %3783 = vst [vmem:[%s9368_s2 + $0xae0] sm:$0xff] %v1679_v17  ;;  %v1681_v19 = vpop.f32.mrb[233].mxu0  ;;  %4262 = vmatmul.mubr.msk.f32.gmra.mrb[82].mxu0 %vm258_vm2, %v192_v15  ;;  %v2935_v21 = vpop.f32.mrb[234].mxu1  ;;  %v205_v17 = vld [vmem:[%s9366_s0 + $0x5b0] sm:$0xff] }
 0x2c3   :  { %3784 = vst [vmem:[%s9368_s2 + $0xae8] sm:$0xff] %v1681_v19  ;;  %2001 = vmatprep.mubr.f32.mxu0 %v5430_v3  ;;  %3788 = vst.msk [vmem:[%s9368_s2 + $0xb08] sm:$0xff] %vm3436_vm3, %v2935_v21  ;;  %v5101_v23 = vpop.f32.mrb[235].mxu1  ;;  %5259 = vmatmul.mubr.msk.f32.gmra.mrb[84].mxu1 %vm258_vm2, %v193_v20 }
 0x2c4   :  { %5261 = vmatprep.mubr.msk.f32.mxu1 %vm5431_vm0, %v5430_v3 }
 0x2c5   :  { %v1685_v22 = vpop.f32.mrb[234].mxu0 }
 0x2c6   :  { %3786 = vst [vmem:[%s9368_s2 + $0xaf8] sm:$0xff] %v1685_v22  ;;  %v1687_v24 = vpop.f32.mrb[235].mxu0  ;;  %4263 = vmatmul.mubr.msk.f32.gmra.mrb[84].mxu0 %vm258_vm2, %v193_v20  ;;  %v2940_v26 = vpop.f32.mrb[236].mxu1  ;;  %v206_v22 = vld [vmem:[%s9366_s0 + $0x5b8] sm:$0xff] }
 0x2c7   :  { %3787 = vst [vmem:[%s9368_s2 + $0xb00] sm:$0xff] %v1687_v24  ;;  %2007 = vmatprep.mubr.f32.mxu0 %v5430_v3  ;;  %3791 = vst.msk [vmem:[%s9368_s2 + $0xb20] sm:$0xff] %vm3436_vm3, %v2940_v26  ;;  %v5104_v28 = vpop.f32.mrb[237].mxu1  ;;  %5262 = vmatmul.mubr.msk.f32.gmra.mrb[86].mxu1 %vm258_vm2, %v194_v25 }
 0x2c8   :  { %5264 = vmatprep.mubr.msk.f32.mxu1 %vm5431_vm0, %v5430_v3 }
 0x2c9   :  { %v1691_v27 = vpop.f32.mrb[236].mxu0 }
 0x2ca   :  { %3789 = vst [vmem:[%s9368_s2 + $0xb10] sm:$0xff] %v1691_v27  ;;  %v1693_v29 = vpop.f32.mrb[237].mxu0  ;;  %4264 = vmatmul.mubr.msk.f32.gmra.mrb[86].mxu0 %vm258_vm2, %v194_v25  ;;  %v2945_v31 = vpop.f32.mrb[238].mxu1  ;;  %v207_v27 = vld [vmem:[%s9366_s0 + $0x5c0] sm:$0xff] }
 0x2cb   :  { %3790 = vst [vmem:[%s9368_s2 + $0xb18] sm:$0xff] %v1693_v29  ;;  %2013 = vmatprep.mubr.f32.mxu0 %v5430_v3  ;;  %3794 = vst.msk [vmem:[%s9368_s2 + $0xb38] sm:$0xff] %vm3436_vm3, %v2945_v31  ;;  %v5107_v33 = vpop.f32.mrb[239].mxu1  ;;  %5265 = vmatmul.mubr.msk.f32.gmra.mrb[88].mxu1 %vm258_vm2, %v195_v30 }
 0x2cc   :  { %5267 = vmatprep.mubr.msk.f32.mxu1 %vm5431_vm0, %v5430_v3 }
 0x2cd   :  { %v1697_v32 = vpop.f32.mrb[238].mxu0 }
 0x2ce   :  { %3792 = vst [vmem:[%s9368_s2 + $0xb28] sm:$0xff] %v1697_v32  ;;  %v1699_v34 = vpop.f32.mrb[239].mxu0  ;;  %4265 = vmatmul.mubr.msk.f32.gmra.mrb[88].mxu0 %vm258_vm2, %v195_v30  ;;  %v2950_v36 = vpop.f32.mrb[240].mxu1  ;;  %v208_v32 = vld [vmem:[%s9366_s0 + $0x5c8] sm:$0xff] }
 0x2cf   :  { %3793 = vst [vmem:[%s9368_s2 + $0xb30] sm:$0xff] %v1699_v34  ;;  %2019 = vmatprep.mubr.f32.mxu0 %v5430_v3  ;;  %3797 = vst.msk [vmem:[%s9368_s2 + $0xb50] sm:$0xff] %vm3436_vm3, %v2950_v36  ;;  %v5110_v38 = vpop.f32.mrb[241].mxu1  ;;  %5268 = vmatmul.mubr.msk.f32.gmra.mrb[90].mxu1 %vm258_vm2, %v196_v35 }
 0x2d0   :  { %5270 = vmatprep.mubr.msk.f32.mxu1 %vm5431_vm0, %v5430_v3 }
 0x2d1   :  { %v1703_v37 = vpop.f32.mrb[240].mxu0 }
 0x2d2   :  { %3795 = vst [vmem:[%s9368_s2 + $0xb40] sm:$0xff] %v1703_v37  ;;  %v1705_v39 = vpop.f32.mrb[241].mxu0  ;;  %4266 = vmatmul.mubr.msk.f32.gmra.mrb[90].mxu0 %vm258_vm2, %v196_v35  ;;  %v2955_v41 = vpop.f32.mrb[242].mxu1  ;;  %v209_v37 = vld [vmem:[%s9366_s0 + $0x5d0] sm:$0xff] }
 0x2d3   :  { %3796 = vst [vmem:[%s9368_s2 + $0xb48] sm:$0xff] %v1705_v39  ;;  %2025 = vmatprep.mubr.f32.mxu0 %v5430_v3  ;;  %3800 = vst.msk [vmem:[%s9368_s2 + $0xb68] sm:$0xff] %vm3436_vm3, %v2955_v41  ;;  %v5113_v43 = vpop.f32.mrb[243].mxu1  ;;  %5271 = vmatmul.mubr.msk.f32.gmra.mrb[92].mxu1 %vm258_vm2, %v197_v40 }
 0x2d4   :  { %5273 = vmatprep.mubr.msk.f32.mxu1 %vm5431_vm0, %v5430_v3 }
 0x2d5   :  { %v1709_v42 = vpop.f32.mrb[242].mxu0 }
 0x2d6   :  { %3798 = vst [vmem:[%s9368_s2 + $0xb58] sm:$0xff] %v1709_v42  ;;  %v1711_v44 = vpop.f32.mrb[243].mxu0  ;;  %4267 = vmatmul.mubr.msk.f32.gmra.mrb[92].mxu0 %vm258_vm2, %v197_v40  ;;  %v2960_v46 = vpop.f32.mrb[244].mxu1  ;;  %v210_v42 = vld [vmem:[%s9366_s0 + $0x5d8] sm:$0xff] }
 0x2d7   :  { %3799 = vst [vmem:[%s9368_s2 + $0xb60] sm:$0xff] %v1711_v44  ;;  %2031 = vmatprep.mubr.f32.mxu0 %v5430_v3  ;;  %3803 = vst.msk [vmem:[%s9368_s2 + $0xb80] sm:$0xff] %vm3436_vm3, %v2960_v46  ;;  %v5116_v48 = vpop.f32.mrb[245].mxu1  ;;  %5274 = vmatmul.mubr.msk.f32.gmra.mrb[94].mxu1 %vm258_vm2, %v198_v45 }
 0x2d8   :  { %5276 = vmatprep.mubr.msk.f32.mxu1 %vm5431_vm0, %v5430_v3 }
 0x2d9   :  { %v1715_v47 = vpop.f32.mrb[244].mxu0 }
 0x2da   :  { %3801 = vst [vmem:[%s9368_s2 + $0xb70] sm:$0xff] %v1715_v47  ;;  %v1717_v49 = vpop.f32.mrb[245].mxu0  ;;  %4268 = vmatmul.mubr.msk.f32.gmra.mrb[94].mxu0 %vm258_vm2, %v198_v45  ;;  %v2965_v51 = vpop.f32.mrb[246].mxu1  ;;  %v211_v47 = vld [vmem:[%s9366_s0 + $0x5e0] sm:$0xff] }
 0x2db   :  { %3802 = vst [vmem:[%s9368_s2 + $0xb78] sm:$0xff] %v1717_v49  ;;  %2037 = vmatprep.mubr.f32.mxu0 %v5430_v3  ;;  %3806 = vst.msk [vmem:[%s9368_s2 + $0xb98] sm:$0xff] %vm3436_vm3, %v2965_v51  ;;  %v5119_v53 = vpop.f32.mrb[247].mxu1  ;;  %5277 = vmatmul.mubr.msk.f32.gmra.mrb[96].mxu1 %vm258_vm2, %v199_v50 }
 0x2dc   :  { %5279 = vmatprep.mubr.msk.f32.mxu1 %vm5431_vm0, %v5430_v3 }
 0x2dd   :  { %v1721_v52 = vpop.f32.mrb[246].mxu0 }
 0x2de   :  { %3804 = vst [vmem:[%s9368_s2 + $0xb88] sm:$0xff] %v1721_v52  ;;  %v1723_v54 = vpop.f32.mrb[247].mxu0  ;;  %4269 = vmatmul.mubr.msk.f32.gmra.mrb[96].mxu0 %vm258_vm2, %v199_v50  ;;  %v2970_v56 = vpop.f32.mrb[248].mxu1  ;;  %v212_v52 = vld [vmem:[%s9366_s0 + $0x5e8] sm:$0xff] }
 0x2df   :  { %3805 = vst [vmem:[%s9368_s2 + $0xb90] sm:$0xff] %v1723_v54  ;;  %2043 = vmatprep.mubr.f32.mxu0 %v5430_v3  ;;  %3809 = vst.msk [vmem:[%s9368_s2 + $0xbb0] sm:$0xff] %vm3436_vm3, %v2970_v56  ;;  %v5122_v58 = vpop.f32.mrb[249].mxu1  ;;  %5280 = vmatmul.mubr.msk.f32.gmra.mrb[98].mxu1 %vm258_vm2, %v200_v55 }
 0x2e0   :  { %5282 = vmatprep.mubr.msk.f32.mxu1 %vm5431_vm0, %v5430_v3 }
 0x2e1   :  { %v1727_v57 = vpop.f32.mrb[248].mxu0 }
 0x2e2   :  { %3807 = vst [vmem:[%s9368_s2 + $0xba0] sm:$0xff] %v1727_v57  ;;  %v1729_v59 = vpop.f32.mrb[249].mxu0  ;;  %4270 = vmatmul.mubr.msk.f32.gmra.mrb[98].mxu0 %vm258_vm2, %v200_v55  ;;  %v2975_v61 = vpop.f32.mrb[250].mxu1  ;;  %v213_v57 = vld [vmem:[%s9366_s0 + $0x5f0] sm:$0xff] }
 0x2e3   :  { %3808 = vst [vmem:[%s9368_s2 + $0xba8] sm:$0xff] %v1729_v59  ;;  %2049 = vmatprep.mubr.f32.mxu0 %v5430_v3  ;;  %3812 = vst.msk [vmem:[%s9368_s2 + $0xbc8] sm:$0xff] %vm3436_vm3, %v2975_v61  ;;  %v5125_v63 = vpop.f32.mrb[251].mxu1  ;;  %5283 = vmatmul.mubr.msk.f32.gmra.mrb[100].mxu1 %vm258_vm2, %v201_v60 }
 0x2e4   :  { %5285 = vmatprep.mubr.msk.f32.mxu1 %vm5431_vm0, %v5430_v3 }
 0x2e5   :  { %v1733_v62 = vpop.f32.mrb[250].mxu0 }
 0x2e6   :  { %3810 = vst [vmem:[%s9368_s2 + $0xbb8] sm:$0xff] %v1733_v62  ;;  %v1735_v0 = vpop.f32.mrb[251].mxu0  ;;  %4271 = vmatmul.mubr.msk.f32.gmra.mrb[100].mxu0 %vm258_vm2, %v201_v60  ;;  %v2980_v2 = vpop.f32.mrb[252].mxu1  ;;  %v214_v62 = vld [vmem:[%s9366_s0 + $0x5f8] sm:$0xff] }
 0x2e7   :  { %3811 = vst [vmem:[%s9368_s2 + $0xbc0] sm:$0xff] %v1735_v0  ;;  %2055 = vmatprep.mubr.f32.mxu0 %v5430_v3  ;;  %3815 = vst.msk [vmem:[%s9368_s2 + $0xbe0] sm:$0xff] %vm3436_vm3, %v2980_v2  ;;  %v5128_v5 = vpop.f32.mrb[253].mxu1  ;;  %5286 = vmatmul.mubr.msk.f32.gmra.mrb[102].mxu1 %vm258_vm2, %v202_v1 }
 0x2e8   :  { %5288 = vmatprep.mubr.msk.f32.mxu1 %vm5431_vm0, %v5430_v3 }
 0x2e9   :  { %v1739_v4 = vpop.f32.mrb[252].mxu0 }
 0x2ea   :  { %3813 = vst [vmem:[%s9368_s2 + $0xbd0] sm:$0xff] %v1739_v4  ;;  %v1741_v6 = vpop.f32.mrb[253].mxu0  ;;  %4272 = vmatmul.mubr.msk.f32.gmra.mrb[102].mxu0 %vm258_vm2, %v202_v1  ;;  %v2985_v8 = vpop.f32.mrb[254].mxu1  ;;  %v215_v4 = vld [vmem:[%s9366_s0 + $0x600] sm:$0xff] }
 0x2eb   :  { %3814 = vst [vmem:[%s9368_s2 + $0xbd8] sm:$0xff] %v1741_v6  ;;  %2061 = vmatprep.mubr.f32.mxu0 %v5430_v3  ;;  %3818 = vst.msk [vmem:[%s9368_s2 + $0xbf8] sm:$0xff] %vm3436_vm3, %v2985_v8  ;;  %v5131_v10 = vpop.f32.mrb[255].mxu1  ;;  %5289 = vmatmul.mubr.msk.f32.gmra.mrb[104].mxu1 %vm258_vm2, %v203_v7 }
 0x2ec   :  { %5291 = vmatprep.mubr.msk.f32.mxu1 %vm5431_vm0, %v5430_v3 }
 0x2ed   :  { %v1745_v9 = vpop.f32.mrb[254].mxu0 }
 0x2ee   :  { %3816 = vst [vmem:[%s9368_s2 + $0xbe8] sm:$0xff] %v1745_v9  ;;  %v1747_v11 = vpop.f32.mrb[255].mxu0  ;;  %4273 = vmatmul.mubr.msk.f32.gmra.mrb[104].mxu0 %vm258_vm2, %v203_v7  ;;  %v2990_v13 = vpop.f32.mrb[0].mxu1  ;;  %v216_v9 = vld [vmem:[%s9366_s0 + $0x608] sm:$0xff] }
 0x2ef   :  { %3817 = vst [vmem:[%s9368_s2 + $0xbf0] sm:$0xff] %v1747_v11  ;;  %2067 = vmatprep.mubr.f32.mxu0 %v5430_v3  ;;  %3821 = vst.msk [vmem:[%s9368_s2 + $0xc10] sm:$0xff] %vm3436_vm3, %v2990_v13  ;;  %v5134_v15 = vpop.f32.mrb[1].mxu1  ;;  %5292 = vmatmul.mubr.msk.f32.gmra.mrb[106].mxu1 %vm258_vm2, %v204_v12 }
 0x2f0   :  { %5294 = vmatprep.mubr.msk.f32.mxu1 %vm5431_vm0, %v5430_v3 }
 0x2f1   :  { %v1751_v14 = vpop.f32.mrb[0].mxu0 }
 0x2f2   :  { %3819 = vst [vmem:[%s9368_s2 + $0xc00] sm:$0xff] %v1751_v14  ;;  %v1753_v16 = vpop.f32.mrb[1].mxu0  ;;  %4274 = vmatmul.mubr.msk.f32.gmra.mrb[106].mxu0 %vm258_vm2, %v204_v12  ;;  %v2995_v18 = vpop.f32.mrb[2].mxu1  ;;  %v217_v14 = vld [vmem:[%s9366_s0 + $0x610] sm:$0xff] }
 0x2f3   :  { %3820 = vst [vmem:[%s9368_s2 + $0xc08] sm:$0xff] %v1753_v16  ;;  %2073 = vmatprep.mubr.f32.mxu0 %v5430_v3  ;;  %3824 = vst.msk [vmem:[%s9368_s2 + $0xc28] sm:$0xff] %vm3436_vm3, %v2995_v18  ;;  %v5137_v20 = vpop.f32.mrb[3].mxu1  ;;  %5295 = vmatmul.mubr.msk.f32.gmra.mrb[108].mxu1 %vm258_vm2, %v205_v17 }
 0x2f4   :  { %5297 = vmatprep.mubr.msk.f32.mxu1 %vm5431_vm0, %v5430_v3 }
 0x2f5   :  { %v1757_v19 = vpop.f32.mrb[2].mxu0 }
 0x2f6   :  { %3822 = vst [vmem:[%s9368_s2 + $0xc18] sm:$0xff] %v1757_v19  ;;  %v1759_v21 = vpop.f32.mrb[3].mxu0  ;;  %4275 = vmatmul.mubr.msk.f32.gmra.mrb[108].mxu0 %vm258_vm2, %v205_v17  ;;  %v3000_v23 = vpop.f32.mrb[4].mxu1  ;;  %v218_v19 = vld [vmem:[%s9366_s0 + $0x618] sm:$0xff] }
 0x2f7   :  { %3823 = vst [vmem:[%s9368_s2 + $0xc20] sm:$0xff] %v1759_v21  ;;  %2079 = vmatprep.mubr.f32.mxu0 %v5430_v3  ;;  %3827 = vst.msk [vmem:[%s9368_s2 + $0xc40] sm:$0xff] %vm3436_vm3, %v3000_v23  ;;  %v5140_v25 = vpop.f32.mrb[5].mxu1  ;;  %5298 = vmatmul.mubr.msk.f32.gmra.mrb[110].mxu1 %vm258_vm2, %v206_v22 }
 0x2f8   :  { %5300 = vmatprep.mubr.msk.f32.mxu1 %vm5431_vm0, %v5430_v3 }
 0x2f9   :  { %v1763_v24 = vpop.f32.mrb[4].mxu0 }
 0x2fa   :  { %3825 = vst [vmem:[%s9368_s2 + $0xc30] sm:$0xff] %v1763_v24  ;;  %v1765_v26 = vpop.f32.mrb[5].mxu0  ;;  %4276 = vmatmul.mubr.msk.f32.gmra.mrb[110].mxu0 %vm258_vm2, %v206_v22  ;;  %v3005_v28 = vpop.f32.mrb[6].mxu1  ;;  %v219_v24 = vld [vmem:[%s9366_s0 + $0x620] sm:$0xff] }
 0x2fb   :  { %3826 = vst [vmem:[%s9368_s2 + $0xc38] sm:$0xff] %v1765_v26  ;;  %2085 = vmatprep.mubr.f32.mxu0 %v5430_v3  ;;  %3830 = vst.msk [vmem:[%s9368_s2 + $0xc58] sm:$0xff] %vm3436_vm3, %v3005_v28  ;;  %v5143_v30 = vpop.f32.mrb[7].mxu1  ;;  %5301 = vmatmul.mubr.msk.f32.gmra.mrb[112].mxu1 %vm258_vm2, %v207_v27 }
 0x2fc   :  { %5303 = vmatprep.mubr.msk.f32.mxu1 %vm5431_vm0, %v5430_v3 }
 0x2fd   :  { %v1769_v29 = vpop.f32.mrb[6].mxu0 }
 0x2fe   :  { %3828 = vst [vmem:[%s9368_s2 + $0xc48] sm:$0xff] %v1769_v29  ;;  %v1771_v31 = vpop.f32.mrb[7].mxu0  ;;  %4277 = vmatmul.mubr.msk.f32.gmra.mrb[112].mxu0 %vm258_vm2, %v207_v27  ;;  %v3010_v33 = vpop.f32.mrb[8].mxu1  ;;  %v220_v29 = vld [vmem:[%s9366_s0 + $0x628] sm:$0xff] }
 0x2ff   :  { %3829 = vst [vmem:[%s9368_s2 + $0xc50] sm:$0xff] %v1771_v31  ;;  %2091 = vmatprep.mubr.f32.mxu0 %v5430_v3  ;;  %3833 = vst.msk [vmem:[%s9368_s2 + $0xc70] sm:$0xff] %vm3436_vm3, %v3010_v33  ;;  %v5146_v35 = vpop.f32.mrb[9].mxu1  ;;  %5304 = vmatmul.mubr.msk.f32.gmra.mrb[114].mxu1 %vm258_vm2, %v208_v32 }
 0x300   :  { %5306 = vmatprep.mubr.msk.f32.mxu1 %vm5431_vm0, %v5430_v3 }
 0x301   :  { %v1775_v34 = vpop.f32.mrb[8].mxu0 }
 0x302   :  { %3831 = vst [vmem:[%s9368_s2 + $0xc60] sm:$0xff] %v1775_v34  ;;  %v1777_v36 = vpop.f32.mrb[9].mxu0  ;;  %4278 = vmatmul.mubr.msk.f32.gmra.mrb[114].mxu0 %vm258_vm2, %v208_v32  ;;  %v3015_v38 = vpop.f32.mrb[10].mxu1  ;;  %v221_v34 = vld [vmem:[%s9366_s0 + $0x630] sm:$0xff] }
 0x303   :  { %3832 = vst [vmem:[%s9368_s2 + $0xc68] sm:$0xff] %v1777_v36  ;;  %2097 = vmatprep.mubr.f32.mxu0 %v5430_v3  ;;  %3836 = vst.msk [vmem:[%s9368_s2 + $0xc88] sm:$0xff] %vm3436_vm3, %v3015_v38  ;;  %v5149_v40 = vpop.f32.mrb[11].mxu1  ;;  %5307 = vmatmul.mubr.msk.f32.gmra.mrb[116].mxu1 %vm258_vm2, %v209_v37 }
 0x304   :  { %5309 = vmatprep.mubr.msk.f32.mxu1 %vm5431_vm0, %v5430_v3 }
 0x305   :  { %v1781_v39 = vpop.f32.mrb[10].mxu0 }
 0x306   :  { %3834 = vst [vmem:[%s9368_s2 + $0xc78] sm:$0xff] %v1781_v39  ;;  %v1783_v41 = vpop.f32.mrb[11].mxu0  ;;  %4279 = vmatmul.mubr.msk.f32.gmra.mrb[116].mxu0 %vm258_vm2, %v209_v37  ;;  %v3020_v43 = vpop.f32.mrb[12].mxu1  ;;  %v222_v39 = vld [vmem:[%s9366_s0 + $0x638] sm:$0xff] }
 0x307   :  { %3835 = vst [vmem:[%s9368_s2 + $0xc80] sm:$0xff] %v1783_v41  ;;  %2103 = vmatprep.mubr.f32.mxu0 %v5430_v3  ;;  %3839 = vst.msk [vmem:[%s9368_s2 + $0xca0] sm:$0xff] %vm3436_vm3, %v3020_v43  ;;  %v5152_v45 = vpop.f32.mrb[13].mxu1  ;;  %5310 = vmatmul.mubr.msk.f32.gmra.mrb[118].mxu1 %vm258_vm2, %v210_v42 }
 0x308   :  { %5312 = vmatprep.mubr.msk.f32.mxu1 %vm5431_vm0, %v5430_v3 }
 0x309   :  { %v1787_v44 = vpop.f32.mrb[12].mxu0 }
 0x30a   :  { %3837 = vst [vmem:[%s9368_s2 + $0xc90] sm:$0xff] %v1787_v44  ;;  %v1789_v46 = vpop.f32.mrb[13].mxu0  ;;  %4280 = vmatmul.mubr.msk.f32.gmra.mrb[118].mxu0 %vm258_vm2, %v210_v42  ;;  %v3025_v48 = vpop.f32.mrb[14].mxu1  ;;  %v223_v44 = vld [vmem:[%s9366_s0 + $0x640] sm:$0xff] }
 0x30b   :  { %3838 = vst [vmem:[%s9368_s2 + $0xc98] sm:$0xff] %v1789_v46  ;;  %2109 = vmatprep.mubr.f32.mxu0 %v5430_v3  ;;  %3842 = vst.msk [vmem:[%s9368_s2 + $0xcb8] sm:$0xff] %vm3436_vm3, %v3025_v48  ;;  %v5155_v50 = vpop.f32.mrb[15].mxu1  ;;  %5313 = vmatmul.mubr.msk.f32.gmra.mrb[120].mxu1 %vm258_vm2, %v211_v47 }
 0x30c   :  { %5315 = vmatprep.mubr.msk.f32.mxu1 %vm5431_vm0, %v5430_v3 }
 0x30d   :  { %v1793_v49 = vpop.f32.mrb[14].mxu0 }
 0x30e   :  { %3840 = vst [vmem:[%s9368_s2 + $0xca8] sm:$0xff] %v1793_v49  ;;  %v1795_v51 = vpop.f32.mrb[15].mxu0  ;;  %4281 = vmatmul.mubr.msk.f32.gmra.mrb[120].mxu0 %vm258_vm2, %v211_v47  ;;  %v3030_v53 = vpop.f32.mrb[16].mxu1  ;;  %v224_v49 = vld [vmem:[%s9366_s0 + $0x648] sm:$0xff] }
 0x30f   :  { %3841 = vst [vmem:[%s9368_s2 + $0xcb0] sm:$0xff] %v1795_v51  ;;  %2115 = vmatprep.mubr.f32.mxu0 %v5430_v3  ;;  %3845 = vst.msk [vmem:[%s9368_s2 + $0xcd0] sm:$0xff] %vm3436_vm3, %v3030_v53  ;;  %v5158_v55 = vpop.f32.mrb[17].mxu1  ;;  %5316 = vmatmul.mubr.msk.f32.gmra.mrb[122].mxu1 %vm258_vm2, %v212_v52 }
 0x310   :  { %5318 = vmatprep.mubr.msk.f32.mxu1 %vm5431_vm0, %v5430_v3 }
 0x311   :  { %v1799_v54 = vpop.f32.mrb[16].mxu0 }
 0x312   :  { %3843 = vst [vmem:[%s9368_s2 + $0xcc0] sm:$0xff] %v1799_v54  ;;  %v1801_v56 = vpop.f32.mrb[17].mxu0  ;;  %4282 = vmatmul.mubr.msk.f32.gmra.mrb[122].mxu0 %vm258_vm2, %v212_v52  ;;  %v3035_v58 = vpop.f32.mrb[18].mxu1  ;;  %v225_v54 = vld [vmem:[%s9366_s0 + $0x650] sm:$0xff] }
 0x313   :  { %3844 = vst [vmem:[%s9368_s2 + $0xcc8] sm:$0xff] %v1801_v56  ;;  %2121 = vmatprep.mubr.f32.mxu0 %v5430_v3  ;;  %3848 = vst.msk [vmem:[%s9368_s2 + $0xce8] sm:$0xff] %vm3436_vm3, %v3035_v58  ;;  %v5161_v60 = vpop.f32.mrb[19].mxu1  ;;  %5319 = vmatmul.mubr.msk.f32.gmra.mrb[124].mxu1 %vm258_vm2, %v213_v57 }
 0x314   :  { %5321 = vmatprep.mubr.msk.f32.mxu1 %vm5431_vm0, %v5430_v3 }
 0x315   :  { %v1805_v59 = vpop.f32.mrb[18].mxu0 }
 0x316   :  { %3846 = vst [vmem:[%s9368_s2 + $0xcd8] sm:$0xff] %v1805_v59  ;;  %v1807_v61 = vpop.f32.mrb[19].mxu0  ;;  %4283 = vmatmul.mubr.msk.f32.gmra.mrb[124].mxu0 %vm258_vm2, %v213_v57  ;;  %v3040_v63 = vpop.f32.mrb[20].mxu1  ;;  %v226_v59 = vld [vmem:[%s9366_s0 + $0x658] sm:$0xff] }
 0x317   :  { %3847 = vst [vmem:[%s9368_s2 + $0xce0] sm:$0xff] %v1807_v61  ;;  %2127 = vmatprep.mubr.f32.mxu0 %v5430_v3  ;;  %3851 = vst.msk [vmem:[%s9368_s2 + $0xd00] sm:$0xff] %vm3436_vm3, %v3040_v63  ;;  %v5164_v1 = vpop.f32.mrb[21].mxu1  ;;  %5322 = vmatmul.mubr.msk.f32.gmra.mrb[126].mxu1 %vm258_vm2, %v214_v62 }
 0x318   :  { %5324 = vmatprep.mubr.msk.f32.mxu1 %vm5431_vm0, %v5430_v3 }
 0x319   :  { %v1811_v0 = vpop.f32.mrb[20].mxu0 }
 0x31a   :  { %3849 = vst [vmem:[%s9368_s2 + $0xcf0] sm:$0xff] %v1811_v0  ;;  %v1813_v2 = vpop.f32.mrb[21].mxu0  ;;  %4284 = vmatmul.mubr.msk.f32.gmra.mrb[126].mxu0 %vm258_vm2, %v214_v62  ;;  %v3045_v5 = vpop.f32.mrb[22].mxu1  ;;  %v227_v0 = vld [vmem:[%s9366_s0 + $0x660] sm:$0xff] }
 0x31b   :  { %3850 = vst [vmem:[%s9368_s2 + $0xcf8] sm:$0xff] %v1813_v2  ;;  %2133 = vmatprep.mubr.f32.mxu0 %v5430_v3  ;;  %3854 = vst.msk [vmem:[%s9368_s2 + $0xd18] sm:$0xff] %vm3436_vm3, %v3045_v5  ;;  %v5167_v7 = vpop.f32.mrb[23].mxu1  ;;  %5325 = vmatmul.mubr.msk.f32.gmra.mrb[128].mxu1 %vm258_vm2, %v215_v4 }
 0x31c   :  { %5327 = vmatprep.mubr.msk.f32.mxu1 %vm5431_vm0, %v5430_v3 }
 0x31d   :  { %v1817_v6 = vpop.f32.mrb[22].mxu0 }
 0x31e   :  { %3852 = vst [vmem:[%s9368_s2 + $0xd08] sm:$0xff] %v1817_v6  ;;  %v1819_v8 = vpop.f32.mrb[23].mxu0  ;;  %4285 = vmatmul.mubr.msk.f32.gmra.mrb[128].mxu0 %vm258_vm2, %v215_v4  ;;  %v3050_v10 = vpop.f32.mrb[24].mxu1  ;;  %v228_v6 = vld [vmem:[%s9366_s0 + $0x668] sm:$0xff] }
 0x31f   :  { %3853 = vst [vmem:[%s9368_s2 + $0xd10] sm:$0xff] %v1819_v8  ;;  %2139 = vmatprep.mubr.f32.mxu0 %v5430_v3  ;;  %3857 = vst.msk [vmem:[%s9368_s2 + $0xd30] sm:$0xff] %vm3436_vm3, %v3050_v10  ;;  %v5170_v12 = vpop.f32.mrb[25].mxu1  ;;  %5328 = vmatmul.mubr.msk.f32.gmra.mrb[130].mxu1 %vm258_vm2, %v216_v9 }
 0x320   :  { %5330 = vmatprep.mubr.msk.f32.mxu1 %vm5431_vm0, %v5430_v3 }
 0x321   :  { %v1823_v11 = vpop.f32.mrb[24].mxu0 }
 0x322   :  { %3855 = vst [vmem:[%s9368_s2 + $0xd20] sm:$0xff] %v1823_v11  ;;  %v1825_v13 = vpop.f32.mrb[25].mxu0  ;;  %4286 = vmatmul.mubr.msk.f32.gmra.mrb[130].mxu0 %vm258_vm2, %v216_v9  ;;  %v3055_v15 = vpop.f32.mrb[26].mxu1  ;;  %v229_v11 = vld [vmem:[%s9366_s0 + $0x670] sm:$0xff] }
 0x323   :  { %3856 = vst [vmem:[%s9368_s2 + $0xd28] sm:$0xff] %v1825_v13  ;;  %2145 = vmatprep.mubr.f32.mxu0 %v5430_v3  ;;  %3860 = vst.msk [vmem:[%s9368_s2 + $0xd48] sm:$0xff] %vm3436_vm3, %v3055_v15  ;;  %v5173_v17 = vpop.f32.mrb[27].mxu1  ;;  %5331 = vmatmul.mubr.msk.f32.gmra.mrb[132].mxu1 %vm258_vm2, %v217_v14 }
 0x324   :  { %5333 = vmatprep.mubr.msk.f32.mxu1 %vm5431_vm0, %v5430_v3 }
 0x325   :  { %v1829_v16 = vpop.f32.mrb[26].mxu0 }
 0x326   :  { %3858 = vst [vmem:[%s9368_s2 + $0xd38] sm:$0xff] %v1829_v16  ;;  %v1831_v18 = vpop.f32.mrb[27].mxu0  ;;  %4287 = vmatmul.mubr.msk.f32.gmra.mrb[132].mxu0 %vm258_vm2, %v217_v14  ;;  %v3060_v20 = vpop.f32.mrb[28].mxu1  ;;  %v230_v16 = vld [vmem:[%s9366_s0 + $0x678] sm:$0xff] }
 0x327   :  { %3859 = vst [vmem:[%s9368_s2 + $0xd40] sm:$0xff] %v1831_v18  ;;  %2151 = vmatprep.mubr.f32.mxu0 %v5430_v3  ;;  %3863 = vst.msk [vmem:[%s9368_s2 + $0xd60] sm:$0xff] %vm3436_vm3, %v3060_v20  ;;  %v5176_v22 = vpop.f32.mrb[29].mxu1  ;;  %5334 = vmatmul.mubr.msk.f32.gmra.mrb[134].mxu1 %vm258_vm2, %v218_v19 }
 0x328   :  { %5336 = vmatprep.mubr.msk.f32.mxu1 %vm5431_vm0, %v5430_v3 }
 0x329   :  { %v1835_v21 = vpop.f32.mrb[28].mxu0 }
 0x32a   :  { %3861 = vst [vmem:[%s9368_s2 + $0xd50] sm:$0xff] %v1835_v21  ;;  %v1837_v23 = vpop.f32.mrb[29].mxu0  ;;  %4288 = vmatmul.mubr.msk.f32.gmra.mrb[134].mxu0 %vm258_vm2, %v218_v19  ;;  %v3065_v25 = vpop.f32.mrb[30].mxu1  ;;  %v231_v21 = vld [vmem:[%s9366_s0 + $0x680] sm:$0xff] }
 0x32b   :  { %3862 = vst [vmem:[%s9368_s2 + $0xd58] sm:$0xff] %v1837_v23  ;;  %2157 = vmatprep.mubr.f32.mxu0 %v5430_v3  ;;  %3866 = vst.msk [vmem:[%s9368_s2 + $0xd78] sm:$0xff] %vm3436_vm3, %v3065_v25  ;;  %v5179_v27 = vpop.f32.mrb[31].mxu1  ;;  %5337 = vmatmul.mubr.msk.f32.gmra.mrb[136].mxu1 %vm258_vm2, %v219_v24 }
 0x32c   :  { %5339 = vmatprep.mubr.msk.f32.mxu1 %vm5431_vm0, %v5430_v3 }
 0x32d   :  { %v1841_v26 = vpop.f32.mrb[30].mxu0 }
 0x32e   :  { %3864 = vst [vmem:[%s9368_s2 + $0xd68] sm:$0xff] %v1841_v26  ;;  %v1843_v28 = vpop.f32.mrb[31].mxu0  ;;  %4289 = vmatmul.mubr.msk.f32.gmra.mrb[136].mxu0 %vm258_vm2, %v219_v24  ;;  %v3070_v30 = vpop.f32.mrb[32].mxu1  ;;  %v232_v26 = vld [vmem:[%s9366_s0 + $0x688] sm:$0xff] }
 0x32f   :  { %3865 = vst [vmem:[%s9368_s2 + $0xd70] sm:$0xff] %v1843_v28  ;;  %2163 = vmatprep.mubr.f32.mxu0 %v5430_v3  ;;  %3869 = vst.msk [vmem:[%s9368_s2 + $0xd90] sm:$0xff] %vm3436_vm3, %v3070_v30  ;;  %v5182_v32 = vpop.f32.mrb[33].mxu1  ;;  %5340 = vmatmul.mubr.msk.f32.gmra.mrb[138].mxu1 %vm258_vm2, %v220_v29 }
 0x330   :  { %5342 = vmatprep.mubr.msk.f32.mxu1 %vm5431_vm0, %v5430_v3 }
 0x331   :  { %v1847_v31 = vpop.f32.mrb[32].mxu0 }
 0x332   :  { %3867 = vst [vmem:[%s9368_s2 + $0xd80] sm:$0xff] %v1847_v31  ;;  %v1849_v33 = vpop.f32.mrb[33].mxu0  ;;  %4290 = vmatmul.mubr.msk.f32.gmra.mrb[138].mxu0 %vm258_vm2, %v220_v29  ;;  %v3075_v35 = vpop.f32.mrb[34].mxu1  ;;  %v233_v31 = vld [vmem:[%s9366_s0 + $0x690] sm:$0xff] }
 0x333   :  { %3868 = vst [vmem:[%s9368_s2 + $0xd88] sm:$0xff] %v1849_v33  ;;  %2169 = vmatprep.mubr.f32.mxu0 %v5430_v3  ;;  %3872 = vst.msk [vmem:[%s9368_s2 + $0xda8] sm:$0xff] %vm3436_vm3, %v3075_v35  ;;  %v5185_v37 = vpop.f32.mrb[35].mxu1  ;;  %5343 = vmatmul.mubr.msk.f32.gmra.mrb[140].mxu1 %vm258_vm2, %v221_v34 }
 0x334   :  { %5345 = vmatprep.mubr.msk.f32.mxu1 %vm5431_vm0, %v5430_v3 }
 0x335   :  { %v1853_v36 = vpop.f32.mrb[34].mxu0 }
 0x336   :  { %3870 = vst [vmem:[%s9368_s2 + $0xd98] sm:$0xff] %v1853_v36  ;;  %v1855_v38 = vpop.f32.mrb[35].mxu0  ;;  %4291 = vmatmul.mubr.msk.f32.gmra.mrb[140].mxu0 %vm258_vm2, %v221_v34  ;;  %v3080_v40 = vpop.f32.mrb[36].mxu1  ;;  %v234_v36 = vld [vmem:[%s9366_s0 + $0x698] sm:$0xff] }
 0x337   :  { %3871 = vst [vmem:[%s9368_s2 + $0xda0] sm:$0xff] %v1855_v38  ;;  %2175 = vmatprep.mubr.f32.mxu0 %v5430_v3  ;;  %3875 = vst.msk [vmem:[%s9368_s2 + $0xdc0] sm:$0xff] %vm3436_vm3, %v3080_v40  ;;  %v5188_v42 = vpop.f32.mrb[37].mxu1  ;;  %5346 = vmatmul.mubr.msk.f32.gmra.mrb[142].mxu1 %vm258_vm2, %v222_v39 }
 0x338   :  { %5348 = vmatprep.mubr.msk.f32.mxu1 %vm5431_vm0, %v5430_v3 }
 0x339   :  { %v1859_v41 = vpop.f32.mrb[36].mxu0 }
 0x33a   :  { %3873 = vst [vmem:[%s9368_s2 + $0xdb0] sm:$0xff] %v1859_v41  ;;  %v1861_v43 = vpop.f32.mrb[37].mxu0  ;;  %4292 = vmatmul.mubr.msk.f32.gmra.mrb[142].mxu0 %vm258_vm2, %v222_v39  ;;  %v3085_v45 = vpop.f32.mrb[38].mxu1  ;;  %v235_v41 = vld [vmem:[%s9366_s0 + $0x6a0] sm:$0xff] }
 0x33b   :  { %3874 = vst [vmem:[%s9368_s2 + $0xdb8] sm:$0xff] %v1861_v43  ;;  %2181 = vmatprep.mubr.f32.mxu0 %v5430_v3  ;;  %3878 = vst.msk [vmem:[%s9368_s2 + $0xdd8] sm:$0xff] %vm3436_vm3, %v3085_v45  ;;  %v5191_v47 = vpop.f32.mrb[39].mxu1  ;;  %5349 = vmatmul.mubr.msk.f32.gmra.mrb[144].mxu1 %vm258_vm2, %v223_v44 }
 0x33c   :  { %5351 = vmatprep.mubr.msk.f32.mxu1 %vm5431_vm0, %v5430_v3 }
 0x33d   :  { %v1865_v46 = vpop.f32.mrb[38].mxu0 }
 0x33e   :  { %3876 = vst [vmem:[%s9368_s2 + $0xdc8] sm:$0xff] %v1865_v46  ;;  %v1867_v48 = vpop.f32.mrb[39].mxu0  ;;  %4293 = vmatmul.mubr.msk.f32.gmra.mrb[144].mxu0 %vm258_vm2, %v223_v44  ;;  %v3090_v50 = vpop.f32.mrb[40].mxu1  ;;  %v236_v46 = vld [vmem:[%s9366_s0 + $0x6a8] sm:$0xff] }
 0x33f   :  { %3877 = vst [vmem:[%s9368_s2 + $0xdd0] sm:$0xff] %v1867_v48  ;;  %2187 = vmatprep.mubr.f32.mxu0 %v5430_v3  ;;  %3881 = vst.msk [vmem:[%s9368_s2 + $0xdf0] sm:$0xff] %vm3436_vm3, %v3090_v50  ;;  %v5194_v52 = vpop.f32.mrb[41].mxu1  ;;  %5352 = vmatmul.mubr.msk.f32.gmra.mrb[146].mxu1 %vm258_vm2, %v224_v49 }
 0x340   :  { %5354 = vmatprep.mubr.msk.f32.mxu1 %vm5431_vm0, %v5430_v3 }
 0x341   :  { %v1871_v51 = vpop.f32.mrb[40].mxu0 }
 0x342   :  { %3879 = vst [vmem:[%s9368_s2 + $0xde0] sm:$0xff] %v1871_v51  ;;  %v1873_v53 = vpop.f32.mrb[41].mxu0  ;;  %4294 = vmatmul.mubr.msk.f32.gmra.mrb[146].mxu0 %vm258_vm2, %v224_v49  ;;  %v3095_v55 = vpop.f32.mrb[42].mxu1  ;;  %v237_v51 = vld [vmem:[%s9366_s0 + $0x6b0] sm:$0xff] }
 0x343   :  { %3880 = vst [vmem:[%s9368_s2 + $0xde8] sm:$0xff] %v1873_v53  ;;  %2193 = vmatprep.mubr.f32.mxu0 %v5430_v3  ;;  %3884 = vst.msk [vmem:[%s9368_s2 + $0xe08] sm:$0xff] %vm3436_vm3, %v3095_v55  ;;  %v5197_v57 = vpop.f32.mrb[43].mxu1  ;;  %5355 = vmatmul.mubr.msk.f32.gmra.mrb[148].mxu1 %vm258_vm2, %v225_v54 }
 0x344   :  { %5357 = vmatprep.mubr.msk.f32.mxu1 %vm5431_vm0, %v5430_v3 }
 0x345   :  { %v1877_v56 = vpop.f32.mrb[42].mxu0 }
 0x346   :  { %3882 = vst [vmem:[%s9368_s2 + $0xdf8] sm:$0xff] %v1877_v56  ;;  %v1879_v58 = vpop.f32.mrb[43].mxu0  ;;  %4295 = vmatmul.mubr.msk.f32.gmra.mrb[148].mxu0 %vm258_vm2, %v225_v54  ;;  %v3100_v60 = vpop.f32.mrb[44].mxu1  ;;  %v238_v56 = vld [vmem:[%s9366_s0 + $0x6b8] sm:$0xff] }
 0x347   :  { %3883 = vst [vmem:[%s9368_s2 + $0xe00] sm:$0xff] %v1879_v58  ;;  %2199 = vmatprep.mubr.f32.mxu0 %v5430_v3  ;;  %3887 = vst.msk [vmem:[%s9368_s2 + $0xe20] sm:$0xff] %vm3436_vm3, %v3100_v60  ;;  %v5200_v62 = vpop.f32.mrb[45].mxu1  ;;  %5358 = vmatmul.mubr.msk.f32.gmra.mrb[150].mxu1 %vm258_vm2, %v226_v59 }
 0x348   :  { %5360 = vmatprep.mubr.msk.f32.mxu1 %vm5431_vm0, %v5430_v3 }
 0x349   :  { %v1883_v61 = vpop.f32.mrb[44].mxu0 }
 0x34a   :  { %3885 = vst [vmem:[%s9368_s2 + $0xe10] sm:$0xff] %v1883_v61  ;;  %v1885_v63 = vpop.f32.mrb[45].mxu0  ;;  %4296 = vmatmul.mubr.msk.f32.gmra.mrb[150].mxu0 %vm258_vm2, %v226_v59  ;;  %v3105_v1 = vpop.f32.mrb[46].mxu1  ;;  %v239_v61 = vld [vmem:[%s9366_s0 + $0x6c0] sm:$0xff] }
 0x34b   :  { %3886 = vst [vmem:[%s9368_s2 + $0xe18] sm:$0xff] %v1885_v63  ;;  %2205 = vmatprep.mubr.f32.mxu0 %v5430_v3  ;;  %3890 = vst.msk [vmem:[%s9368_s2 + $0xe38] sm:$0xff] %vm3436_vm3, %v3105_v1  ;;  %v5203_v4 = vpop.f32.mrb[47].mxu1  ;;  %5361 = vmatmul.mubr.msk.f32.gmra.mrb[152].mxu1 %vm258_vm2, %v227_v0 }
 0x34c   :  { %5363 = vmatprep.mubr.msk.f32.mxu1 %vm5431_vm0, %v5430_v3 }
 0x34d   :  { %v1889_v2 = vpop.f32.mrb[46].mxu0 }
 0x34e   :  { %3888 = vst [vmem:[%s9368_s2 + $0xe28] sm:$0xff] %v1889_v2  ;;  %v1891_v5 = vpop.f32.mrb[47].mxu0  ;;  %4297 = vmatmul.mubr.msk.f32.gmra.mrb[152].mxu0 %vm258_vm2, %v227_v0  ;;  %v3110_v7 = vpop.f32.mrb[48].mxu1 }
 0x34f   :  { %3889 = vst [vmem:[%s9368_s2 + $0xe30] sm:$0xff] %v1891_v5  ;;  %2211 = vmatprep.mubr.f32.mxu0 %v5430_v3  ;;  %3893 = vst.msk [vmem:[%s9368_s2 + $0xe50] sm:$0xff] %vm3436_vm3, %v3110_v7  ;;  %v5206_v9 = vpop.f32.mrb[49].mxu1  ;;  %5364 = vmatmul.mubr.msk.f32.gmra.mrb[154].mxu1 %vm258_vm2, %v228_v6 }
 0x350   :  { %5366 = vmatprep.mubr.msk.f32.mxu1 %vm5431_vm0, %v5430_v3 }
 0x351   :  { %v1895_v8 = vpop.f32.mrb[48].mxu0 }
 0x352   :  { %3891 = vst [vmem:[%s9368_s2 + $0xe40] sm:$0xff] %v1895_v8  ;;  %v1897_v10 = vpop.f32.mrb[49].mxu0  ;;  %4298 = vmatmul.mubr.msk.f32.gmra.mrb[154].mxu0 %vm258_vm2, %v228_v6  ;;  %v3115_v12 = vpop.f32.mrb[50].mxu1 }
 0x353   :  { %3892 = vst [vmem:[%s9368_s2 + $0xe48] sm:$0xff] %v1897_v10  ;;  %2217 = vmatprep.mubr.f32.mxu0 %v5430_v3  ;;  %3896 = vst.msk [vmem:[%s9368_s2 + $0xe68] sm:$0xff] %vm3436_vm3, %v3115_v12  ;;  %v5209_v14 = vpop.f32.mrb[51].mxu1  ;;  %5367 = vmatmul.mubr.msk.f32.gmra.mrb[156].mxu1 %vm258_vm2, %v229_v11 }
 0x354   :  { %5369 = vmatprep.mubr.msk.f32.mxu1 %vm5431_vm0, %v5430_v3 }
 0x355   :  { %v1901_v13 = vpop.f32.mrb[50].mxu0 }
 0x356   :  { %3894 = vst [vmem:[%s9368_s2 + $0xe58] sm:$0xff] %v1901_v13  ;;  %v1903_v15 = vpop.f32.mrb[51].mxu0  ;;  %4299 = vmatmul.mubr.msk.f32.gmra.mrb[156].mxu0 %vm258_vm2, %v229_v11  ;;  %v3120_v17 = vpop.f32.mrb[52].mxu1 }
 0x357   :  { %3895 = vst [vmem:[%s9368_s2 + $0xe60] sm:$0xff] %v1903_v15  ;;  %2223 = vmatprep.mubr.f32.mxu0 %v5430_v3  ;;  %3899 = vst.msk [vmem:[%s9368_s2 + $0xe80] sm:$0xff] %vm3436_vm3, %v3120_v17  ;;  %v5212_v19 = vpop.f32.mrb[53].mxu1  ;;  %5370 = vmatmul.mubr.msk.f32.gmra.mrb[158].mxu1 %vm258_vm2, %v230_v16 }
 0x358   :  { %5372 = vmatprep.mubr.msk.f32.mxu1 %vm5431_vm0, %v5430_v3 }
 0x359   :  { %v1907_v18 = vpop.f32.mrb[52].mxu0 }
 0x35a   :  { %3897 = vst [vmem:[%s9368_s2 + $0xe70] sm:$0xff] %v1907_v18  ;;  %v1909_v20 = vpop.f32.mrb[53].mxu0  ;;  %4300 = vmatmul.mubr.msk.f32.gmra.mrb[158].mxu0 %vm258_vm2, %v230_v16  ;;  %v3125_v22 = vpop.f32.mrb[54].mxu1 }
 0x35b   :  { %3898 = vst [vmem:[%s9368_s2 + $0xe78] sm:$0xff] %v1909_v20  ;;  %2229 = vmatprep.mubr.f32.mxu0 %v5430_v3  ;;  %3902 = vst.msk [vmem:[%s9368_s2 + $0xe98] sm:$0xff] %vm3436_vm3, %v3125_v22  ;;  %v5215_v24 = vpop.f32.mrb[55].mxu1  ;;  %5373 = vmatmul.mubr.msk.f32.gmra.mrb[160].mxu1 %vm258_vm2, %v231_v21 }
 0x35c   :  { %5375 = vmatprep.mubr.msk.f32.mxu1 %vm5431_vm0, %v5430_v3 }
 0x35d   :  { %v1913_v23 = vpop.f32.mrb[54].mxu0 }
 0x35e   :  { %3900 = vst [vmem:[%s9368_s2 + $0xe88] sm:$0xff] %v1913_v23  ;;  %v1915_v25 = vpop.f32.mrb[55].mxu0  ;;  %4301 = vmatmul.mubr.msk.f32.gmra.mrb[160].mxu0 %vm258_vm2, %v231_v21  ;;  %v3130_v27 = vpop.f32.mrb[56].mxu1 }
 0x35f   :  { %3901 = vst [vmem:[%s9368_s2 + $0xe90] sm:$0xff] %v1915_v25  ;;  %2235 = vmatprep.mubr.f32.mxu0 %v5430_v3  ;;  %3905 = vst.msk [vmem:[%s9368_s2 + $0xeb0] sm:$0xff] %vm3436_vm3, %v3130_v27  ;;  %v5218_v29 = vpop.f32.mrb[57].mxu1  ;;  %5376 = vmatmul.mubr.msk.f32.gmra.mrb[162].mxu1 %vm258_vm2, %v232_v26 }
 0x360   :  { %5378 = vmatprep.mubr.msk.f32.mxu1 %vm5431_vm0, %v5430_v3 }
 0x361   :  { %v1919_v28 = vpop.f32.mrb[56].mxu0 }
 0x362   :  { %3903 = vst [vmem:[%s9368_s2 + $0xea0] sm:$0xff] %v1919_v28  ;;  %v1921_v30 = vpop.f32.mrb[57].mxu0  ;;  %4302 = vmatmul.mubr.msk.f32.gmra.mrb[162].mxu0 %vm258_vm2, %v232_v26  ;;  %v3135_v32 = vpop.f32.mrb[58].mxu1 }
 0x363   :  { %3904 = vst [vmem:[%s9368_s2 + $0xea8] sm:$0xff] %v1921_v30  ;;  %2241 = vmatprep.mubr.f32.mxu0 %v5430_v3  ;;  %3908 = vst.msk [vmem:[%s9368_s2 + $0xec8] sm:$0xff] %vm3436_vm3, %v3135_v32  ;;  %v5221_v34 = vpop.f32.mrb[59].mxu1  ;;  %5379 = vmatmul.mubr.msk.f32.gmra.mrb[164].mxu1 %vm258_vm2, %v233_v31 }
 0x364   :  { %5381 = vmatprep.mubr.msk.f32.mxu1 %vm5431_vm0, %v5430_v3 }
 0x365   :  { %v1925_v33 = vpop.f32.mrb[58].mxu0 }
 0x366   :  { %3906 = vst [vmem:[%s9368_s2 + $0xeb8] sm:$0xff] %v1925_v33  ;;  %v1927_v35 = vpop.f32.mrb[59].mxu0  ;;  %4303 = vmatmul.mubr.msk.f32.gmra.mrb[164].mxu0 %vm258_vm2, %v233_v31  ;;  %v3140_v37 = vpop.f32.mrb[60].mxu1 }
 0x367   :  { %3907 = vst [vmem:[%s9368_s2 + $0xec0] sm:$0xff] %v1927_v35  ;;  %2247 = vmatprep.mubr.f32.mxu0 %v5430_v3  ;;  %3911 = vst.msk [vmem:[%s9368_s2 + $0xee0] sm:$0xff] %vm3436_vm3, %v3140_v37  ;;  %v5224_v39 = vpop.f32.mrb[61].mxu1  ;;  %5382 = vmatmul.mubr.msk.f32.gmra.mrb[166].mxu1 %vm258_vm2, %v234_v36 }
 0x368   :  { %5384 = vmatprep.mubr.msk.f32.mxu1 %vm5431_vm0, %v5430_v3 }
 0x369   :  { %v1931_v38 = vpop.f32.mrb[60].mxu0 }
 0x36a   :  { %3909 = vst [vmem:[%s9368_s2 + $0xed0] sm:$0xff] %v1931_v38  ;;  %v1933_v40 = vpop.f32.mrb[61].mxu0  ;;  %4304 = vmatmul.mubr.msk.f32.gmra.mrb[166].mxu0 %vm258_vm2, %v234_v36  ;;  %v3145_v42 = vpop.f32.mrb[62].mxu1 }
 0x36b   :  { %3910 = vst [vmem:[%s9368_s2 + $0xed8] sm:$0xff] %v1933_v40  ;;  %2253 = vmatprep.mubr.f32.mxu0 %v5430_v3  ;;  %3914 = vst.msk [vmem:[%s9368_s2 + $0xef8] sm:$0xff] %vm3436_vm3, %v3145_v42  ;;  %v5227_v44 = vpop.f32.mrb[63].mxu1  ;;  %5385 = vmatmul.mubr.msk.f32.gmra.mrb[168].mxu1 %vm258_vm2, %v235_v41 }
 0x36c   :  { %5387 = vmatprep.mubr.msk.f32.mxu1 %vm5431_vm0, %v5430_v3 }
 0x36d   :  { %v1937_v43 = vpop.f32.mrb[62].mxu0 }
 0x36e   :  { %3912 = vst [vmem:[%s9368_s2 + $0xee8] sm:$0xff] %v1937_v43  ;;  %v1939_v45 = vpop.f32.mrb[63].mxu0  ;;  %4305 = vmatmul.mubr.msk.f32.gmra.mrb[168].mxu0 %vm258_vm2, %v235_v41  ;;  %v3150_v47 = vpop.f32.mrb[64].mxu1 }
 0x36f   :  { %3913 = vst [vmem:[%s9368_s2 + $0xef0] sm:$0xff] %v1939_v45  ;;  %2259 = vmatprep.mubr.f32.mxu0 %v5430_v3  ;;  %3917 = vst.msk [vmem:[%s9368_s2 + $0xf10] sm:$0xff] %vm3436_vm3, %v3150_v47  ;;  %v5230_v49 = vpop.f32.mrb[65].mxu1  ;;  %5388 = vmatmul.mubr.msk.f32.gmra.mrb[170].mxu1 %vm258_vm2, %v236_v46 }
 0x370   :  { %5390 = vmatprep.mubr.msk.f32.mxu1 %vm5431_vm0, %v5430_v3 }
 0x371   :  { %v1943_v48 = vpop.f32.mrb[64].mxu0 }
 0x372   :  { %3915 = vst [vmem:[%s9368_s2 + $0xf00] sm:$0xff] %v1943_v48  ;;  %v1945_v50 = vpop.f32.mrb[65].mxu0  ;;  %4306 = vmatmul.mubr.msk.f32.gmra.mrb[170].mxu0 %vm258_vm2, %v236_v46  ;;  %v3155_v52 = vpop.f32.mrb[66].mxu1 }
 0x373   :  { %3916 = vst [vmem:[%s9368_s2 + $0xf08] sm:$0xff] %v1945_v50  ;;  %2265 = vmatprep.mubr.f32.mxu0 %v5430_v3  ;;  %3920 = vst.msk [vmem:[%s9368_s2 + $0xf28] sm:$0xff] %vm3436_vm3, %v3155_v52  ;;  %v5233_v54 = vpop.f32.mrb[67].mxu1  ;;  %5391 = vmatmul.mubr.msk.f32.gmra.mrb[172].mxu1 %vm258_vm2, %v237_v51 }
 0x374   :  { %5393 = vmatprep.mubr.msk.f32.mxu1 %vm5431_vm0, %v5430_v3 }
 0x375   :  { %v1949_v53 = vpop.f32.mrb[66].mxu0 }
 0x376   :  { %3918 = vst [vmem:[%s9368_s2 + $0xf18] sm:$0xff] %v1949_v53  ;;  %v1951_v55 = vpop.f32.mrb[67].mxu0  ;;  %4307 = vmatmul.mubr.msk.f32.gmra.mrb[172].mxu0 %vm258_vm2, %v237_v51  ;;  %v3160_v57 = vpop.f32.mrb[68].mxu1 }
 0x377   :  { %3919 = vst [vmem:[%s9368_s2 + $0xf20] sm:$0xff] %v1951_v55  ;;  %2271 = vmatprep.mubr.f32.mxu0 %v5430_v3  ;;  %3923 = vst.msk [vmem:[%s9368_s2 + $0xf40] sm:$0xff] %vm3436_vm3, %v3160_v57  ;;  %v5236_v59 = vpop.f32.mrb[69].mxu1  ;;  %5394 = vmatmul.mubr.msk.f32.gmra.mrb[174].mxu1 %vm258_vm2, %v238_v56 }
 0x378   :  { %5396 = vmatprep.mubr.msk.f32.mxu1 %vm5431_vm0, %v5430_v3 }
 0x379   :  { %v1955_v58 = vpop.f32.mrb[68].mxu0 }
 0x37a   :  { %3921 = vst [vmem:[%s9368_s2 + $0xf30] sm:$0xff] %v1955_v58  ;;  %v1957_v60 = vpop.f32.mrb[69].mxu0  ;;  %4308 = vmatmul.mubr.msk.f32.gmra.mrb[174].mxu0 %vm258_vm2, %v238_v56  ;;  %v3165_v62 = vpop.f32.mrb[70].mxu1 }
 0x37b   :  { %3922 = vst [vmem:[%s9368_s2 + $0xf38] sm:$0xff] %v1957_v60  ;;  %2277 = vmatprep.mubr.f32.mxu0 %v5430_v3  ;;  %3926 = vst.msk [vmem:[%s9368_s2 + $0xf58] sm:$0xff] %vm3436_vm3, %v3165_v62  ;;  %v5239_v0 = vpop.f32.mrb[71].mxu1  ;;  %5397 = vmatmul.mubr.msk.f32.gmra.mrb[176].mxu1 %vm258_vm2, %v239_v61 }
 0x37d   :  { %v1961_v63 = vpop.f32.mrb[70].mxu0 }
 0x37e   :  { %3924 = vst [vmem:[%s9368_s2 + $0xf48] sm:$0xff] %v1961_v63  ;;  %v1963_v1 = vpop.f32.mrb[71].mxu0  ;;  %4309 = vmatmul.mubr.msk.f32.gmra.mrb[176].mxu0 %vm258_vm2, %v239_v61  ;;  %v3170_v3 = vpop.f32.mrb[72].mxu1 }
 0x37f   :  { %3925 = vst [vmem:[%s9368_s2 + $0xf50] sm:$0xff] %v1963_v1  ;;  %3929 = vst.msk [vmem:[%s9368_s2 + $0xf70] sm:$0xff] %vm3436_vm3, %v3170_v3  ;;  %v5242_v4 = vpop.f32.mrb[73].mxu1 }
 0x381   :  { %v1967_v2 = vpop.f32.mrb[72].mxu0 }
 0x382   :  { %3927 = vst [vmem:[%s9368_s2 + $0xf60] sm:$0xff] %v1967_v2  ;;  %v1969_v5 = vpop.f32.mrb[73].mxu0  ;;  %v3175_v6 = vpop.f32.mrb[74].mxu1 }
 0x383   :  { %3928 = vst [vmem:[%s9368_s2 + $0xf68] sm:$0xff] %v1969_v5  ;;  %3932 = vst.msk [vmem:[%s9368_s2 + $0xf88] sm:$0xff] %vm3436_vm3, %v3175_v6  ;;  %v5245_v8 = vpop.f32.mrb[75].mxu1 }
 0x385   :  { %v1973_v7 = vpop.f32.mrb[74].mxu0 }
 0x386   :  { %3930 = vst [vmem:[%s9368_s2 + $0xf78] sm:$0xff] %v1973_v7  ;;  %v1975_v9 = vpop.f32.mrb[75].mxu0  ;;  %v3180_v10 = vpop.f32.mrb[76].mxu1 }
 0x387   :  { %3931 = vst [vmem:[%s9368_s2 + $0xf80] sm:$0xff] %v1975_v9  ;;  %3935 = vst.msk [vmem:[%s9368_s2 + $0xfa0] sm:$0xff] %vm3436_vm3, %v3180_v10  ;;  %v5248_v12 = vpop.f32.mrb[77].mxu1 }
 0x389   :  { %v1979_v11 = vpop.f32.mrb[76].mxu0 }
 0x38a   :  { %3933 = vst [vmem:[%s9368_s2 + $0xf90] sm:$0xff] %v1979_v11  ;;  %v1981_v13 = vpop.f32.mrb[77].mxu0  ;;  %v3185_v14 = vpop.f32.mrb[78].mxu1 }
 0x38b   :  { %3934 = vst [vmem:[%s9368_s2 + $0xf98] sm:$0xff] %v1981_v13  ;;  %3938 = vst.msk [vmem:[%s9368_s2 + $0xfb8] sm:$0xff] %vm3436_vm3, %v3185_v14  ;;  %v5251_v16 = vpop.f32.mrb[79].mxu1 }
 0x38d   :  { %v1985_v15 = vpop.f32.mrb[78].mxu0 }
 0x38e   :  { %3936 = vst [vmem:[%s9368_s2 + $0xfa8] sm:$0xff] %v1985_v15  ;;  %v1987_v17 = vpop.f32.mrb[79].mxu0  ;;  %v3190_v18 = vpop.f32.mrb[80].mxu1 }
 0x38f   :  { %3937 = vst [vmem:[%s9368_s2 + $0xfb0] sm:$0xff] %v1987_v17  ;;  %3941 = vst.msk [vmem:[%s9368_s2 + $0xfd0] sm:$0xff] %vm3436_vm3, %v3190_v18  ;;  %v5254_v20 = vpop.f32.mrb[81].mxu1 }
 0x391   :  { %v1991_v19 = vpop.f32.mrb[80].mxu0 }
 0x392   :  { %3939 = vst [vmem:[%s9368_s2 + $0xfc0] sm:$0xff] %v1991_v19  ;;  %v1993_v21 = vpop.f32.mrb[81].mxu0  ;;  %v3195_v22 = vpop.f32.mrb[82].mxu1 }
 0x393   :  { %3940 = vst [vmem:[%s9368_s2 + $0xfc8] sm:$0xff] %v1993_v21  ;;  %3944 = vst.msk [vmem:[%s9368_s2 + $0xfe8] sm:$0xff] %vm3436_vm3, %v3195_v22  ;;  %v5257_v24 = vpop.f32.mrb[83].mxu1 }
 0x395   :  { %v1997_v23 = vpop.f32.mrb[82].mxu0 }
 0x396   :  { %3942 = vst [vmem:[%s9368_s2 + $0xfd8] sm:$0xff] %v1997_v23  ;;  %v1999_v25 = vpop.f32.mrb[83].mxu0  ;;  %v3200_v26 = vpop.f32.mrb[84].mxu1 }
 0x397   :  { %3943 = vst [vmem:[%s9368_s2 + $0xfe0] sm:$0xff] %v1999_v25  ;;  %3947 = vst.msk [vmem:[%s9368_s2 + $0x1000] sm:$0xff] %vm3436_vm3, %v3200_v26  ;;  %v5260_v28 = vpop.f32.mrb[85].mxu1 }
 0x399   :  { %v2003_v27 = vpop.f32.mrb[84].mxu0 }
 0x39a   :  { %3945 = vst [vmem:[%s9368_s2 + $0xff0] sm:$0xff] %v2003_v27  ;;  %v2005_v29 = vpop.f32.mrb[85].mxu0  ;;  %v3205_v30 = vpop.f32.mrb[86].mxu1 }
 0x39b   :  { %3946 = vst [vmem:[%s9368_s2 + $0xff8] sm:$0xff] %v2005_v29  ;;  %3950 = vst.msk [vmem:[%s9368_s2 + $0x1018] sm:$0xff] %vm3436_vm3, %v3205_v30  ;;  %v5263_v32 = vpop.f32.mrb[87].mxu1 }
 0x39d   :  { %v2009_v31 = vpop.f32.mrb[86].mxu0 }
 0x39e   :  { %3948 = vst [vmem:[%s9368_s2 + $0x1008] sm:$0xff] %v2009_v31  ;;  %v2011_v33 = vpop.f32.mrb[87].mxu0  ;;  %v3210_v34 = vpop.f32.mrb[88].mxu1 }
 0x39f   :  { %3949 = vst [vmem:[%s9368_s2 + $0x1010] sm:$0xff] %v2011_v33  ;;  %3953 = vst.msk [vmem:[%s9368_s2 + $0x1030] sm:$0xff] %vm3436_vm3, %v3210_v34  ;;  %v5266_v36 = vpop.f32.mrb[89].mxu1 }
 0x3a1   :  { %v2015_v35 = vpop.f32.mrb[88].mxu0 }
 0x3a2   :  { %3951 = vst [vmem:[%s9368_s2 + $0x1020] sm:$0xff] %v2015_v35  ;;  %v2017_v37 = vpop.f32.mrb[89].mxu0  ;;  %v3215_v38 = vpop.f32.mrb[90].mxu1 }
 0x3a3   :  { %3952 = vst [vmem:[%s9368_s2 + $0x1028] sm:$0xff] %v2017_v37  ;;  %3956 = vst.msk [vmem:[%s9368_s2 + $0x1048] sm:$0xff] %vm3436_vm3, %v3215_v38  ;;  %v5269_v40 = vpop.f32.mrb[91].mxu1 }
 0x3a5   :  { %v2021_v39 = vpop.f32.mrb[90].mxu0 }
 0x3a6   :  { %3954 = vst [vmem:[%s9368_s2 + $0x1038] sm:$0xff] %v2021_v39  ;;  %v2023_v41 = vpop.f32.mrb[91].mxu0  ;;  %v3220_v42 = vpop.f32.mrb[92].mxu1 }
 0x3a7   :  { %3955 = vst [vmem:[%s9368_s2 + $0x1040] sm:$0xff] %v2023_v41  ;;  %3959 = vst.msk [vmem:[%s9368_s2 + $0x1060] sm:$0xff] %vm3436_vm3, %v3220_v42  ;;  %v5272_v44 = vpop.f32.mrb[93].mxu1 }
 0x3a9   :  { %v2027_v43 = vpop.f32.mrb[92].mxu0 }
 0x3aa   :  { %3957 = vst [vmem:[%s9368_s2 + $0x1050] sm:$0xff] %v2027_v43  ;;  %v2029_v45 = vpop.f32.mrb[93].mxu0  ;;  %v3225_v46 = vpop.f32.mrb[94].mxu1 }
 0x3ab   :  { %3958 = vst [vmem:[%s9368_s2 + $0x1058] sm:$0xff] %v2029_v45  ;;  %3962 = vst.msk [vmem:[%s9368_s2 + $0x1078] sm:$0xff] %vm3436_vm3, %v3225_v46  ;;  %v5275_v48 = vpop.f32.mrb[95].mxu1 }
 0x3ad   :  { %v2033_v47 = vpop.f32.mrb[94].mxu0 }
 0x3ae   :  { %3960 = vst [vmem:[%s9368_s2 + $0x1068] sm:$0xff] %v2033_v47  ;;  %v2035_v49 = vpop.f32.mrb[95].mxu0  ;;  %v3230_v50 = vpop.f32.mrb[96].mxu1 }
 0x3af   :  { %3961 = vst [vmem:[%s9368_s2 + $0x1070] sm:$0xff] %v2035_v49  ;;  %3965 = vst.msk [vmem:[%s9368_s2 + $0x1090] sm:$0xff] %vm3436_vm3, %v3230_v50  ;;  %v5278_v52 = vpop.f32.mrb[97].mxu1 }
 0x3b1   :  { %v2039_v51 = vpop.f32.mrb[96].mxu0 }
 0x3b2   :  { %3963 = vst [vmem:[%s9368_s2 + $0x1080] sm:$0xff] %v2039_v51  ;;  %v2041_v53 = vpop.f32.mrb[97].mxu0  ;;  %v3235_v54 = vpop.f32.mrb[98].mxu1 }
 0x3b3   :  { %3964 = vst [vmem:[%s9368_s2 + $0x1088] sm:$0xff] %v2041_v53  ;;  %3968 = vst.msk [vmem:[%s9368_s2 + $0x10a8] sm:$0xff] %vm3436_vm3, %v3235_v54  ;;  %v5281_v56 = vpop.f32.mrb[99].mxu1 }
 0x3b5   :  { %v2045_v55 = vpop.f32.mrb[98].mxu0 }
 0x3b6   :  { %3966 = vst [vmem:[%s9368_s2 + $0x1098] sm:$0xff] %v2045_v55  ;;  %v2047_v57 = vpop.f32.mrb[99].mxu0  ;;  %v3240_v58 = vpop.f32.mrb[100].mxu1 }
 0x3b7   :  { %3967 = vst [vmem:[%s9368_s2 + $0x10a0] sm:$0xff] %v2047_v57  ;;  %3971 = vst.msk [vmem:[%s9368_s2 + $0x10c0] sm:$0xff] %vm3436_vm3, %v3240_v58  ;;  %v5284_v60 = vpop.f32.mrb[101].mxu1 }
 0x3b9   :  { %v2051_v59 = vpop.f32.mrb[100].mxu0 }
 0x3ba   :  { %3969 = vst [vmem:[%s9368_s2 + $0x10b0] sm:$0xff] %v2051_v59  ;;  %v2053_v61 = vpop.f32.mrb[101].mxu0  ;;  %v3245_v62 = vpop.f32.mrb[102].mxu1 }
 0x3bb   :  { %3970 = vst [vmem:[%s9368_s2 + $0x10b8] sm:$0xff] %v2053_v61  ;;  %3974 = vst.msk [vmem:[%s9368_s2 + $0x10d8] sm:$0xff] %vm3436_vm3, %v3245_v62  ;;  %v5287_v0 = vpop.f32.mrb[103].mxu1 }
 0x3bd   :  { %v2057_v63 = vpop.f32.mrb[102].mxu0 }
 0x3be   :  { %3972 = vst [vmem:[%s9368_s2 + $0x10c8] sm:$0xff] %v2057_v63  ;;  %v2059_v1 = vpop.f32.mrb[103].mxu0  ;;  %v3250_v3 = vpop.f32.mrb[104].mxu1 }
 0x3bf   :  { %3973 = vst [vmem:[%s9368_s2 + $0x10d0] sm:$0xff] %v2059_v1  ;;  %3977 = vst.msk [vmem:[%s9368_s2 + $0x10f0] sm:$0xff] %vm3436_vm3, %v3250_v3  ;;  %v5290_v4 = vpop.f32.mrb[105].mxu1 }
 0x3c1   :  { %v2063_v2 = vpop.f32.mrb[104].mxu0 }
 0x3c2   :  { %3975 = vst [vmem:[%s9368_s2 + $0x10e0] sm:$0xff] %v2063_v2  ;;  %v2065_v5 = vpop.f32.mrb[105].mxu0  ;;  %v3255_v6 = vpop.f32.mrb[106].mxu1 }
 0x3c3   :  { %3976 = vst [vmem:[%s9368_s2 + $0x10e8] sm:$0xff] %v2065_v5  ;;  %3980 = vst.msk [vmem:[%s9368_s2 + $0x1108] sm:$0xff] %vm3436_vm3, %v3255_v6  ;;  %v5293_v8 = vpop.f32.mrb[107].mxu1 }
 0x3c5   :  { %v2069_v7 = vpop.f32.mrb[106].mxu0 }
 0x3c6   :  { %3978 = vst [vmem:[%s9368_s2 + $0x10f8] sm:$0xff] %v2069_v7  ;;  %v2071_v9 = vpop.f32.mrb[107].mxu0  ;;  %v3260_v10 = vpop.f32.mrb[108].mxu1 }
 0x3c7   :  { %3979 = vst [vmem:[%s9368_s2 + $0x1100] sm:$0xff] %v2071_v9  ;;  %3983 = vst.msk [vmem:[%s9368_s2 + $0x1120] sm:$0xff] %vm3436_vm3, %v3260_v10  ;;  %v5296_v12 = vpop.f32.mrb[109].mxu1 }
 0x3c9   :  { %v2075_v11 = vpop.f32.mrb[108].mxu0 }
 0x3ca   :  { %3981 = vst [vmem:[%s9368_s2 + $0x1110] sm:$0xff] %v2075_v11  ;;  %v2077_v13 = vpop.f32.mrb[109].mxu0  ;;  %v3265_v14 = vpop.f32.mrb[110].mxu1 }
 0x3cb   :  { %3982 = vst [vmem:[%s9368_s2 + $0x1118] sm:$0xff] %v2077_v13  ;;  %3986 = vst.msk [vmem:[%s9368_s2 + $0x1138] sm:$0xff] %vm3436_vm3, %v3265_v14  ;;  %v5299_v16 = vpop.f32.mrb[111].mxu1 }
 0x3cd   :  { %v2081_v15 = vpop.f32.mrb[110].mxu0 }
 0x3ce   :  { %3984 = vst [vmem:[%s9368_s2 + $0x1128] sm:$0xff] %v2081_v15  ;;  %v2083_v17 = vpop.f32.mrb[111].mxu0  ;;  %v3270_v18 = vpop.f32.mrb[112].mxu1 }
 0x3cf   :  { %3985 = vst [vmem:[%s9368_s2 + $0x1130] sm:$0xff] %v2083_v17  ;;  %3989 = vst.msk [vmem:[%s9368_s2 + $0x1150] sm:$0xff] %vm3436_vm3, %v3270_v18  ;;  %v5302_v20 = vpop.f32.mrb[113].mxu1 }
 0x3d1   :  { %v2087_v19 = vpop.f32.mrb[112].mxu0 }
 0x3d2   :  { %3987 = vst [vmem:[%s9368_s2 + $0x1140] sm:$0xff] %v2087_v19  ;;  %v2089_v21 = vpop.f32.mrb[113].mxu0  ;;  %v3275_v22 = vpop.f32.mrb[114].mxu1 }
 0x3d3   :  { %3988 = vst [vmem:[%s9368_s2 + $0x1148] sm:$0xff] %v2089_v21  ;;  %3992 = vst.msk [vmem:[%s9368_s2 + $0x1168] sm:$0xff] %vm3436_vm3, %v3275_v22  ;;  %v5305_v24 = vpop.f32.mrb[115].mxu1 }
 0x3d5   :  { %v2093_v23 = vpop.f32.mrb[114].mxu0 }
 0x3d6   :  { %3990 = vst [vmem:[%s9368_s2 + $0x1158] sm:$0xff] %v2093_v23  ;;  %v2095_v25 = vpop.f32.mrb[115].mxu0  ;;  %v3280_v26 = vpop.f32.mrb[116].mxu1 }
 0x3d7   :  { %3991 = vst [vmem:[%s9368_s2 + $0x1160] sm:$0xff] %v2095_v25  ;;  %3995 = vst.msk [vmem:[%s9368_s2 + $0x1180] sm:$0xff] %vm3436_vm3, %v3280_v26  ;;  %v5308_v28 = vpop.f32.mrb[117].mxu1 }
 0x3d9   :  { %v2099_v27 = vpop.f32.mrb[116].mxu0 }
 0x3da   :  { %3993 = vst [vmem:[%s9368_s2 + $0x1170] sm:$0xff] %v2099_v27  ;;  %v2101_v29 = vpop.f32.mrb[117].mxu0  ;;  %v3285_v30 = vpop.f32.mrb[118].mxu1 }
 0x3db   :  { %3994 = vst [vmem:[%s9368_s2 + $0x1178] sm:$0xff] %v2101_v29  ;;  %3998 = vst.msk [vmem:[%s9368_s2 + $0x1198] sm:$0xff] %vm3436_vm3, %v3285_v30  ;;  %v5311_v32 = vpop.f32.mrb[119].mxu1 }
 0x3dd   :  { %v2105_v31 = vpop.f32.mrb[118].mxu0 }
 0x3de   :  { %3996 = vst [vmem:[%s9368_s2 + $0x1188] sm:$0xff] %v2105_v31  ;;  %v2107_v33 = vpop.f32.mrb[119].mxu0  ;;  %v3290_v34 = vpop.f32.mrb[120].mxu1 }
 0x3df   :  { %3997 = vst [vmem:[%s9368_s2 + $0x1190] sm:$0xff] %v2107_v33  ;;  %4001 = vst.msk [vmem:[%s9368_s2 + $0x11b0] sm:$0xff] %vm3436_vm3, %v3290_v34  ;;  %v5314_v36 = vpop.f32.mrb[121].mxu1 }
 0x3e1   :  { %v2111_v35 = vpop.f32.mrb[120].mxu0 }
 0x3e2   :  { %3999 = vst [vmem:[%s9368_s2 + $0x11a0] sm:$0xff] %v2111_v35  ;;  %v2113_v37 = vpop.f32.mrb[121].mxu0  ;;  %v3295_v38 = vpop.f32.mrb[122].mxu1 }
 0x3e3   :  { %4000 = vst [vmem:[%s9368_s2 + $0x11a8] sm:$0xff] %v2113_v37  ;;  %4004 = vst.msk [vmem:[%s9368_s2 + $0x11c8] sm:$0xff] %vm3436_vm3, %v3295_v38  ;;  %v5317_v40 = vpop.f32.mrb[123].mxu1 }
 0x3e5   :  { %v2117_v39 = vpop.f32.mrb[122].mxu0 }
 0x3e6   :  { %4002 = vst [vmem:[%s9368_s2 + $0x11b8] sm:$0xff] %v2117_v39  ;;  %v2119_v41 = vpop.f32.mrb[123].mxu0  ;;  %v3300_v42 = vpop.f32.mrb[124].mxu1 }
 0x3e7   :  { %4003 = vst [vmem:[%s9368_s2 + $0x11c0] sm:$0xff] %v2119_v41  ;;  %4007 = vst.msk [vmem:[%s9368_s2 + $0x11e0] sm:$0xff] %vm3436_vm3, %v3300_v42  ;;  %v5320_v44 = vpop.f32.mrb[125].mxu1 }
 0x3e9   :  { %v2123_v43 = vpop.f32.mrb[124].mxu0 }
 0x3ea   :  { %4005 = vst [vmem:[%s9368_s2 + $0x11d0] sm:$0xff] %v2123_v43  ;;  %v2125_v45 = vpop.f32.mrb[125].mxu0  ;;  %v3305_v46 = vpop.f32.mrb[126].mxu1 }
 0x3eb   :  { %4006 = vst [vmem:[%s9368_s2 + $0x11d8] sm:$0xff] %v2125_v45  ;;  %4010 = vst.msk [vmem:[%s9368_s2 + $0x11f8] sm:$0xff] %vm3436_vm3, %v3305_v46  ;;  %v5323_v48 = vpop.f32.mrb[127].mxu1 }
 0x3ed   :  { %v2129_v47 = vpop.f32.mrb[126].mxu0 }
 0x3ee   :  { %4008 = vst [vmem:[%s9368_s2 + $0x11e8] sm:$0xff] %v2129_v47  ;;  %v2131_v49 = vpop.f32.mrb[127].mxu0  ;;  %v3310_v50 = vpop.f32.mrb[128].mxu1 }
 0x3ef   :  { %4009 = vst [vmem:[%s9368_s2 + $0x11f0] sm:$0xff] %v2131_v49  ;;  %4013 = vst.msk [vmem:[%s9368_s2 + $0x1210] sm:$0xff] %vm3436_vm3, %v3310_v50  ;;  %v5326_v52 = vpop.f32.mrb[129].mxu1 }
 0x3f1   :  { %v2135_v51 = vpop.f32.mrb[128].mxu0 }
 0x3f2   :  { %4011 = vst [vmem:[%s9368_s2 + $0x1200] sm:$0xff] %v2135_v51  ;;  %v2137_v53 = vpop.f32.mrb[129].mxu0  ;;  %v3315_v54 = vpop.f32.mrb[130].mxu1 }
 0x3f3   :  { %4012 = vst [vmem:[%s9368_s2 + $0x1208] sm:$0xff] %v2137_v53  ;;  %4016 = vst.msk [vmem:[%s9368_s2 + $0x1228] sm:$0xff] %vm3436_vm3, %v3315_v54  ;;  %v5329_v56 = vpop.f32.mrb[131].mxu1 }
 0x3f5   :  { %v2141_v55 = vpop.f32.mrb[130].mxu0 }
 0x3f6   :  { %4014 = vst [vmem:[%s9368_s2 + $0x1218] sm:$0xff] %v2141_v55  ;;  %v2143_v57 = vpop.f32.mrb[131].mxu0  ;;  %v3320_v58 = vpop.f32.mrb[132].mxu1 }
 0x3f7   :  { %4015 = vst [vmem:[%s9368_s2 + $0x1220] sm:$0xff] %v2143_v57  ;;  %4019 = vst.msk [vmem:[%s9368_s2 + $0x1240] sm:$0xff] %vm3436_vm3, %v3320_v58  ;;  %v5332_v60 = vpop.f32.mrb[133].mxu1 }
 0x3f9   :  { %v2147_v59 = vpop.f32.mrb[132].mxu0 }
 0x3fa   :  { %4017 = vst [vmem:[%s9368_s2 + $0x1230] sm:$0xff] %v2147_v59  ;;  %v2149_v61 = vpop.f32.mrb[133].mxu0  ;;  %v3325_v62 = vpop.f32.mrb[134].mxu1 }
 0x3fb   :  { %4018 = vst [vmem:[%s9368_s2 + $0x1238] sm:$0xff] %v2149_v61  ;;  %4022 = vst.msk [vmem:[%s9368_s2 + $0x1258] sm:$0xff] %vm3436_vm3, %v3325_v62  ;;  %v5335_v0 = vpop.f32.mrb[135].mxu1 }
 0x3fd   :  { %v2153_v63 = vpop.f32.mrb[134].mxu0 }
 0x3fe   :  { %4020 = vst [vmem:[%s9368_s2 + $0x1248] sm:$0xff] %v2153_v63  ;;  %v2155_v1 = vpop.f32.mrb[135].mxu0  ;;  %v3330_v3 = vpop.f32.mrb[136].mxu1 }
 0x3ff   :  { %4021 = vst [vmem:[%s9368_s2 + $0x1250] sm:$0xff] %v2155_v1  ;;  %4025 = vst.msk [vmem:[%s9368_s2 + $0x1270] sm:$0xff] %vm3436_vm3, %v3330_v3  ;;  %v5338_v4 = vpop.f32.mrb[137].mxu1 }
 0x401   :  { %v2159_v2 = vpop.f32.mrb[136].mxu0 }
 0x402   :  { %4023 = vst [vmem:[%s9368_s2 + $0x1260] sm:$0xff] %v2159_v2  ;;  %v2161_v5 = vpop.f32.mrb[137].mxu0  ;;  %v3335_v6 = vpop.f32.mrb[138].mxu1 }
 0x403   :  { %4024 = vst [vmem:[%s9368_s2 + $0x1268] sm:$0xff] %v2161_v5  ;;  %4028 = vst.msk [vmem:[%s9368_s2 + $0x1288] sm:$0xff] %vm3436_vm3, %v3335_v6  ;;  %v5341_v8 = vpop.f32.mrb[139].mxu1 }
 0x405   :  { %v2165_v7 = vpop.f32.mrb[138].mxu0 }
 0x406   :  { %4026 = vst [vmem:[%s9368_s2 + $0x1278] sm:$0xff] %v2165_v7  ;;  %v2167_v9 = vpop.f32.mrb[139].mxu0  ;;  %v3340_v10 = vpop.f32.mrb[140].mxu1 }
 0x407   :  { %4027 = vst [vmem:[%s9368_s2 + $0x1280] sm:$0xff] %v2167_v9  ;;  %4031 = vst.msk [vmem:[%s9368_s2 + $0x12a0] sm:$0xff] %vm3436_vm3, %v3340_v10  ;;  %v5344_v12 = vpop.f32.mrb[141].mxu1 }
 0x409   :  { %v2171_v11 = vpop.f32.mrb[140].mxu0 }
 0x40a   :  { %4029 = vst [vmem:[%s9368_s2 + $0x1290] sm:$0xff] %v2171_v11  ;;  %v2173_v13 = vpop.f32.mrb[141].mxu0  ;;  %v3345_v14 = vpop.f32.mrb[142].mxu1 }
 0x40b   :  { %4030 = vst [vmem:[%s9368_s2 + $0x1298] sm:$0xff] %v2173_v13  ;;  %4034 = vst.msk [vmem:[%s9368_s2 + $0x12b8] sm:$0xff] %vm3436_vm3, %v3345_v14  ;;  %v5347_v16 = vpop.f32.mrb[143].mxu1 }
 0x40d   :  { %v2177_v15 = vpop.f32.mrb[142].mxu0 }
 0x40e   :  { %4032 = vst [vmem:[%s9368_s2 + $0x12a8] sm:$0xff] %v2177_v15  ;;  %v2179_v17 = vpop.f32.mrb[143].mxu0  ;;  %v3350_v18 = vpop.f32.mrb[144].mxu1 }
 0x40f   :  { %4033 = vst [vmem:[%s9368_s2 + $0x12b0] sm:$0xff] %v2179_v17  ;;  %4037 = vst.msk [vmem:[%s9368_s2 + $0x12d0] sm:$0xff] %vm3436_vm3, %v3350_v18  ;;  %v5350_v20 = vpop.f32.mrb[145].mxu1 }
 0x411   :  { %v2183_v19 = vpop.f32.mrb[144].mxu0 }
 0x412   :  { %4035 = vst [vmem:[%s9368_s2 + $0x12c0] sm:$0xff] %v2183_v19  ;;  %v2185_v21 = vpop.f32.mrb[145].mxu0  ;;  %v3355_v22 = vpop.f32.mrb[146].mxu1 }
 0x413   :  { %4036 = vst [vmem:[%s9368_s2 + $0x12c8] sm:$0xff] %v2185_v21  ;;  %4040 = vst.msk [vmem:[%s9368_s2 + $0x12e8] sm:$0xff] %vm3436_vm3, %v3355_v22  ;;  %v5353_v24 = vpop.f32.mrb[147].mxu1 }
 0x415   :  { %v2189_v23 = vpop.f32.mrb[146].mxu0 }
 0x416   :  { %4038 = vst [vmem:[%s9368_s2 + $0x12d8] sm:$0xff] %v2189_v23  ;;  %v2191_v25 = vpop.f32.mrb[147].mxu0  ;;  %v3360_v26 = vpop.f32.mrb[148].mxu1 }
 0x417   :  { %4039 = vst [vmem:[%s9368_s2 + $0x12e0] sm:$0xff] %v2191_v25  ;;  %4043 = vst.msk [vmem:[%s9368_s2 + $0x1300] sm:$0xff] %vm3436_vm3, %v3360_v26  ;;  %v5356_v28 = vpop.f32.mrb[149].mxu1 }
 0x419   :  { %v2195_v27 = vpop.f32.mrb[148].mxu0 }
 0x41a   :  { %4041 = vst [vmem:[%s9368_s2 + $0x12f0] sm:$0xff] %v2195_v27  ;;  %v2197_v29 = vpop.f32.mrb[149].mxu0  ;;  %v3365_v30 = vpop.f32.mrb[150].mxu1 }
 0x41b   :  { %4042 = vst [vmem:[%s9368_s2 + $0x12f8] sm:$0xff] %v2197_v29  ;;  %4046 = vst.msk [vmem:[%s9368_s2 + $0x1318] sm:$0xff] %vm3436_vm3, %v3365_v30  ;;  %v5359_v32 = vpop.f32.mrb[151].mxu1 }
 0x41d   :  { %v2201_v31 = vpop.f32.mrb[150].mxu0 }
 0x41e   :  { %4044 = vst [vmem:[%s9368_s2 + $0x1308] sm:$0xff] %v2201_v31  ;;  %v2203_v33 = vpop.f32.mrb[151].mxu0  ;;  %v3370_v34 = vpop.f32.mrb[152].mxu1 }
 0x41f   :  { %4045 = vst [vmem:[%s9368_s2 + $0x1310] sm:$0xff] %v2203_v33  ;;  %4049 = vst.msk [vmem:[%s9368_s2 + $0x1330] sm:$0xff] %vm3436_vm3, %v3370_v34  ;;  %v5362_v36 = vpop.f32.mrb[153].mxu1 }
 0x421   :  { %v2207_v35 = vpop.f32.mrb[152].mxu0 }
 0x422   :  { %4047 = vst [vmem:[%s9368_s2 + $0x1320] sm:$0xff] %v2207_v35  ;;  %v2209_v37 = vpop.f32.mrb[153].mxu0  ;;  %v3375_v38 = vpop.f32.mrb[154].mxu1 }
 0x423   :  { %4048 = vst [vmem:[%s9368_s2 + $0x1328] sm:$0xff] %v2209_v37  ;;  %4052 = vst.msk [vmem:[%s9368_s2 + $0x1348] sm:$0xff] %vm3436_vm3, %v3375_v38  ;;  %v5365_v40 = vpop.f32.mrb[155].mxu1 }
 0x425   :  { %v2213_v39 = vpop.f32.mrb[154].mxu0 }
 0x426   :  { %4050 = vst [vmem:[%s9368_s2 + $0x1338] sm:$0xff] %v2213_v39  ;;  %v2215_v41 = vpop.f32.mrb[155].mxu0  ;;  %v3380_v42 = vpop.f32.mrb[156].mxu1 }
 0x427   :  { %4051 = vst [vmem:[%s9368_s2 + $0x1340] sm:$0xff] %v2215_v41  ;;  %4055 = vst.msk [vmem:[%s9368_s2 + $0x1360] sm:$0xff] %vm3436_vm3, %v3380_v42  ;;  %v5368_v44 = vpop.f32.mrb[157].mxu1 }
 0x429   :  { %v2219_v43 = vpop.f32.mrb[156].mxu0 }
 0x42a   :  { %4053 = vst [vmem:[%s9368_s2 + $0x1350] sm:$0xff] %v2219_v43  ;;  %v2221_v45 = vpop.f32.mrb[157].mxu0  ;;  %v3385_v46 = vpop.f32.mrb[158].mxu1 }
 0x42b   :  { %4054 = vst [vmem:[%s9368_s2 + $0x1358] sm:$0xff] %v2221_v45  ;;  %4058 = vst.msk [vmem:[%s9368_s2 + $0x1378] sm:$0xff] %vm3436_vm3, %v3385_v46  ;;  %v5371_v48 = vpop.f32.mrb[159].mxu1 }
 0x42d   :  { %v2225_v47 = vpop.f32.mrb[158].mxu0 }
 0x42e   :  { %4056 = vst [vmem:[%s9368_s2 + $0x1368] sm:$0xff] %v2225_v47  ;;  %v2227_v49 = vpop.f32.mrb[159].mxu0  ;;  %v3390_v50 = vpop.f32.mrb[160].mxu1 }
 0x42f   :  { %4057 = vst [vmem:[%s9368_s2 + $0x1370] sm:$0xff] %v2227_v49  ;;  %4061 = vst.msk [vmem:[%s9368_s2 + $0x1390] sm:$0xff] %vm3436_vm3, %v3390_v50  ;;  %v5374_v52 = vpop.f32.mrb[161].mxu1 }
 0x431   :  { %v2231_v51 = vpop.f32.mrb[160].mxu0 }
 0x432   :  { %4059 = vst [vmem:[%s9368_s2 + $0x1380] sm:$0xff] %v2231_v51  ;;  %v2233_v53 = vpop.f32.mrb[161].mxu0  ;;  %v3395_v54 = vpop.f32.mrb[162].mxu1 }
 0x433   :  { %4060 = vst [vmem:[%s9368_s2 + $0x1388] sm:$0xff] %v2233_v53  ;;  %4064 = vst.msk [vmem:[%s9368_s2 + $0x13a8] sm:$0xff] %vm3436_vm3, %v3395_v54  ;;  %v5377_v56 = vpop.f32.mrb[163].mxu1 }
 0x435   :  { %v2237_v55 = vpop.f32.mrb[162].mxu0 }
 0x436   :  { %4062 = vst [vmem:[%s9368_s2 + $0x1398] sm:$0xff] %v2237_v55  ;;  %v2239_v57 = vpop.f32.mrb[163].mxu0  ;;  %v3400_v58 = vpop.f32.mrb[164].mxu1 }
 0x437   :  { %4063 = vst [vmem:[%s9368_s2 + $0x13a0] sm:$0xff] %v2239_v57  ;;  %4067 = vst.msk [vmem:[%s9368_s2 + $0x13c0] sm:$0xff] %vm3436_vm3, %v3400_v58  ;;  %v5380_v60 = vpop.f32.mrb[165].mxu1 }
 0x439   :  { %v2243_v59 = vpop.f32.mrb[164].mxu0 }
 0x43a   :  { %4065 = vst [vmem:[%s9368_s2 + $0x13b0] sm:$0xff] %v2243_v59  ;;  %v2245_v61 = vpop.f32.mrb[165].mxu0  ;;  %v3405_v62 = vpop.f32.mrb[166].mxu1 }
 0x43b   :  { %4066 = vst [vmem:[%s9368_s2 + $0x13b8] sm:$0xff] %v2245_v61  ;;  %4070 = vst.msk [vmem:[%s9368_s2 + $0x13d8] sm:$0xff] %vm3436_vm3, %v3405_v62  ;;  %v5383_v0 = vpop.f32.mrb[167].mxu1 }
 0x43d   :  { %v2249_v63 = vpop.f32.mrb[166].mxu0 }
 0x43e   :  { %4068 = vst [vmem:[%s9368_s2 + $0x13c8] sm:$0xff] %v2249_v63  ;;  %v2251_v1 = vpop.f32.mrb[167].mxu0  ;;  %v3410_v3 = vpop.f32.mrb[168].mxu1 }
 0x43f   :  { %4069 = vst [vmem:[%s9368_s2 + $0x13d0] sm:$0xff] %v2251_v1  ;;  %4073 = vst.msk [vmem:[%s9368_s2 + $0x13f0] sm:$0xff] %vm3436_vm3, %v3410_v3  ;;  %v5386_v4 = vpop.f32.mrb[169].mxu1 }
 0x441   :  { %v2255_v2 = vpop.f32.mrb[168].mxu0 }
 0x442   :  { %4071 = vst [vmem:[%s9368_s2 + $0x13e0] sm:$0xff] %v2255_v2  ;;  %v2257_v5 = vpop.f32.mrb[169].mxu0  ;;  %v3415_v6 = vpop.f32.mrb[170].mxu1 }
 0x443   :  { %4072 = vst [vmem:[%s9368_s2 + $0x13e8] sm:$0xff] %v2257_v5  ;;  %4076 = vst.msk [vmem:[%s9368_s2 + $0x1408] sm:$0xff] %vm3436_vm3, %v3415_v6  ;;  %v5389_v8 = vpop.f32.mrb[171].mxu1 }
 0x445   :  { %v2261_v7 = vpop.f32.mrb[170].mxu0 }
 0x446   :  { %4074 = vst [vmem:[%s9368_s2 + $0x13f8] sm:$0xff] %v2261_v7  ;;  %v2263_v9 = vpop.f32.mrb[171].mxu0  ;;  %v3420_v10 = vpop.f32.mrb[172].mxu1 }
 0x447   :  { %4075 = vst [vmem:[%s9368_s2 + $0x1400] sm:$0xff] %v2263_v9  ;;  %4079 = vst.msk [vmem:[%s9368_s2 + $0x1420] sm:$0xff] %vm3436_vm3, %v3420_v10  ;;  %v5392_v12 = vpop.f32.mrb[173].mxu1 }
 0x449   :  { %v2267_v11 = vpop.f32.mrb[172].mxu0 }
 0x44a   :  { %4077 = vst [vmem:[%s9368_s2 + $0x1410] sm:$0xff] %v2267_v11  ;;  %v2269_v13 = vpop.f32.mrb[173].mxu0  ;;  %v3425_v14 = vpop.f32.mrb[174].mxu1 }
 0x44b   :  { %4078 = vst [vmem:[%s9368_s2 + $0x1418] sm:$0xff] %v2269_v13  ;;  %4082 = vst.msk [vmem:[%s9368_s2 + $0x1438] sm:$0xff] %vm3436_vm3, %v3425_v14  ;;  %v5395_v16 = vpop.f32.mrb[175].mxu1 }
 0x44d   :  { %v2273_v15 = vpop.f32.mrb[174].mxu0 }
 0x44e   :  { %4080 = vst [vmem:[%s9368_s2 + $0x1428] sm:$0xff] %v2273_v15  ;;  %v2275_v17 = vpop.f32.mrb[175].mxu0  ;;  %v3430_v18 = vpop.f32.mrb[176].mxu1 }
 0x44f   :  { %4081 = vst [vmem:[%s9368_s2 + $0x1430] sm:$0xff] %v2275_v17  ;;  %4085 = vst.msk [vmem:[%s9368_s2 + $0x1450] sm:$0xff] %vm3436_vm3, %v3430_v18  ;;  %v5398_v20 = vpop.f32.mrb[177].mxu1 }
 0x451   :  { %v2279_v19 = vpop.f32.mrb[176].mxu0 }
 0x452   :  { %4083 = vst [vmem:[%s9368_s2 + $0x1440] sm:$0xff] %v2279_v19  ;;  %v2281_v21 = vpop.f32.mrb[177].mxu0 }
 0x453   :  { %4084 = vst [vmem:[%s9368_s2 + $0x1448] sm:$0xff] %v2281_v21 }
 0x454   :  { %4090 = vsyncpa [#allocation3], 1 }

</bundles_post_ra>
